<compile_context>
chip_gen: v7x
topology: tpu7x:2x2x1
jax: 0.10.0
libtpu: 0.0.40
codegen_flags: <defaults>
</compile_context>

<pallas_src>
import jax
import jax.numpy as jnp
from jax import lax
from jax.experimental import pallas as pl
from jax.experimental.pallas import tpu as pltpu

EPS = 1e-5
_INV_SQRT2 = 0.7071067811865476


def _mlp_block_kernel(x1_ref, x2_ref, g_ref, b_ref,
                      w1_ref, b1_ref, w2_ref, b2_ref, o_ref, xn_ref):
    k = pl.program_id(0)

    # First hidden-chunk step: residual add + LayerNorm in f32 (computed once),
    # stash bf16 normalized activations for the remaining chunks.
    @pl.when(k == 0)
    def _():
        x = x1_ref[...] + x2_ref[...]                      # (T, C) f32
        mean = jnp.mean(x, axis=-1, keepdims=True)
        xc = x - mean
        var = jnp.mean(xc * xc, axis=-1, keepdims=True)    # biased var (torch LayerNorm)
        inv = lax.rsqrt(var + EPS)
        xn = xc * inv * g_ref[...] + b_ref[...]
        xn_ref[...] = xn.astype(jnp.bfloat16)

    # Linear1 on this hidden chunk: bf16 MXU operands, f32 accumulation.
    h = jnp.dot(xn_ref[...], w1_ref[...],
                preferred_element_type=jnp.float32) + b1_ref[...]
    # Exact GELU (approximate='none'): 0.5*x*(1+erf(x/sqrt(2))) in f32.
    h = 0.5 * h * (1.0 + lax.erf(h * _INV_SQRT2))
    # Dropout p=0.0 -> identity

    # Partial Linear2 contribution of this hidden chunk.
    partial = jnp.dot(h.astype(jnp.bfloat16), w2_ref[...],
                      preferred_element_type=jnp.float32)

    # Fuse accumulator init with the first partial product (no broadcast-store + RMW).
    @pl.when(k == 0)
    def _():
        o_ref[...] = partial + b2_ref[...]

    @pl.when(k > 0)
    def _():
        o_ref[...] += partial
    # Dropout p=0.0 -> identity


def _default_tk(hidden):
    """Generation-aware hidden-chunk size: fewest grid steps on v7x, 512 elsewhere."""
    try:
        kind = jax.devices()[0].device_kind.lower()
    except Exception:
        kind = ""
    if "v7" in kind or "7x" in kind:
        return hidden          # v7x: HBM is fast, per-grid-step overhead dominates
    return 512                 # v5e/v6e: keep weight chunks small (BW-friendly streaming)


def mlp_block(x157, x171, gamma, beta, w1, b1, w2, b2, *, tk=None):
    """x157, x171: (N, H, W, C). w1: (C, Hd), w2: (Hd, C). Returns (N, H, W, C) f32."""
    N, H, W, C = x157.shape
    Hd = w1.shape[1]
    T = N * H * W

    if tk is None:
        tk = _default_tk(Hd)
    if Hd % tk != 0:
        tk = Hd
    kc = Hd // tk

    # Free reshapes (contiguous); no padding, no post-slice.
    x1 = x157.reshape(T, C).astype(jnp.float32)
    x2 = x171.reshape(T, C).astype(jnp.float32)
    g = gamma.reshape(1, C).astype(jnp.float32)
    b = beta.reshape(1, C).astype(jnp.float32)
    b1r = b1.reshape(1, Hd).astype(jnp.float32)
    b2r = b2.reshape(1, C).astype(jnp.float32)
    # MXU wants bf16 weights; callers should already pass bf16 (astype is a no-op then).
    w1b = w1.astype(jnp.bfloat16)
    w2b = w2.astype(jnp.bfloat16)

    out = pl.pallas_call(
        _mlp_block_kernel,
        out_shape=jax.ShapeDtypeStruct((T, C), jnp.float32),
        grid_spec=pltpu.PrefetchScalarGridSpec(
            num_scalar_prefetch=0,
            grid=(kc,),                                     # reduction over hidden dim
            in_specs=[
                pl.BlockSpec((T, C), lambda k: (0, 0)),     # x1 (resident, full array)
                pl.BlockSpec((T, C), lambda k: (0, 0)),     # x2 (resident, full array)
                pl.BlockSpec((1, C), lambda k: (0, 0)),     # gamma
                pl.BlockSpec((1, C), lambda k: (0, 0)),     # beta
                pl.BlockSpec((C, tk), lambda k: (0, k)),    # w1 chunk (streamed/pipelined)
                pl.BlockSpec((1, tk), lambda k: (0, k)),    # b1 chunk
                pl.BlockSpec((tk, C), lambda k: (k, 0)),    # w2 chunk (streamed/pipelined)
                pl.BlockSpec((1, C), lambda k: (0, 0)),     # b2
            ],
            out_specs=pl.BlockSpec((T, C), lambda k: (0, 0)),   # resident f32 accumulator
            scratch_shapes=[pltpu.VMEM((T, C), jnp.bfloat16)],  # xn (computed at k==0)
        ),
        compiler_params=pltpu.CompilerParams(
            dimension_semantics=("arbitrary",),
        ),
    )(x1, x2, g, b, w1b, b1r, w2b, b2r)

    return out.reshape(N, H, W, C)


if __name__ == "__main__":
    key = jax.random.PRNGKey(0)
    k = jax.random.split(key, 6)

    N, H, W, C, HID = 1, 14, 14, 384, 1536

    x157 = jax.random.normal(k[0], (N, H, W, C), dtype=jnp.float32)
    x171 = jax.random.normal(k[1], (N, H, W, C), dtype=jnp.float32)

    # Deterministic synthetic parameters (same shapes as the torch module).
    # Weights are created once in bf16 so the wrapper does no per-call re-cast.
    gamma = jnp.ones((C,), dtype=jnp.float32)
    beta = jnp.zeros((C,), dtype=jnp.float32)
    w1 = (jax.random.normal(k[2], (C, HID), dtype=jnp.float32)
          / jnp.sqrt(jnp.float32(C))).astype(jnp.bfloat16)
    b1 = jax.random.normal(k[3], (HID,), dtype=jnp.float32) * 0.01
    w2 = (jax.random.normal(k[4], (HID, C), dtype=jnp.float32)
          / jnp.sqrt(jnp.float32(HID))).astype(jnp.bfloat16)
    b2 = jax.random.normal(k[5], (C,), dtype=jnp.float32) * 0.01

    y = mlp_block(x157, x171, gamma, beta, w1, b1, w2, b2)
    jax.block_until_ready(y)

    # Pure-JAX f32 reference (same bf16-quantized weights; only the bf16 MXU operand
    # rounding of activations differs, hence the relaxed tolerance).
    def ref(x1, x2):
        x = (x1 + x2).reshape(-1, C)
        mu = jnp.mean(x, axis=-1, keepdims=True)
        var = jnp.mean((x - mu) ** 2, axis=-1, keepdims=True)
        xn = (x - mu) / jnp.sqrt(var + EPS) * gamma + beta
        h = xn @ w1.astype(jnp.float32) + b1
        h = 0.5 * h * (1.0 + lax.erf(h / jnp.sqrt(2.0)))
        out = h @ w2.astype(jnp.float32) + b2
        return out.reshape(N, H, W, C)

    y_ref = ref(x157, x171)
    assert y.shape == (N, H, W, C)
    max_err = float(jnp.max(jnp.abs(y - y_ref)))
    assert jnp.allclose(y, y_ref, atol=5e-2, rtol=5e-2), max_err
    print("KERNEL_OK")
</pallas_src>

<mosaic_0001>
module attributes {stable_mosaic.version = 11 : i64} {
  func.func @_mlp_block_kernel(%arg0: i32, %arg1: memref<196x384xf32, #tpu.memory_space<vmem>>, %arg2: memref<196x384xf32, #tpu.memory_space<vmem>>, %arg3: memref<1x384xf32, #tpu.memory_space<vmem>>, %arg4: memref<1x384xf32, #tpu.memory_space<vmem>>, %arg5: memref<384x512xbf16, #tpu.memory_space<vmem>>, %arg6: memref<1x512xf32, #tpu.memory_space<vmem>>, %arg7: memref<512x384xbf16, #tpu.memory_space<vmem>>, %arg8: memref<1x384xf32, #tpu.memory_space<vmem>>, %arg9: memref<196x384xf32, #tpu.memory_space<vmem>>, %arg10: memref<196x384xbf16, #tpu.memory_space<vmem>>) attributes {dimension_semantics = [#tpu.dimension_semantics<arbitrary>], iteration_bounds = array<i64: 3>, scalar_prefetch = 0 : i64, scratch_operands = 1 : i64, tpu.core_type = #tpu.core_type<tc>, window_params = [{pipeline_mode = #tpu.pipeline_mode<synchronous>, transform_indices = @transform_0, window_bounds = array<i64: 196, 384>}, {pipeline_mode = #tpu.pipeline_mode<synchronous>, transform_indices = @transform_1, window_bounds = array<i64: 196, 384>}, {pipeline_mode = #tpu.pipeline_mode<synchronous>, transform_indices = @transform_2, window_bounds = array<i64: 1, 384>}, {pipeline_mode = #tpu.pipeline_mode<synchronous>, transform_indices = @transform_3, window_bounds = array<i64: 1, 384>}, {transform_indices = @transform_4, window_bounds = array<i64: 384, 512>}, {transform_indices = @transform_5, window_bounds = array<i64: 1, 512>}, {transform_indices = @transform_6, window_bounds = array<i64: 512, 384>}, {pipeline_mode = #tpu.pipeline_mode<synchronous>, transform_indices = @transform_7, window_bounds = array<i64: 1, 384>}, {pipeline_mode = #tpu.pipeline_mode<synchronous>, transform_indices = @transform_8, window_bounds = array<i64: 196, 384>}]} {
    %c0_i32 = arith.constant 0 : i32
    %0 = arith.cmpi eq, %arg0, %c0_i32 : i32
    %1 = arith.extui %0 : i1 to i32
    %c0_i32_0 = arith.constant 0 : i32
    %2 = arith.cmpi ne, %1, %c0_i32_0 : i32
    scf.if %2 {
      %c0_16 = arith.constant 0 : index
      %c0_17 = arith.constant 0 : index
      %26 = vector.load %arg1[%c0_16, %c0_17] : memref<196x384xf32, #tpu.memory_space<vmem>>, vector<196x384xf32>
      %c0_18 = arith.constant 0 : index
      %c0_19 = arith.constant 0 : index
      %27 = vector.load %arg2[%c0_18, %c0_19] : memref<196x384xf32, #tpu.memory_space<vmem>>, vector<196x384xf32>
      %28 = arith.addf %26, %27 : vector<196x384xf32>
      %cst_20 = arith.constant dense<0.000000e+00> : vector<196xf32>
      %29 = vector.multi_reduction <add>, %28, %cst_20 [1] : vector<196x384xf32> to vector<196xf32>
      %30 = vector.shape_cast %29 : vector<196xf32> to vector<196x1xf32>
      %cst_21 = arith.constant 3.840000e+02 : f32
      %31 = vector.broadcast %cst_21 : f32 to vector<196x1xf32>
      %32 = arith.divf %30, %31 : vector<196x1xf32>
      %33 = vector.broadcast %32 : vector<196x1xf32> to vector<196x384xf32>
      %34 = arith.subf %28, %33 : vector<196x384xf32>
      %35 = arith.mulf %34, %34 : vector<196x384xf32>
      %cst_22 = arith.constant dense<0.000000e+00> : vector<196xf32>
      %36 = vector.multi_reduction <add>, %35, %cst_22 [1] : vector<196x384xf32> to vector<196xf32>
      %37 = vector.shape_cast %36 : vector<196xf32> to vector<196x1xf32>
      %cst_23 = arith.constant 3.840000e+02 : f32
      %38 = vector.broadcast %cst_23 : f32 to vector<196x1xf32>
      %39 = arith.divf %37, %38 : vector<196x1xf32>
      %cst_24 = arith.constant 9.99999974E-6 : f32
      %40 = vector.broadcast %cst_24 : f32 to vector<196x1xf32>
      %41 = arith.addf %39, %40 : vector<196x1xf32>
      %42 = math.rsqrt %41 : vector<196x1xf32>
      %43 = vector.broadcast %42 : vector<196x1xf32> to vector<196x384xf32>
      %44 = arith.mulf %34, %43 : vector<196x384xf32>
      %c0_25 = arith.constant 0 : index
      %c0_26 = arith.constant 0 : index
      %45 = vector.load %arg3[%c0_25, %c0_26] : memref<1x384xf32, #tpu.memory_space<vmem>>, vector<1x384xf32>
      %46 = vector.broadcast %45 : vector<1x384xf32> to vector<196x384xf32>
      %47 = arith.mulf %44, %46 : vector<196x384xf32>
      %c0_27 = arith.constant 0 : index
      %c0_28 = arith.constant 0 : index
      %48 = vector.load %arg4[%c0_27, %c0_28] : memref<1x384xf32, #tpu.memory_space<vmem>>, vector<1x384xf32>
      %49 = vector.broadcast %48 : vector<1x384xf32> to vector<196x384xf32>
      %50 = arith.addf %47, %49 : vector<196x384xf32>
      %51 = arith.truncf %50 : vector<196x384xf32> to vector<196x384xbf16>
      %c0_29 = arith.constant 0 : index
      %c0_30 = arith.constant 0 : index
      %52 = vector.load %arg10[%c0_29, %c0_30] : memref<196x384xbf16, #tpu.memory_space<vmem>>, vector<196x384xbf16>
      tpu.vector_store %arg10[%c0_29, %c0_30], %51 {strides = array<i32>} : memref<196x384xbf16, #tpu.memory_space<vmem>>, vector<196x384xbf16>,
    } else {
    }
    %c0 = arith.constant 0 : index
    %c0_1 = arith.constant 0 : index
    %3 = vector.load %arg10[%c0, %c0_1] : memref<196x384xbf16, #tpu.memory_space<vmem>>, vector<196x384xbf16>
    %c0_2 = arith.constant 0 : index
    %c0_3 = arith.constant 0 : index
    %4 = vector.load %arg5[%c0_2, %c0_3] : memref<384x512xbf16, #tpu.memory_space<vmem>>, vector<384x512xbf16>
    %cst = arith.constant dense<0.000000e+00> : vector<196x512xf32>
    %5 = tpu.matmul %3, %4, %cst {dimension_numbers = #tpu.dot_dimension_numbers<[1], [0], [0], [1], [0, 0, 1, 1], [], []>} : vector<196x384xbf16>, vector<384x512xbf16>, vector<196x512xf32> -> vector<196x512xf32>
    %c0_4 = arith.constant 0 : index
    %c0_5 = arith.constant 0 : index
    %6 = vector.load %arg6[%c0_4, %c0_5] : memref<1x512xf32, #tpu.memory_space<vmem>>, vector<1x512xf32>
    %7 = vector.broadcast %6 : vector<1x512xf32> to vector<196x512xf32>
    %8 = arith.addf %5, %7 : vector<196x512xf32>
    %cst_6 = arith.constant 5.000000e-01 : f32
    %9 = vector.broadcast %cst_6 : f32 to vector<196x512xf32>
    %10 = arith.mulf %9, %8 : vector<196x512xf32>
    %cst_7 = arith.constant 0.707106769 : f32
    %11 = vector.broadcast %cst_7 : f32 to vector<196x512xf32>
    %12 = arith.mulf %8, %11 : vector<196x512xf32>
    %13 = math.erf %12 : vector<196x512xf32>
    %cst_8 = arith.constant 1.000000e+00 : f32
    %14 = vector.broadcast %cst_8 : f32 to vector<196x512xf32>
    %15 = arith.addf %14, %13 : vector<196x512xf32>
    %16 = arith.mulf %10, %15 : vector<196x512xf32>
    %17 = arith.truncf %16 : vector<196x512xf32> to vector<196x512xbf16>
    %c0_9 = arith.constant 0 : index
    %c0_10 = arith.constant 0 : index
    %18 = vector.load %arg7[%c0_9, %c0_10] : memref<512x384xbf16, #tpu.memory_space<vmem>>, vector<512x384xbf16>
    %cst_11 = arith.constant dense<0.000000e+00> : vector<196x384xf32>
    %19 = tpu.matmul %17, %18, %cst_11 {dimension_numbers = #tpu.dot_dimension_numbers<[1], [0], [0], [1], [0, 0, 1, 1], [], []>} : vector<196x512xbf16>, vector<512x384xbf16>, vector<196x384xf32> -> vector<196x384xf32>
    %c0_i32_12 = arith.constant 0 : i32
    %20 = arith.cmpi eq, %arg0, %c0_i32_12 : i32
    %21 = arith.extui %20 : i1 to i32
    %c0_i32_13 = arith.constant 0 : i32
    %22 = arith.cmpi ne, %21, %c0_i32_13 : i32
    scf.if %22 {
      %c0_16 = arith.constant 0 : index
      %c0_17 = arith.constant 0 : index
      %26 = vector.load %arg8[%c0_16, %c0_17] : memref<1x384xf32, #tpu.memory_space<vmem>>, vector<1x384xf32>
      %27 = vector.broadcast %26 : vector<1x384xf32> to vector<196x384xf32>
      %28 = arith.addf %19, %27 : vector<196x384xf32>
      %c0_18 = arith.constant 0 : index
      %c0_19 = arith.constant 0 : index
      %29 = vector.load %arg9[%c0_18, %c0_19] : memref<196x384xf32, #tpu.memory_space<vmem>>, vector<196x384xf32>
      tpu.vector_store %arg9[%c0_18, %c0_19], %28 {strides = array<i32>} : memref<196x384xf32, #tpu.memory_space<vmem>>, vector<196x384xf32>,
    } else {
    }
    %c0_i32_14 = arith.constant 0 : i32
    %23 = arith.cmpi sgt, %arg0, %c0_i32_14 : i32
    %24 = arith.extui %23 : i1 to i32
    %c0_i32_15 = arith.constant 0 : i32
    %25 = arith.cmpi ne, %24, %c0_i32_15 : i32
    scf.if %25 {
      %c0_16 = arith.constant 0 : index
      %c0_17 = arith.constant 0 : index
      %26 = vector.load %arg9[%c0_16, %c0_17] : memref<196x384xf32, #tpu.memory_space<vmem>>, vector<196x384xf32>
      %27 = arith.addf %26, %19 : vector<196x384xf32>
      %c0_18 = arith.constant 0 : index
      %c0_19 = arith.constant 0 : index
      %28 = vector.load %arg9[%c0_18, %c0_19] : memref<196x384xf32, #tpu.memory_space<vmem>>, vector<196x384xf32>
      tpu.vector_store %arg9[%c0_18, %c0_19], %27 {strides = array<i32>} : memref<196x384xf32, #tpu.memory_space<vmem>>, vector<196x384xf32>,
    } else {
    }
    return
  }
  func.func @transform_0(%arg0: i32) -> (i32, i32) {
    %c0_i32 = arith.constant 0 : i32
    %c0_i32_0 = arith.constant 0 : i32
    %c0_i32_1 = arith.constant 0 : i32
    return %c0_i32, %c0_i32_0 : i32, i32
  }
  func.func @transform_1(%arg0: i32) -> (i32, i32) {
    %c0_i32 = arith.constant 0 : i32
    %c0_i32_0 = arith.constant 0 : i32
    %c0_i32_1 = arith.constant 0 : i32
    return %c0_i32, %c0_i32_0 : i32, i32
  }
  func.func @transform_2(%arg0: i32) -> (i32, i32) {
    %c0_i32 = arith.constant 0 : i32
    %c0_i32_0 = arith.constant 0 : i32
    %c0_i32_1 = arith.constant 0 : i32
    return %c0_i32, %c0_i32_0 : i32, i32
  }
  func.func @transform_3(%arg0: i32) -> (i32, i32) {
    %c0_i32 = arith.constant 0 : i32
    %c0_i32_0 = arith.constant 0 : i32
    %c0_i32_1 = arith.constant 0 : i32
    return %c0_i32, %c0_i32_0 : i32, i32
  }
  func.func @transform_4(%arg0: i32) -> (i32, i32) {
    %c0_i32 = arith.constant 0 : i32
    %c0_i32_0 = arith.constant 0 : i32
    return %c0_i32, %arg0 : i32, i32
  }
  func.func @transform_5(%arg0: i32) -> (i32, i32) {
    %c0_i32 = arith.constant 0 : i32
    %c0_i32_0 = arith.constant 0 : i32
    return %c0_i32, %arg0 : i32, i32
  }
  func.func @transform_6(%arg0: i32) -> (i32, i32) {
    %c0_i32 = arith.constant 0 : i32
    %c0_i32_0 = arith.constant 0 : i32
    return %arg0, %c0_i32 : i32, i32
  }
  func.func @transform_7(%arg0: i32) -> (i32, i32) {
    %c0_i32 = arith.constant 0 : i32
    %c0_i32_0 = arith.constant 0 : i32
    %c0_i32_1 = arith.constant 0 : i32
    return %c0_i32, %c0_i32_0 : i32, i32
  }
  func.func @transform_8(%arg0: i32) -> (i32, i32) {
    %c0_i32 = arith.constant 0 : i32
    %c0_i32_0 = arith.constant 0 : i32
    %c0_i32_1 = arith.constant 0 : i32
    return %c0_i32, %c0_i32_0 : i32, i32
  }
}

</mosaic_0001>

<bundles_post_ra>
// kernel: tpu_custom_call.1
= control target key start
LH: loop header
LB: loop body
LE: loop exit
PB: predicated region body
PF: predicated region fallthrough
CT: control target
= control target key end

     0   :  { %s10256_s0 = inlined_call_operand.hbm [shape: f32[196,384], index: 0, kind: input, shape index: {}]   ;;  %s10257_s1 = inlined_call_operand.hbm [shape: f32[196,384], index: 1, kind: input, shape index: {}]   ;;  %s10258_s2 = inlined_call_operand.hbm [shape: f32[1,384], index: 2, kind: input, shape index: {}]   ;;  %s10259_s3 = inlined_call_operand.hbm [shape: f32[1,384], index: 3, kind: input, shape index: {}]   ;;  %s10260_s4 = inlined_call_operand.hbm [shape: bf16[384,1536], index: 4, kind: input, shape index: {}]   ;;  %s10261_s5 = inlined_call_operand.hbm [shape: f32[1,1536], index: 5, kind: input, shape index: {}]   ;;  %s10262_s6 = inlined_call_operand.hbm [shape: bf16[1536,384], index: 6, kind: input, shape index: {}]   ;;  %s10263_s7 = inlined_call_operand.hbm [shape: f32[1,384], index: 7, kind: input, shape index: {}]   ;;  %s10264_s8 = inlined_call_operand.hbm [shape: f32[196,384], index: 8, kind: output, shape index: {}]  }
   0x1   :  { %10361 = sst [smem:[#allocation113_spill]] %s10256_s0 }
   0x2   :  { %10362 = sst [smem:[#allocation114_spill]] %s10257_s1 }
   0x3   :  { %10363 = sst [smem:[#allocation115_spill]] %s10260_s4 }
   0x4   :  { %10364 = sst [smem:[#allocation116_spill]] %s10264_s8 }
   0x5   :  { %13 = vsyncpa [#allocation4], 0 }
   0x6   :  { %14 = vsyncpa [#allocation7], 0 }
   0x7   :  { %15 = vsyncpa [#allocation10], 0 }
   0x8   :  { %16 = vsyncpa [#allocation5], 0  ;;  %s7405_s27 = smov 0   ;;  %s7407_s28 = smov 0  }
   0x9   :  { %s7409_s29 = smov 0   ;;  %s7411_s30 = smov 0  }
   0xa LB: > { %10365 = sst [smem:[#allocation22_spill]] %s7331_s28  ;;  %s7424_s9 = sadd.s32 4294967295, %s7339_s30   ;;  %s7339_s30 = sphi %s7411_s30, %s10710_s30   ;;  %s7335_s29 = sphi %s7409_s29, %s10714_s29   ;;  %s7331_s28 = sphi %s7407_s28, %s10713_s28   ;;  %s7327_s27 = sphi %s7405_s27, %s10711_s27  }
   0xb   : > { %10366 = sst [smem:[#allocation23_spill]] %s7424_s9  ;;  %p126_p0 = scmp.ne.s32.totalorder %s7331_s28, %s7327_s27 }
   0xc   : > { %p10265_p1 = scmp.eq.s32.totalorder %s7424_s9, 0  ;;  %p5529_p2 = scmp.ge.s32.totalorder %s7339_s30, 1 }
   0xd   : > { %p231_p3 = scmp.lt.s32.totalorder %s7339_s30, 4  ;;  %s7341_s12 = smov [#allocation3]  }
   0xe   : > { %p7433_p5 = por %p10265_p1, %p126_p0  ;;  %s243_s13 = sshll.u32 %s7341_s12, 4  ;;  %s244_s13 = int_to_ptr.vmem [resolvable:$true] %s243_s13 }
   0xf   : > { %p7437_p6 = pnand %p5529_p2, %p231_p3  ;;  %s7342_s15 = smov [#allocation6]  }
  0x10   : > { %s10367_s10 = scalar_select %p7433_p5, 1, 0 }
  0x11   : > { %s10369_s11 = scalar_select %p7437_p6, 1, 0 }
  0x12   : > { %10368 = sst [smem:[#allocation24_spill]] %s10367_s10  ;;  %p6369_p7 = pneg %p7437_p6 }
  0x13   : > { %s256_s16 = sshll.u32 %s7342_s15, 4  ;;  %s10371_s0 = sld [smem:[#allocation113_spill]]  ;;  %s7449_s16 = int_to_ptr.vmem [resolvable:$true] %s256_s16 }
  0x14   : > { %p7445_p8 = pnand %p6369_p7, %p10265_p1 }
  0x16   : > { %s10370_s14 = scalar_select %p7445_p8, 1, 0 }
  0x17   : > { %p7459_p10 = pneg %p7445_p8 }
  0x19   : > { %s7029_s19 = scalar_lea.hbm %s10371_s0, 9600 }
  0x1a   : > { %p7030_p9 = scmp.ne.s32.totalorder %s10371_s0, %s7029_s19  ;;  %p7036_p13 = scmp.lt.u32.totalorder %s7029_s19, %s10371_s0 }
  0x1b   : > { %s10372_s22 = scalar_select %p7459_p10, 1, 0 }
  0x1c   : > { %p7032_p11 = pnand %p7459_p10, %p7030_p9 }
  0x1e   : > { %p7033_p12 = pneg %p7032_p11 }
  0x20   : > { %p7038_p0 = pnand %p7036_p13, %p7033_p12 }
  0x22   : > { %7041 = shalt.err (!%p7038_p0)
}
  0x23   : > { %s7042_s25 = scalar_lea.vmem %s244_s13, 9600  ;;  %p7050_p4 = scmp.lt.s32.totalorder %s244_s13, %s244_s13 }
  0x24   : > { %p7043_p2 = scmp.ne.s32.totalorder %s244_s13, %s7042_s25  ;;  %p7051_p1 = scmp.lt.s32.totalorder %s7042_s25, %s7042_s25 }
  0x26   : > { %p7045_p3 = pnand %p7043_p2, %p7459_p10  ;;  %p7052_p5 = por %p7051_p1, %p7050_p4 }
  0x28   : > { %p7046_p7 = pneg %p7045_p3 }
  0x2a   : > { %p7053_p6 = pnand %p7052_p5, %p7046_p7 }
  0x2c   : > { %7056 = shalt.err (!%p7053_p6)
}
  0x2d   : > { %s7343_s26 = smov 384   ;;  %s7344_s27 = smov 24  }
  0x2e   : > { %6372 = dma.hbm_to_vmem [thread:$0]  (!%p7445_p8), %s10371_s0, 9600, %s244_s13, [#allocation4], %s7343_s26, %s7343_s26, %s7344_s27  }
  0x2f   : > { %s10373_s1 = sld [smem:[#allocation114_spill]] }
  0x35   : > { %s7057_s19 = scalar_lea.hbm %s10373_s1, 9600 }
  0x36   : > { %p7058_p9 = scmp.ne.s32.totalorder %s10373_s1, %s7057_s19  ;;  %p7064_p5 = scmp.lt.u32.totalorder %s7057_s19, %s10373_s1 }
  0x38   : > { %p7060_p1 = pnand %p7058_p9, %p7459_p10 }
  0x3a   : > { %p7061_p4 = pneg %p7060_p1 }
  0x3c   : > { %p7066_p6 = pnand %p7064_p5, %p7061_p4 }
  0x3e   : > { %7069 = shalt.err (!%p7066_p6)
}
  0x3f   : > { %s7070_s13 = scalar_lea.vmem %s7449_s16, 9600  ;;  %p7078_p0 = scmp.lt.s32.totalorder %s7449_s16, %s7449_s16 }
  0x40   : > { %p7071_p11 = scmp.ne.s32.totalorder %s7449_s16, %s7070_s13  ;;  %p7079_p2 = scmp.lt.s32.totalorder %s7070_s13, %s7070_s13 }
  0x42   : > { %p7073_p12 = pnand %p7071_p11, %p7459_p10  ;;  %p7080_p3 = por %p7079_p2, %p7078_p0 }
  0x44   : > { %p7074_p13 = pneg %p7073_p12 }
  0x46   : > { %p7081_p7 = pnand %p7080_p3, %p7074_p13 }
  0x48   : > { %7084 = shalt.err (!%p7081_p7)
}
  0x49   : > { %6375 = dma.hbm_to_vmem [thread:$0]  (!%p7445_p8), %s10373_s1, 9600, %s7449_s16, [#allocation7], %s7343_s26, %s7343_s26, %s7344_s27  }
  0x4a   : > { %s7499_s15 = sadd.s32 1, %s7339_s30   ;;  %s113_s17 = sadd.s32 1, %s7335_s29 }
  0x4b   : > { %10374 = sst [smem:[#allocation25_spill]] %s7499_s15  ;;  %s110_s18 = ssub.s32 %s7339_s30, %s7499_s15 }
  0x4c   : > { %p120_p9 = scmp.ne.s32.totalorder %s7335_s29, %s7331_s28  ;;  %p111_p1 = scmp.eq.s32.totalorder %s110_s18, 0 }
  0x4d   : > { %p121_p4 = scmp.eq.s32.totalorder %s7339_s30, 0  ;;  %p6400_p5 = scmp.lt.s32.totalorder %s7339_s30, 3 }
  0x4e   : > { %s303_s19 = sand.u32 1, %s7339_s30   ;;  %s10268_s21 = sand.u32 1, %s7335_s29  }
  0x4f   : > { %s7510_s20 = scalar_select %p111_p1, %s7335_s29, %s113_s17  }
  0x50   : > { %p122_p6 = por %p121_p4, %p120_p9  ;;  %s5839_s23 = sshll.u32 %s7339_s30, 8 }
  0x51   : > { %10375 = sst [smem:[#allocation26_spill]] %s7510_s20  ;;  %s7516_s24 = smul.u32 768, %s10268_s21 }
  0x52   : > { %s10376_s4 = sld [smem:[#allocation115_spill]]  ;;  %p7523_p11 = pnand %p6400_p5, %p122_p6 }
  0x53   : > { %s307_s25 = scalar_lea.vmem [#allocation11], %s7516_s24  ;;  %s7530_s17 = scalar_lea.sflag [#allocation4], %s303_s19 }
  0x54   : > { %s10377_s27 = scalar_select %p7523_p11, 1, 0 }
  0x55   : > { %s314_s12 = sshll.u32 %s307_s25, 4  ;;  %p7536_p13 = pneg %p7523_p11  ;;  %s7528_s12 = int_to_ptr.vmem [resolvable:$true] %s314_s12 }
  0x58   : > { %s7521_s26 = scalar_lea.hbm %s10376_s4, %s5839_s23  ;;  %s7090_s21 = scalar_lea.hbm %s10376_s4, 36864 }
  0x59   : > { %s7085_s18 = scalar_lea.hbm %s7521_s26, 12288  ;;  %p7091_p3 = scmp.lt.u32.totalorder %s7521_s26, %s10376_s4 }
  0x5a   : > { %p7086_p12 = scmp.ne.s32.totalorder %s7521_s26, %s7085_s18  ;;  %p7092_p7 = scmp.lt.u32.totalorder %s7090_s21, %s7085_s18 }
  0x5b   : > { %s10378_s23 = scalar_select %p7536_p13, 1, 0 }
  0x5c   : > { %p7088_p0 = pnand %p7536_p13, %p7086_p12  ;;  %p7093_p9 = por %p7092_p7, %p7091_p3 }
  0x5d   : > { %p7094_p1 = scmp.lt.u32.totalorder %s7085_s18, %s7521_s26 }
  0x5e   : > { %p7089_p2 = pneg %p7088_p0 }
  0x5f   : > { %p7095_p4 = por %p7094_p1, %p7093_p9 }
  0x61   : > { %p7096_p5 = pnand %p7095_p4, %p7089_p2 }
  0x63   : > { %7099 = shalt.err (!%p7096_p5)
}
  0x64   : > { %s7100_s19 = scalar_lea.vmem %s7528_s12, 12288  ;;  %s7345_s13 = smov [#allocation11]  }
  0x65   : > { %p7101_p6 = scmp.ne.s32.totalorder %s7528_s12, %s7100_s19  ;;  %s7105_s16 = sshll.u32 %s7345_s13, 4  ;;  %s7106_s16 = int_to_ptr.vmem [resolvable:$false] %s7105_s16 }
  0x66   : > { %s7107_s0 = scalar_lea.vmem %s7106_s16, 24576  ;;  %p7108_p8 = scmp.lt.s32.totalorder %s7528_s12, %s7106_s16 }
  0x67   : > { %p7103_p12 = pnand %p7101_p6, %p7536_p13  ;;  %p7109_p10 = scmp.lt.s32.totalorder %s7107_s0, %s7100_s19 }
  0x69   : > { %p7104_p0 = pneg %p7103_p12  ;;  %p7110_p3 = por %p7109_p10, %p7108_p8 }
  0x6b   : > { %p7111_p7 = pnand %p7110_p3, %p7104_p0 }
  0x6d   : > { %7114 = shalt.err (!%p7111_p7)
}
  0x6e   : > { %s7346_s21 = smov 768   ;;  %s7347_s18 = smov 256  }
  0x6f   : > { %s7348_s25 = smov 16   ;;  %s10379_s13 = sand.u32 1, %s7335_s29  }
  0x70   : > { %6388 = dma.hbm_to_vmem [thread:$0]  (!%p7523_p11), %s7521_s26, 12288, %s7528_s12, %s7530_s17, %s7346_s21, %s7347_s18, %s7348_s25  }
  0x71   : > { %s5538_s1 = sshll.u32 %s10379_s13, 2  ;;  %s7349_s4 = smov [#allocation8]  }
  0x72   : > { %s270_s16 = sshll.u32 %s7349_s4, 4  ;;  %s5840_s19 = sshll.u32 %s7339_s30, 6  ;;  %s271_s16 = int_to_ptr.vmem [resolvable:$true] %s270_s16 }
  0x73   : > { %s7115_s15 = scalar_lea.hbm %s10258_s2, 48  ;;  %p10380_p10 = scmp.ne.s32.totalorder %s10372_s22, 0 }
  0x74   : > { %p7116_p8 = scmp.ne.s32.totalorder %s10258_s2, %s7115_s15  ;;  %p7122_p1 = scmp.lt.u32.totalorder %s7115_s15, %s10258_s2 }
  0x76   : > { %p7118_p2 = pnand %p7116_p8, %p10380_p10 }
  0x78   : > { %p7119_p9 = pneg %p7118_p2 }
  0x7a   : > { %p7124_p4 = pnand %p7122_p1, %p7119_p9 }
  0x7c   : > { %7127 = shalt.err (!%p7124_p4)
}
  0x7d   : > { %s7128_s4 = scalar_lea.vmem %s271_s16, 48  ;;  %s7135_s20 = scalar_lea.vmem %s271_s16, 64 }
  0x7e   : > { %p7129_p5 = scmp.ne.s32.totalorder %s271_s16, %s7128_s4  ;;  %p7136_p0 = scmp.lt.s32.totalorder %s271_s16, %s271_s16 }
  0x7f   : > { %p7137_p3 = scmp.lt.s32.totalorder %s7135_s20, %s7128_s4 }
  0x80   : > { %p7131_p6 = pnand %p7129_p5, %p10380_p10 }
  0x81   : > { %p7138_p7 = por %p7137_p3, %p7136_p0 }
  0x82   : > { %p7132_p12 = pneg %p7131_p6 }
  0x84   : > { %p7139_p11 = pnand %p7138_p7, %p7132_p12 }
  0x86   : > { %7142 = shalt.err (!%p7139_p11)
}
  0x87   : > { %p10381_p8 = scmp.ne.s32.totalorder %s10370_s14, 0  ;;  %s7584_s15 = scalar_lea.hbm %s10261_s5, %s5840_s19 }
  0x88   : > { %s328_s26 = scalar_lea.vmem [#allocation12], %s5538_s1  ;;  %s7143_s21 = scalar_lea.hbm %s7584_s15, 64 }
  0x89   : > { %6378 = dma.hbm_to_vmem [thread:$0]  (!%p10381_p8), %s10258_s2, 48, %s271_s16, [#allocation7]  }
  0x8a   : > { %s336_s12 = sshll.u32 %s328_s26, 4  ;;  %p7144_p11 = scmp.ne.s32.totalorder %s7584_s15, %s7143_s21  ;;  %s337_s12 = int_to_ptr.vmem [resolvable:$true] %s336_s12 }
  0x8b   : > { %s7148_s13 = scalar_lea.hbm %s10261_s5, 192  ;;  %p7149_p1 = scmp.lt.u32.totalorder %s7584_s15, %s10261_s5 }
  0x8c   : > { %p7146_p2 = pnand %p7144_p11, %p7536_p13  ;;  %p7150_p4 = scmp.lt.u32.totalorder %s7148_s13, %s7143_s21 }
  0x8d   : > { %p7152_p6 = scmp.lt.u32.totalorder %s7143_s21, %s7584_s15 }
  0x8e   : > { %p7147_p9 = pneg %p7146_p2  ;;  %p7151_p5 = por %p7150_p4, %p7149_p1 }
  0x90   : > { %p7153_p12 = por %p7152_p6, %p7151_p5 }
  0x92   : > { %p7154_p0 = pnand %p7153_p12, %p7147_p9 }
  0x94   : > { %7157 = shalt.err (!%p7154_p0)
}
  0x95   : > { %s7158_s1 = scalar_lea.vmem %s337_s12, 64  ;;  %s7350_s19 = smov [#allocation12]  }
  0x96   : > { %p7159_p3 = scmp.ne.s32.totalorder %s337_s12, %s7158_s1  ;;  %s7163_s4 = sshll.u32 %s7350_s19, 4  ;;  %s7164_s4 = int_to_ptr.vmem [resolvable:$false] %s7163_s4 }
  0x97   : > { %s7165_s20 = scalar_lea.vmem %s7164_s4, 128  ;;  %p7166_p2 = scmp.lt.s32.totalorder %s337_s12, %s7164_s4 }
  0x98   : > { %p7161_p7 = pnand %p7159_p3, %p7536_p13  ;;  %p7167_p8 = scmp.lt.s32.totalorder %s7165_s20, %s7158_s1 }
  0x9a   : > { %p7162_p11 = pneg %p7161_p7  ;;  %p7168_p10 = por %p7167_p8, %p7166_p2 }
  0x9c   : > { %p7169_p1 = pnand %p7168_p10, %p7162_p11 }
  0x9e   : > { %7172 = shalt.err (!%p7169_p1)
}
  0x9f   : > { %p10382_p4 = scmp.ne.s32.totalorder %s10377_s27, 0  ;;  %s7351_s8 = smov [#allocation9]  }
  0xa0   : > { %s281_s10 = sshll.u32 %s7351_s8, 4  ;;  %s7352_s28 = smov [#allocation14]   ;;  %s282_s10 = int_to_ptr.vmem [resolvable:$true] %s281_s10 }
  0xa1   : > { %6391 = dma.hbm_to_vmem [thread:$0]  (!%p10382_p4), %s7584_s15, 64, %s337_s12, %s7530_s17  }
  0xa2   : > { %s292_s9 = sshll.u32 %s7352_s28, 4  ;;  %s7173_s18 = scalar_lea.hbm %s10259_s3, 48  ;;  %s293_s9 = int_to_ptr.vmem [resolvable:$true] %s292_s9 }
  0xa3   : > { %p7174_p10 = scmp.ne.s32.totalorder %s10259_s3, %s7173_s18  ;;  %p10383_p8 = scmp.ne.s32.totalorder %s10372_s22, 0 }
  0xa4   : > { %p7180_p6 = scmp.lt.u32.totalorder %s7173_s18, %s10259_s3 }
  0xa5   : > { %p7176_p9 = pnand %p7174_p10, %p10383_p8 }
  0xa7   : > { %p7177_p5 = pneg %p7176_p9 }
  0xa9   : > { %p7182_p12 = pnand %p7180_p6, %p7177_p5 }
  0xab   : > { %7185 = shalt.err (!%p7182_p12)
}
  0xac   : > { %s7186_s15 = scalar_lea.vmem %s282_s10, 48  ;;  %s7193_s12 = scalar_lea.vmem %s282_s10, 64 }
  0xad   : > { %p7187_p0 = scmp.ne.s32.totalorder %s282_s10, %s7186_s15  ;;  %p7194_p11 = scmp.lt.s32.totalorder %s282_s10, %s282_s10 }
  0xae   : > { %p7195_p2 = scmp.lt.s32.totalorder %s7193_s12, %s7186_s15 }
  0xaf   : > { %p7189_p3 = pnand %p7187_p0, %p10383_p8 }
  0xb0   : > { %p7196_p1 = por %p7195_p2, %p7194_p11 }
  0xb1   : > { %p7190_p7 = pneg %p7189_p3 }
  0xb3   : > { %p7197_p4 = pnand %p7196_p1, %p7190_p7 }
  0xb5   : > { %7200 = shalt.err (!%p7197_p4)
}
  0xb6   : > { %p10384_p10 = scmp.ne.s32.totalorder %s10370_s14, 0  ;;  %s7201_s8 = scalar_lea.hbm %s10263_s7, 48 }
  0xb7   : > { %p7202_p9 = scmp.ne.s32.totalorder %s10263_s7, %s7201_s8  ;;  %p7208_p4 = scmp.lt.u32.totalorder %s7201_s8, %s10263_s7 }
  0xb8   : > { %6381 = dma.hbm_to_vmem [thread:$0]  (!%p10384_p10), %s10259_s3, 48, %s282_s10, [#allocation10]  }
  0xb9   : > { %p7204_p5 = pnand %p7202_p9, %p10383_p8 }
  0xbb   : > { %p7205_p6 = pneg %p7204_p5 }
  0xbd   : > { %p7210_p12 = pnand %p7208_p4, %p7205_p6 }
  0xbf   : > { %7213 = shalt.err (!%p7210_p12)
}
  0xc0   : > { %s7214_s25 = scalar_lea.vmem %s293_s9, 48  ;;  %s7221_s10 = scalar_lea.vmem %s293_s9, 64 }
  0xc1   : > { %p7215_p0 = scmp.ne.s32.totalorder %s293_s9, %s7214_s25  ;;  %p7222_p11 = scmp.lt.s32.totalorder %s293_s9, %s293_s9 }
  0xc2   : > { %p7223_p2 = scmp.lt.s32.totalorder %s7221_s10, %s7214_s25 }
  0xc3   : > { %p7217_p3 = pnand %p7215_p0, %p10383_p8 }
  0xc4   : > { %p7224_p1 = por %p7223_p2, %p7222_p11 }
  0xc5   : > { %p7218_p7 = pneg %p7217_p3 }
  0xc7   : > { %p7225_p13 = pnand %p7224_p1, %p7218_p7 }
  0xc9   : > { %7228 = shalt.err (!%p7225_p13)
}
  0xca   : > { %6384 = dma.hbm_to_vmem [thread:$0]  (!%p10384_p10), %s10263_s7, 48, %s293_s9, [#allocation7]  }
  0xcb   : > { %s6337_s0 = smul.u32 12288, %s7339_s30  ;;  %s347_s15 = scalar_lea.vmem [#allocation13], %s7516_s24 }
  0xcc   : > { %s355_s22 = sshll.u32 %s347_s15, 4  ;;  %p10385_p8 = scmp.ne.s32.totalorder %s10378_s23, 0  ;;  %s7642_s22 = int_to_ptr.vmem [resolvable:$true] %s355_s22 }
  0xcd   : > { %s7647_s19 = scalar_lea.hbm %s10262_s6, %s6337_s0  ;;  %s7234_s24 = scalar_lea.hbm %s10262_s6, 36864 }
  0xce   : > { %s7229_s14 = scalar_lea.hbm %s7647_s19, 12288  ;;  %p7235_p10 = scmp.lt.u32.totalorder %s7647_s19, %s10262_s6 }
  0xcf   : > { %p7230_p13 = scmp.ne.s32.totalorder %s7647_s19, %s7229_s14  ;;  %p7236_p6 = scmp.lt.u32.totalorder %s7234_s24, %s7229_s14 }
  0xd0   : > { %p7238_p12 = scmp.lt.u32.totalorder %s7229_s14, %s7647_s19 }
  0xd1   : > { %p7232_p9 = pnand %p7230_p13, %p10385_p8  ;;  %p7237_p4 = por %p7236_p6, %p7235_p10 }
  0xd3   : > { %p7233_p5 = pneg %p7232_p9  ;;  %p7239_p0 = por %p7238_p12, %p7237_p4 }
  0xd5   : > { %p7240_p3 = pnand %p7239_p0, %p7233_p5 }
  0xd7   : > { %7243 = shalt.err (!%p7240_p3)
}
  0xd8   : > { %s7244_s8 = scalar_lea.vmem %s7642_s22, 12288  ;;  %s7353_s28 = smov [#allocation13]  }
  0xd9   : > { %p7245_p7 = scmp.ne.s32.totalorder %s7642_s22, %s7244_s8  ;;  %s7249_s26 = sshll.u32 %s7353_s28, 4  ;;  %s7250_s26 = int_to_ptr.vmem [resolvable:$false] %s7249_s26 }
  0xda   : > { %s7251_s21 = scalar_lea.vmem %s7250_s26, 24576  ;;  %p7252_p1 = scmp.lt.s32.totalorder %s7642_s22, %s7250_s26 }
  0xdb   : > { %p7247_p11 = pnand %p7245_p7, %p10385_p8  ;;  %p7253_p13 = scmp.lt.s32.totalorder %s7251_s21, %s7244_s8 }
  0xdd   : > { %p7248_p2 = pneg %p7247_p11  ;;  %p7254_p9 = por %p7253_p13, %p7252_p1 }
  0xdf   : > { %p7255_p10 = pnand %p7254_p9, %p7248_p2 }
  0xe1   : > { %7258 = shalt.err (!%p7255_p10)
}
  0xe2   : > { %s7354_s18 = smov 192   ;;  %s7355_s25 = smov 12  }
  0xe3   : > { %p10386_p5 = scmp.ne.s32.totalorder %s10377_s27, 0  ;;  %p10387_p8 = scmp.ne.s32.totalorder %s10369_s11, 0 }
  0xe5   : > { %6394 = dma.hbm_to_vmem [thread:$0]  (!%p10386_p5), %s7647_s19, 12288, %s7642_s22, %s7530_s17, %s7354_s18, %s7354_s18, %s7355_s25  }
  0xe6   : > { %367 = sbr.rel (%p10387_p8) target bundleno = 1699 (0x6a3), region = 52 }
  0xed   : > { %s10388_s23 = sld [smem:[#allocation23_spill]] }
  0xf3   : > { %p10389_p6 = scmp.eq.s32.totalorder %s10388_s23, 0 }
  0xf5   : > { %7302 = dma.done.wait (%p10389_p6), [#allocation4], 9600   ;;  %p10390_p4 = pmov %p10389_p6 }
  0xf7   : > { %7304 = vsyncadd (%p10390_p4), [#allocation4], 4294957696  ;;  %p10391_p12 = pmov %p10390_p4 }
  0xf8   : > { %p10392_p0 = pmov %p10390_p4 }
  0xf9   : > { %7306 = dma.done.wait (%p10391_p12), [#allocation7], 9648  }
  0xfa   : > { %7308 = vsyncadd (%p10392_p0), [#allocation7], 4294957648  ;;  %p10393_p3 = pmov %p10392_p0 }
  0xfb   : > { %p10394_p7 = pmov %p10392_p0 }
  0xfc   : > { %7310 = dma.done.wait (%p10393_p3), [#allocation10], 48  }
  0xfd   : > { %7312 = vsyncadd (%p10394_p7), [#allocation10], 4294967248  ;;  %s10395_s11 = sld [smem:[#allocation22_spill]]  ;;  %s10396_s27 = sld [smem:[#allocation24_spill]] }
  0xfe   : > { %s385_s17 = sand.u32 1, %s10388_s23  }
  0xff   : > { %s386_s16 = scalar_lea.sflag [#allocation4], %s385_s17 }
 0x103   : > { %s387_s10 = sand.u32 1, %s10395_s11   ;;  %p10397_p11 = scmp.ne.s32.totalorder %s10396_s27, 0 }
 0x104   : > { %s6338_s13 = smul.u32 768, %s387_s10 }
 0x106   : > { %s7687_s0 = scalar_lea.vmem [#allocation11], %s6338_s13 }
 0x107   : > { %7314 = dma.done.wait (%p10397_p11), %s386_s16, 24640  }
 0x108   : > { %7316 = vsyncadd (%p10397_p11), %s386_s16, 4294942656  ;;  %s7693_s15 = sshll.u32 %s387_s10, 2  ;;  %s7696_s12 = scalar_lea.vmem [#allocation13], %s6338_s13 }
 0x109   : > { %s398_s22 = scalar_lea.vmem [#allocation12], %s7693_s15  ;;  %p10398_p2 = pmov %p10392_p0 }
 0x10a   : > { %p10399_p1 = pmov %p10392_p0 }
 0x10b   : > { %7318 = dma.done.wait (%p10398_p2), [#allocation7], 48  }
 0x10c   : > { %7320 = vsyncadd (%p10399_p1), [#allocation7], 4294967248  ;;  %p10400_p13 = scmp.ne.s32.totalorder %s10388_s23, 0 }
 0x10e   : > { %456 = sbr.rel (%p10400_p13) target bundleno = 693 (0x2b5), region = 88 }
 0x115   : > { %v460_v0 = vld [vmem:[#allocation3 + $0x18] sm:$0xff]  ;;  %v461_v1 = vld [vmem:[#allocation3 + $0x20] sm:$0xff]  ;;  %v462_v2 = vld [vmem:[#allocation3 + $0x28] sm:$0xff]  ;;  %vm778_vm0 = vcmask 1043456  }
 0x116   : > { %v535_v3 = vld [vmem:[#allocation6 + $0x18] sm:$0xff]  ;;  %v536_v4 = vld [vmem:[#allocation6 + $0x20] sm:$0xff]  ;;  %v537_v5 = vld [vmem:[#allocation6 + $0x28] sm:$0xff] }
 0x117   : > { %v7704_v6 = vadd.f32 %v535_v3, %v460_v0  ;;  %v7706_v7 = vadd.f32 %v536_v4, %v461_v1  ;;  %v7708_v8 = vadd.f32 %v537_v5, %v462_v2  ;;  %v457_v9 = vld [vmem:[#allocation3] sm:$0xff]  ;;  %v458_v10 = vld [vmem:[#allocation3 + $0x8] sm:$0xff]  ;;  %v459_v11 = vld [vmem:[#allocation3 + $0x10] sm:$0xff] }
 0x118   : > { %v532_v12 = vld [vmem:[#allocation6] sm:$0xff]  ;;  %v533_v13 = vld [vmem:[#allocation6 + $0x8] sm:$0xff]  ;;  %v534_v14 = vld [vmem:[#allocation6 + $0x10] sm:$0xff] }
 0x119   : > { %v686_v15 = vadd.f32 %v7706_v7, %v7704_v6  ;;  %v7712_v16 = vadd.f32 %v532_v12, %v457_v9  ;;  %v7714_v17 = vadd.f32 %v533_v13, %v458_v10  ;;  %v7716_v18 = vadd.f32 %v534_v14, %v459_v11  ;;  %v463_v19 = vld [vmem:[#allocation3 + $0x30] sm:$0xff]  ;;  %v464_v20 = vld [vmem:[#allocation3 + $0x38] sm:$0xff]  ;;  %v465_v21 = vld [vmem:[#allocation3 + $0x40] sm:$0xff] }
 0x11a   : > { %v538_v22 = vld [vmem:[#allocation6 + $0x30] sm:$0xff]  ;;  %v539_v23 = vld [vmem:[#allocation6 + $0x38] sm:$0xff]  ;;  %v540_v24 = vld [vmem:[#allocation6 + $0x40] sm:$0xff] }
 0x11b   : > { %v687_v25 = vadd.f32 %v686_v15, %v7708_v8  ;;  %v682_v26 = vadd.f32 %v7714_v17, %v7712_v16  ;;  %v7721_v27 = vadd.f32 %v538_v22, %v463_v19  ;;  %v7723_v28 = vadd.f32 %v539_v23, %v464_v20  ;;  %v466_v29 = vld [vmem:[#allocation3 + $0x48] sm:$0xff]  ;;  %v467_v30 = vld [vmem:[#allocation3 + $0x50] sm:$0xff]  ;;  %v468_v31 = vld [vmem:[#allocation3 + $0x58] sm:$0xff] }
 0x11c   : > { %v7725_v32 = vadd.f32 %v540_v24, %v465_v21  ;;  %v541_v33 = vld [vmem:[#allocation6 + $0x48] sm:$0xff]  ;;  %v542_v34 = vld [vmem:[#allocation6 + $0x50] sm:$0xff]  ;;  %v543_v35 = vld [vmem:[#allocation6 + $0x58] sm:$0xff] }
 0x11d   : > { %688 = vadd.xlane.f32.xlu1 %v687_v25  ;;  %v683_v36 = vadd.f32 %v682_v26, %v7716_v18  ;;  %v690_v37 = vadd.f32 %v7723_v28, %v7721_v27  ;;  %v7730_v38 = vadd.f32 %v541_v33, %v466_v29  ;;  %v7732_v39 = vadd.f32 %v542_v34, %v467_v30  ;;  %v469_v40 = vld [vmem:[#allocation3 + $0x60] sm:$0xff]  ;;  %v470_v41 = vld [vmem:[#allocation3 + $0x68] sm:$0xff]  ;;  %v471_v42 = vld [vmem:[#allocation3 + $0x70] sm:$0xff] }
 0x11e   : > { %v7734_v43 = vadd.f32 %v543_v35, %v468_v31  ;;  %v544_v44 = vld [vmem:[#allocation6 + $0x60] sm:$0xff]  ;;  %v545_v45 = vld [vmem:[#allocation6 + $0x68] sm:$0xff]  ;;  %v546_v46 = vld [vmem:[#allocation6 + $0x70] sm:$0xff] }
 0x11f   : > { %684 = vadd.xlane.f32.xlu0 %v683_v36  ;;  %v691_v47 = vadd.f32 %v690_v37, %v7725_v32  ;;  %v694_v48 = vadd.f32 %v7732_v39, %v7730_v38  ;;  %v7739_v49 = vadd.f32 %v544_v44, %v469_v40  ;;  %v7741_v50 = vadd.f32 %v545_v45, %v470_v41  ;;  %v529_v51 = vld [vmem:[#allocation3 + $0x240] sm:$0xf]  ;;  %v530_v52 = vld [vmem:[#allocation3 + $0x248] sm:$0xf]  ;;  %v531_v53 = vld [vmem:[#allocation3 + $0x250] sm:$0xf] }
 0x120   : > { %v7743_v54 = vadd.f32 %v546_v46, %v471_v42  ;;  %v604_v55 = vld [vmem:[#allocation6 + $0x240] sm:$0xf]  ;;  %v605_v56 = vld [vmem:[#allocation6 + $0x248] sm:$0xf]  ;;  %v606_v57 = vld [vmem:[#allocation6 + $0x250] sm:$0xf] }
 0x121   : > { %692 = vadd.xlane.f32.xlu1 %v691_v47  ;;  %v695_v58 = vadd.f32 %v694_v48, %v7734_v43  ;;  %v698_v59 = vadd.f32 %v7741_v50, %v7739_v49  ;;  %v7748_v60 = vadd.f32 %v604_v55, %v529_v51  ;;  %v7750_v61 = vadd.f32 %v605_v56, %v530_v52  ;;  %v475_v62 = vld [vmem:[#allocation3 + $0x90] sm:$0xff]  ;;  %v476_v63 = vld [vmem:[#allocation3 + $0x98] sm:$0xff]  ;;  %v477_v0 = vld [vmem:[#allocation3 + $0xa0] sm:$0xff] }
 0x122   : > { %v7752_v1 = vadd.f32 %v606_v57, %v531_v53  ;;  %v550_v2 = vld [vmem:[#allocation6 + $0x90] sm:$0xff]  ;;  %v551_v3 = vld [vmem:[#allocation6 + $0x98] sm:$0xff]  ;;  %v552_v4 = vld [vmem:[#allocation6 + $0xa0] sm:$0xff] }
 0x123   : > { %696 = vadd.xlane.f32.xlu0 %v695_v58  ;;  %v699_v5 = vadd.f32 %v698_v59, %v7743_v54  ;;  %v779_v9 = vsel %vm778_vm0, %v7748_v60, 0.0  ;;  %v780_v10 = vsel %vm778_vm0, %v7750_v61, 0.0  ;;  %v7759_v11 = vadd.f32 %v550_v2, %v475_v62  ;;  %v472_v12 = vld [vmem:[#allocation3 + $0x78] sm:$0xff]  ;;  %v473_v13 = vld [vmem:[#allocation3 + $0x80] sm:$0xff]  ;;  %v474_v14 = vld [vmem:[#allocation3 + $0x88] sm:$0xff] }
 0x124   : > { %10401 = vst [vmem:[#allocation27_spill] sm:$0xff] %v7752_v1  ;;  %v781_v15 = vadd.f32 %v780_v10, %v779_v9  ;;  %v782_v19 = vsel %vm778_vm0, %v7752_v1, 0.0  ;;  %v7763_v20 = vadd.f32 %v551_v3, %v476_v63  ;;  %v7765_v21 = vadd.f32 %v552_v4, %v477_v0  ;;  %v547_v22 = vld [vmem:[#allocation6 + $0x78] sm:$0xff]  ;;  %v548_v23 = vld [vmem:[#allocation6 + $0x80] sm:$0xff]  ;;  %v549_v24 = vld [vmem:[#allocation6 + $0x88] sm:$0xff] }
 0x125   : > { %700 = vadd.xlane.f32.xlu1 %v699_v5  ;;  %v7767_v25 = vadd.f32 %v547_v22, %v472_v12  ;;  %v7769_v26 = vadd.f32 %v548_v23, %v473_v13  ;;  %v7771_v29 = vadd.f32 %v549_v24, %v474_v14  ;;  %v481_v30 = vld [vmem:[#allocation3 + $0xc0] sm:$0xff]  ;;  %v482_v31 = vld [vmem:[#allocation3 + $0xc8] sm:$0xff]  ;;  %v483_v33 = vld [vmem:[#allocation3 + $0xd0] sm:$0xff] }
 0x126   : > { %v783_v34 = vadd.f32 %v782_v19, %v781_v15  ;;  %v706_v35 = vadd.f32 %v7763_v20, %v7759_v11  ;;  %v556_v36 = vld [vmem:[#allocation6 + $0xc0] sm:$0xff]  ;;  %v557_v37 = vld [vmem:[#allocation6 + $0xc8] sm:$0xff]  ;;  %v558_v40 = vld [vmem:[#allocation6 + $0xd0] sm:$0xff] }
 0x127   : > { %v702_v41 = vadd.f32 %v7769_v26, %v7767_v25  ;;  %v7777_v42 = vadd.f32 %v556_v36, %v481_v30  ;;  %v7779_v44 = vadd.f32 %v557_v37, %v482_v31  ;;  %v7781_v45 = vadd.f32 %v558_v40, %v483_v33  ;;  %v478_v46 = vld [vmem:[#allocation3 + $0xa8] sm:$0xff]  ;;  %v479_v47 = vld [vmem:[#allocation3 + $0xb0] sm:$0xff]  ;;  %v480_v48 = vld [vmem:[#allocation3 + $0xb8] sm:$0xff] }
 0x128   : > { %784 = vadd.xlane.f32.xlu0 %v783_v34  ;;  %v707_v51 = vadd.f32 %v706_v35, %v7765_v21  ;;  %v553_v52 = vld [vmem:[#allocation6 + $0xa8] sm:$0xff]  ;;  %v554_v53 = vld [vmem:[#allocation6 + $0xb0] sm:$0xff]  ;;  %v555_v55 = vld [vmem:[#allocation6 + $0xb8] sm:$0xff] }
 0x129   : > { %v703_v56 = vadd.f32 %v702_v41, %v7771_v29  ;;  %v714_v57 = vadd.f32 %v7779_v44, %v7777_v42  ;;  %v7787_v58 = vadd.f32 %v553_v52, %v478_v46  ;;  %v7789_v59 = vadd.f32 %v554_v53, %v479_v47  ;;  %v487_v62 = vld [vmem:[#allocation3 + $0xf0] sm:$0xff]  ;;  %v488_v63 = vld [vmem:[#allocation3 + $0xf8] sm:$0xff]  ;;  %v489_v0 = vld [vmem:[#allocation3 + $0x100] sm:$0xff] }
 0x12a   : > { %708 = vadd.xlane.f32.xlu1 %v707_v51  ;;  %v7791_v2 = vadd.f32 %v555_v55, %v480_v48  ;;  %v562_v3 = vld [vmem:[#allocation6 + $0xf0] sm:$0xff]  ;;  %v563_v4 = vld [vmem:[#allocation6 + $0xf8] sm:$0xff]  ;;  %v564_v5 = vld [vmem:[#allocation6 + $0x100] sm:$0xff] }
 0x12b   : > { %v715_v9 = vadd.f32 %v714_v57, %v7781_v45  ;;  %v710_v10 = vadd.f32 %v7789_v59, %v7787_v58  ;;  %v7796_v12 = vadd.f32 %v562_v3, %v487_v62  ;;  %v7798_v13 = vadd.f32 %v563_v4, %v488_v63  ;;  %v484_v14 = vld [vmem:[#allocation3 + $0xd8] sm:$0xff]  ;;  %v485_v15 = vld [vmem:[#allocation3 + $0xe0] sm:$0xff]  ;;  %v486_v19 = vld [vmem:[#allocation3 + $0xe8] sm:$0xff] }
 0x12c   : > { %704 = vadd.xlane.f32.xlu0 %v703_v56  ;;  %v7800_v22 = vadd.f32 %v564_v5, %v489_v0  ;;  %v559_v23 = vld [vmem:[#allocation6 + $0xd8] sm:$0xff]  ;;  %v560_v24 = vld [vmem:[#allocation6 + $0xe0] sm:$0xff]  ;;  %v561_v30 = vld [vmem:[#allocation6 + $0xe8] sm:$0xff] }
 0x12d   : > { %v711_v31 = vadd.f32 %v710_v10, %v7791_v2  ;;  %v722_v33 = vadd.f32 %v7798_v13, %v7796_v12  ;;  %v7805_v34 = vadd.f32 %v559_v23, %v484_v14  ;;  %v7807_v35 = vadd.f32 %v560_v24, %v485_v15  ;;  %v493_v36 = vld [vmem:[#allocation3 + $0x120] sm:$0xff]  ;;  %v494_v37 = vld [vmem:[#allocation3 + $0x128] sm:$0xff]  ;;  %v495_v40 = vld [vmem:[#allocation3 + $0x130] sm:$0xff] }
 0x12e   : > { %716 = vadd.xlane.f32.xlu1 %v715_v9  ;;  %v7809_v41 = vadd.f32 %v561_v30, %v486_v19  ;;  %v568_v46 = vld [vmem:[#allocation6 + $0x120] sm:$0xff]  ;;  %v569_v47 = vld [vmem:[#allocation6 + $0x128] sm:$0xff]  ;;  %v570_v48 = vld [vmem:[#allocation6 + $0x130] sm:$0xff] }
 0x12f   : > { %v723_v51 = vadd.f32 %v722_v33, %v7800_v22  ;;  %v718_v52 = vadd.f32 %v7807_v35, %v7805_v34  ;;  %v7814_v53 = vadd.f32 %v568_v46, %v493_v36  ;;  %v7816_v55 = vadd.f32 %v569_v47, %v494_v37  ;;  %v490_v56 = vld [vmem:[#allocation3 + $0x108] sm:$0xff]  ;;  %v491_v57 = vld [vmem:[#allocation3 + $0x110] sm:$0xff]  ;;  %v492_v62 = vld [vmem:[#allocation3 + $0x118] sm:$0xff] }
 0x130   : > { %712 = vadd.xlane.f32.xlu0 %v711_v31  ;;  %v7818_v63 = vadd.f32 %v570_v48, %v495_v40  ;;  %v565_v0 = vld [vmem:[#allocation6 + $0x108] sm:$0xff]  ;;  %v566_v3 = vld [vmem:[#allocation6 + $0x110] sm:$0xff]  ;;  %v567_v4 = vld [vmem:[#allocation6 + $0x118] sm:$0xff] }
 0x131   : > { %v719_v5 = vadd.f32 %v718_v52, %v7809_v41  ;;  %v730_v9 = vadd.f32 %v7816_v55, %v7814_v53  ;;  %v7823_v10 = vadd.f32 %v565_v0, %v490_v56  ;;  %v7825_v14 = vadd.f32 %v566_v3, %v491_v57  ;;  %v499_v15 = vld [vmem:[#allocation3 + $0x150] sm:$0xff]  ;;  %v500_v19 = vld [vmem:[#allocation3 + $0x158] sm:$0xff]  ;;  %v501_v23 = vld [vmem:[#allocation3 + $0x160] sm:$0xff] }
 0x132   : > { %724 = vadd.xlane.f32.xlu1 %v723_v51  ;;  %v7827_v24 = vadd.f32 %v567_v4, %v492_v62  ;;  %v574_v30 = vld [vmem:[#allocation6 + $0x150] sm:$0xff]  ;;  %v575_v31 = vld [vmem:[#allocation6 + $0x158] sm:$0xff]  ;;  %v576_v33 = vld [vmem:[#allocation6 + $0x160] sm:$0xff] }
 0x133   : > { %v731_v36 = vadd.f32 %v730_v9, %v7818_v63  ;;  %v726_v37 = vadd.f32 %v7825_v14, %v7823_v10  ;;  %v7832_v40 = vadd.f32 %v574_v30, %v499_v15  ;;  %v7834_v46 = vadd.f32 %v575_v31, %v500_v19  ;;  %v496_v47 = vld [vmem:[#allocation3 + $0x138] sm:$0xff]  ;;  %v497_v48 = vld [vmem:[#allocation3 + $0x140] sm:$0xff]  ;;  %v498_v52 = vld [vmem:[#allocation3 + $0x148] sm:$0xff] }
 0x134   : > { %10402 = vst [vmem:[#allocation28_spill] sm:$0xff] %v7827_v24  ;;  %720 = vadd.xlane.f32.xlu0 %v719_v5  ;;  %v7836_v56 = vadd.f32 %v576_v33, %v501_v23  ;;  %v571_v51 = vld [vmem:[#allocation6 + $0x138] sm:$0xff]  ;;  %v572_v57 = vld [vmem:[#allocation6 + $0x140] sm:$0xff]  ;;  %v573_v62 = vld [vmem:[#allocation6 + $0x148] sm:$0xff] }
 0x135   : > { %10403 = vst [vmem:[#allocation29_spill] sm:$0xff] %v7832_v40  ;;  %10404 = vst [vmem:[#allocation30_spill] sm:$0xff] %v7834_v46  ;;  %v727_v0 = vadd.f32 %v726_v37, %v7827_v24  ;;  %v738_v3 = vadd.f32 %v7834_v46, %v7832_v40  ;;  %v7841_v4 = vadd.f32 %v571_v51, %v496_v47  ;;  %v505_v15 = vld [vmem:[#allocation3 + $0x180] sm:$0xff]  ;;  %v506_v19 = vld [vmem:[#allocation3 + $0x188] sm:$0xff] }
 0x136   : > { %10405 = vst [vmem:[#allocation31_spill] sm:$0xff] %v7836_v56  ;;  %v7843_v9 = vadd.f32 %v572_v57, %v497_v48  ;;  %v507_v30 = vld [vmem:[#allocation3 + $0x190] sm:$0xff]  ;;  %732 = vadd.xlane.f32.xlu1 %v731_v36  ;;  %v7845_v31 = vadd.f32 %v573_v62, %v498_v52  ;;  %v580_v5 = vld [vmem:[#allocation6 + $0x180] sm:$0xff]  ;;  %v581_v23 = vld [vmem:[#allocation6 + $0x188] sm:$0xff] }
 0x137   : > { %10406 = vst [vmem:[#allocation32_spill] sm:$0xff] %v7841_v4  ;;  %v582_v33 = vld [vmem:[#allocation6 + $0x190] sm:$0xff]  ;;  %v739_v1 = vadd.f32 %v738_v3, %v7836_v56  ;;  %v7850_v24 = vadd.f32 %v580_v5, %v505_v15  ;;  %v7852_v47 = vadd.f32 %v581_v23, %v506_v19  ;;  %v503_v51 = vld [vmem:[#allocation3 + $0x170] sm:$0xff]  ;;  %v504_v57 = vld [vmem:[#allocation3 + $0x178] sm:$0xff] }
 0x138   : > { %10407 = vst [vmem:[#allocation33_spill] sm:$0xff] %v7843_v9  ;;  %10408 = vst [vmem:[#allocation34_spill] sm:$0xff] %v7845_v31  ;;  %v734_v37 = vadd.f32 %v7843_v9, %v7841_v4  ;;  %v502_v48 = vld [vmem:[#allocation3 + $0x168] sm:$0xff]  ;;  %728 = vadd.xlane.f32.xlu0 %v727_v0  ;;  %v7854_v46 = vadd.f32 %v582_v33, %v507_v30  ;;  %v577_v36 = vld [vmem:[#allocation6 + $0x168] sm:$0xff] }
 0x139   : > { %10409 = vst [vmem:[#allocation35_spill] sm:$0xff] %v7850_v24  ;;  %10410 = vst [vmem:[#allocation36_spill] sm:$0xff] %v7852_v47  ;;  %v578_v52 = vld [vmem:[#allocation6 + $0x170] sm:$0xff]  ;;  %v579_v62 = vld [vmem:[#allocation6 + $0x178] sm:$0xff]  ;;  %v746_v3 = vadd.f32 %v7852_v47, %v7850_v24  ;;  %v7859_v56 = vadd.f32 %v577_v36, %v502_v48 }
 0x13a   : > { %10411 = vst [vmem:[#allocation37_spill] sm:$0xff] %v7854_v46  ;;  %v735_v40 = vadd.f32 %v734_v37, %v7845_v31  ;;  %v7861_v15 = vadd.f32 %v578_v52, %v503_v51  ;;  %v511_v19 = vld [vmem:[#allocation3 + $0x1b0] sm:$0xff]  ;;  %v512_v5 = vld [vmem:[#allocation3 + $0x1b8] sm:$0xff]  ;;  %v513_v23 = vld [vmem:[#allocation3 + $0x1c0] sm:$0xff]  ;;  %740 = vadd.xlane.f32.xlu1 %v739_v1  ;;  %v7863_v9 = vadd.f32 %v579_v62, %v504_v57 }
 0x13b   : > { %10412 = vst [vmem:[#allocation38_spill] sm:$0xff] %v7859_v56  ;;  %v586_v0 = vld [vmem:[#allocation6 + $0x1b0] sm:$0xff]  ;;  %v587_v30 = vld [vmem:[#allocation6 + $0x1b8] sm:$0xff]  ;;  %v588_v33 = vld [vmem:[#allocation6 + $0x1c0] sm:$0xff]  ;;  %v747_v4 = vadd.f32 %v746_v3, %v7854_v46 }
 0x13c   : > { %10413 = vst [vmem:[#allocation39_spill] sm:$0xff] %v7861_v15  ;;  %10414 = vst [vmem:[#allocation40_spill] sm:$0xff] %v7863_v9  ;;  %v742_v37 = vadd.f32 %v7861_v15, %v7859_v56  ;;  %v7868_v31 = vadd.f32 %v586_v0, %v511_v19  ;;  %v7870_v48 = vadd.f32 %v587_v30, %v512_v5  ;;  %v508_v51 = vld [vmem:[#allocation3 + $0x198] sm:$0xff]  ;;  %v509_v36 = vld [vmem:[#allocation3 + $0x1a0] sm:$0xff]  ;;  %736 = vadd.xlane.f32.xlu0 %v735_v40 }
 0x13d   : > { %v510_v52 = vld [vmem:[#allocation3 + $0x1a8] sm:$0xff]  ;;  %v7872_v47 = vadd.f32 %v588_v33, %v513_v23  ;;  %v583_v1 = vld [vmem:[#allocation6 + $0x198] sm:$0xff]  ;;  %v584_v57 = vld [vmem:[#allocation6 + $0x1a0] sm:$0xff] }
 0x13e   : > { %10415 = vst [vmem:[#allocation41_spill] sm:$0xff] %v7868_v31  ;;  %10416 = vst [vmem:[#allocation42_spill] sm:$0xff] %v7870_v48  ;;  %v585_v62 = vld [vmem:[#allocation6 + $0x1a8] sm:$0xff]  ;;  %v743_v24 = vadd.f32 %v742_v37, %v7863_v9  ;;  %v754_v3 = vadd.f32 %v7870_v48, %v7868_v31  ;;  %v7877_v46 = vadd.f32 %v583_v1, %v508_v51  ;;  %v518_v0 = vld [vmem:[#allocation3 + $0x1e8] sm:$0xff]  ;;  %748 = vadd.xlane.f32.xlu1 %v747_v4 }
 0x13f   : > { %10417 = vst [vmem:[#allocation43_spill] sm:$0xff] %v7872_v47  ;;  %v7879_v19 = vadd.f32 %v584_v57, %v509_v36  ;;  %v517_v5 = vld [vmem:[#allocation3 + $0x1e0] sm:$0xff]  ;;  %v519_v30 = vld [vmem:[#allocation3 + $0x1f0] sm:$0xff]  ;;  %v7881_v15 = vadd.f32 %v585_v62, %v510_v52  ;;  %v592_v40 = vld [vmem:[#allocation6 + $0x1e0] sm:$0xff] }
 0x140   : > { %10418 = vst [vmem:[#allocation44_spill] sm:$0xff] %v7877_v46  ;;  %v593_v23 = vld [vmem:[#allocation6 + $0x1e8] sm:$0xff]  ;;  %v594_v33 = vld [vmem:[#allocation6 + $0x1f0] sm:$0xff]  ;;  %v755_v56 = vadd.f32 %v754_v3, %v7872_v47  ;;  %v7886_v9 = vadd.f32 %v592_v40, %v517_v5  ;;  %v515_v1 = vld [vmem:[#allocation3 + $0x1d0] sm:$0xff]  ;;  %744 = vadd.xlane.f32.xlu0 %v743_v24 }
 0x141   : > { %10419 = vst [vmem:[#allocation45_spill] sm:$0xff] %v7879_v19  ;;  %10420 = vst [vmem:[#allocation46_spill] sm:$0xff] %v7881_v15  ;;  %v750_v37 = vadd.f32 %v7879_v19, %v7877_v46  ;;  %v7888_v51 = vadd.f32 %v593_v23, %v518_v0  ;;  %v514_v36 = vld [vmem:[#allocation3 + $0x1c8] sm:$0xff]  ;;  %v516_v57 = vld [vmem:[#allocation3 + $0x1d8] sm:$0xff]  ;;  %v7890_v48 = vadd.f32 %v594_v33, %v519_v30 }
 0x142   : > { %10421 = vst [vmem:[#allocation47_spill] sm:$0xff] %v7886_v9  ;;  %v589_v4 = vld [vmem:[#allocation6 + $0x1c8] sm:$0xff]  ;;  %v590_v52 = vld [vmem:[#allocation6 + $0x1d0] sm:$0xff]  ;;  %v591_v62 = vld [vmem:[#allocation6 + $0x1d8] sm:$0xff]  ;;  %756 = vadd.xlane.f32.xlu1 %v755_v56 }
 0x143   : > { %10422 = vst [vmem:[#allocation48_spill] sm:$0xff] %v7888_v51  ;;  %10423 = vst [vmem:[#allocation49_spill] sm:$0xff] %v7890_v48  ;;  %v751_v31 = vadd.f32 %v750_v37, %v7881_v15  ;;  %v762_v3 = vadd.f32 %v7888_v51, %v7886_v9  ;;  %v7895_v47 = vadd.f32 %v589_v4, %v514_v36  ;;  %v523_v0 = vld [vmem:[#allocation3 + $0x210] sm:$0xff]  ;;  %v524_v40 = vld [vmem:[#allocation3 + $0x218] sm:$0xff] }
 0x144   : > { %v7897_v5 = vadd.f32 %v590_v52, %v515_v1  ;;  %v525_v23 = vld [vmem:[#allocation3 + $0x220] sm:$0xff]  ;;  %v7899_v19 = vadd.f32 %v591_v62, %v516_v57  ;;  %v598_v24 = vld [vmem:[#allocation6 + $0x210] sm:$0xff]  ;;  %v599_v30 = vld [vmem:[#allocation6 + $0x218] sm:$0xff] }
 0x145   : > { %10424 = vst [vmem:[#allocation50_spill] sm:$0xff] %v7895_v47  ;;  %v600_v33 = vld [vmem:[#allocation6 + $0x220] sm:$0xff]  ;;  %v763_v46 = vadd.f32 %v762_v3, %v7890_v48  ;;  %v7904_v15 = vadd.f32 %v598_v24, %v523_v0  ;;  %v7906_v36 = vadd.f32 %v599_v30, %v524_v40  ;;  %v521_v4 = vld [vmem:[#allocation3 + $0x200] sm:$0xff]  ;;  %v522_v52 = vld [vmem:[#allocation3 + $0x208] sm:$0xff]  ;;  %752 = vadd.xlane.f32.xlu0 %v751_v31 }
 0x146   : > { %10425 = vst [vmem:[#allocation51_spill] sm:$0xff] %v7897_v5  ;;  %10426 = vst [vmem:[#allocation52_spill] sm:$0xff] %v7899_v19  ;;  %v758_v37 = vadd.f32 %v7897_v5, %v7895_v47  ;;  %v520_v1 = vld [vmem:[#allocation3 + $0x1f8] sm:$0xff]  ;;  %v7908_v51 = vadd.f32 %v600_v33, %v525_v23  ;;  %v595_v56 = vld [vmem:[#allocation6 + $0x1f8] sm:$0xff] }
 0x147   : > { %v596_v57 = vld [vmem:[#allocation6 + $0x200] sm:$0xff]  ;;  %v597_v62 = vld [vmem:[#allocation6 + $0x208] sm:$0xff]  ;;  %v770_v3 = vadd.f32 %v7906_v36, %v7904_v15  ;;  %v7913_v48 = vadd.f32 %v595_v56, %v520_v1  ;;  %v526_v40 = vld [vmem:[#allocation3 + $0x228] sm:$0xff]  ;;  %764 = vadd.xlane.f32.xlu1 %v763_v46 }
 0x148   : > { %v759_v9 = vadd.f32 %v758_v37, %v7899_v19  ;;  %v7915_v0 = vadd.f32 %v596_v57, %v521_v4  ;;  %v527_v24 = vld [vmem:[#allocation3 + $0x230] sm:$0xff]  ;;  %v528_v30 = vld [vmem:[#allocation3 + $0x238] sm:$0xff]  ;;  %v7917_v5 = vadd.f32 %v597_v62, %v522_v52  ;;  %v601_v31 = vld [vmem:[#allocation6 + $0x228] sm:$0xff] }
 0x149   : > { %v602_v23 = vld [vmem:[#allocation6 + $0x230] sm:$0xff]  ;;  %v603_v33 = vld [vmem:[#allocation6 + $0x238] sm:$0xff]  ;;  %v771_v47 = vadd.f32 %v770_v3, %v7908_v51  ;;  %v7922_v19 = vadd.f32 %v601_v31, %v526_v40 }
 0x14a   : > { %v766_v37 = vadd.f32 %v7915_v0, %v7913_v48  ;;  %v7924_v1 = vadd.f32 %v602_v23, %v527_v24  ;;  %760 = vadd.xlane.f32.xlu0 %v759_v9  ;;  %v7926_v4 = vadd.f32 %v603_v33, %v528_v30 }
 0x14b   : > { %772 = vadd.xlane.f32.xlu1 %v771_v47 }
 0x14c   : > { %v767_v56 = vadd.f32 %v766_v37, %v7917_v5  ;;  %v774_v46 = vadd.f32 %v7924_v1, %v7922_v19 }
 0x14e   : > { %768 = vadd.xlane.f32.xlu0 %v767_v56  ;;  %v775_v52 = vadd.f32 %v774_v46, %v7926_v4 }
 0x152   : > { %776 = vadd.xlane.f32.xlu0 %v775_v52 }
 0x1aa   : > { %v689_v57 = vpop.xlane.xlu1 %688 }
 0x1ab   : > { %v788_v62 = vmul.f32 0.0026041667, %v689_v57 }
 0x1ac   : > { %v685_v3 = vpop.xlane.xlu0 %684 }
 0x1ad   : > { %v7933_v40 = vsub.f32 %v7704_v6, %v788_v62  ;;  %v7936_v9 = vsub.f32 %v7706_v7, %v788_v62  ;;  %v7939_v24 = vsub.f32 %v7708_v8, %v788_v62  ;;  %v787_v30 = vmul.f32 0.0026041667, %v685_v3 }
 0x1ae   : > { %v693_v31 = vpop.xlane.xlu1 %692 }
 0x1af   : > { %v7942_v47 = vsub.f32 %v7712_v16, %v787_v30  ;;  %v7945_v23 = vsub.f32 %v7714_v17, %v787_v30  ;;  %v7948_v33 = vsub.f32 %v7716_v18, %v787_v30  ;;  %v789_v37 = vmul.f32 0.0026041667, %v693_v31 }
 0x1b0   : > { %v697_v6 = vpop.xlane.xlu0 %696  ;;  %v890_v7 = vmul.f32 %v7933_v40, %v7933_v40  ;;  %v891_v8 = vmul.f32 %v7936_v9, %v7936_v9  ;;  %v892_v56 = vmul.f32 %v7939_v24, %v7939_v24 }
 0x1b1   : > { %10427 = vst [vmem:[#allocation53_spill] sm:$0xff] %v7948_v33  ;;  %v7957_v16 = vsub.f32 %v7721_v27, %v789_v37  ;;  %v7960_v17 = vsub.f32 %v7723_v28, %v789_v37  ;;  %v7963_v18 = vsub.f32 %v7725_v32, %v789_v37  ;;  %v790_v46 = vmul.f32 0.0026041667, %v697_v6 }
 0x1b2   : > { %v701_v52 = vpop.xlane.xlu1 %700  ;;  %v966_v57 = vadd.f32 %v891_v8, %v890_v7  ;;  %v887_v62 = vmul.f32 %v7942_v47, %v7942_v47  ;;  %v888_v3 = vmul.f32 %v7945_v23, %v7945_v23  ;;  %v889_v30 = vmul.f32 %v7948_v33, %v7948_v33 }
 0x1b3   : > { %v7972_v27 = vsub.f32 %v7730_v38, %v790_v46  ;;  %v7975_v28 = vsub.f32 %v7732_v39, %v790_v46  ;;  %v7978_v32 = vsub.f32 %v7734_v43, %v790_v46  ;;  %v791_v31 = vmul.f32 0.0026041667, %v701_v52 }
 0x1b4   : > { %v967_v37 = vadd.f32 %v966_v57, %v892_v56  ;;  %v962_v6 = vadd.f32 %v888_v3, %v887_v62  ;;  %v893_v7 = vmul.f32 %v7957_v16, %v7957_v16  ;;  %v894_v8 = vmul.f32 %v7960_v17, %v7960_v17 }
 0x1b5   : > { %10428 = vst [vmem:[#allocation54_spill] sm:$0xff] %v7972_v27  ;;  %10429 = vst [vmem:[#allocation55_spill] sm:$0xff] %v7975_v28  ;;  %v7985_v33 = vsub.f32 %v7739_v49, %v791_v31  ;;  %v7988_v38 = vsub.f32 %v7741_v50, %v791_v31  ;;  %v7991_v39 = vsub.f32 %v7743_v54, %v791_v31  ;;  %v785_v43 = vpop.xlane.xlu0 %784 }
 0x1b6   : > { %10430 = vst [vmem:[#allocation56_spill] sm:$0xff] %v7978_v32  ;;  %v7993_v46 = vmul.f32 0.0026041667, %v785_v43  ;;  %968 = vadd.xlane.f32.xlu0 %v967_v37  ;;  %v963_v56 = vadd.f32 %v962_v6, %v889_v30  ;;  %v970_v52 = vadd.f32 %v894_v8, %v893_v7  ;;  %v896_v57 = vmul.f32 %v7972_v27, %v7972_v27 }
 0x1b7   : > { %10431 = vst [vmem:[#allocation57_spill] sm:$0xff] %v7985_v33  ;;  %10432 = vst [vmem:[#allocation58_spill] sm:$0xff] %v7988_v38  ;;  %v709_v62 = vpop.xlane.xlu1 %708  ;;  %v895_v49 = vmul.f32 %v7963_v18, %v7963_v18  ;;  %v897_v50 = vmul.f32 %v7975_v28, %v7975_v28  ;;  %v899_v54 = vmul.f32 %v7985_v33, %v7985_v33 }
 0x1b8   : > { %v900_v3 = vmul.f32 %v7988_v38, %v7988_v38  ;;  %v8007_v30 = vsub.f32 %v7748_v60, %v7993_v46  ;;  %v8011_v31 = vsub.f32 %v7750_v61, %v7993_v46  ;;  %964 = vadd.xlane.f32.xlu1 %v963_v56  ;;  %v793_v37 = vmul.f32 0.0026041667, %v709_v62 }
 0x1b9   : > { %v898_v6 = vmul.f32 %v7978_v32, %v7978_v32  ;;  %v705_v7 = vpop.xlane.xlu0 %704  ;;  %v971_v8 = vadd.f32 %v970_v52, %v895_v49  ;;  %v974_v43 = vadd.f32 %v897_v50, %v896_v57  ;;  %v901_v33 = vmul.f32 %v7991_v39, %v7991_v39 }
 0x1ba   : > { %10433 = vst [vmem:[#allocation59_spill] sm:$0xff] %v8007_v30  ;;  %10434 = vst [vmem:[#allocation60_spill] sm:$0xff] %v8011_v31  ;;  %v978_v38 = vadd.f32 %v900_v3, %v899_v54  ;;  %v8018_v28 = vsub.f32 %v7759_v11, %v793_v37  ;;  %v8021_v60 = vsub.f32 %v7763_v20, %v793_v37  ;;  %v792_v56 = vmul.f32 0.0026041667, %v705_v7 }
 0x1bb   : > { %v8024_v61 = vsub.f32 %v7765_v21, %v793_v37  ;;  %v975_v62 = vadd.f32 %v974_v43, %v898_v6  ;;  %v717_v27 = vpop.xlane.xlu1 %716 }
 0x1bc   : > { %v979_v32 = vadd.f32 %v978_v38, %v901_v33  ;;  %v8027_v52 = vsub.f32 %v7767_v25, %v792_v56  ;;  %v8030_v57 = vsub.f32 %v7769_v26, %v792_v56  ;;  %v8033_v49 = vsub.f32 %v7771_v29, %v792_v56  ;;  %972 = vadd.xlane.f32.xlu1 %v971_v8 }
 0x1bd   : > { %v795_v11 = vmul.f32 0.0026041667, %v717_v27  ;;  %976 = vadd.xlane.f32.xlu0 %v975_v62  ;;  %v713_v20 = vpop.xlane.xlu0 %712  ;;  %v905_v21 = vmul.f32 %v8018_v28, %v8018_v28  ;;  %v906_v50 = vmul.f32 %v8021_v60, %v8021_v60  ;;  %v8041_v25 = vmul.f32 %v8007_v30, %v8007_v30  ;;  %v10451_v30 = vld [vmem:[#allocation30_spill] sm:$0xff] }
 0x1be   : > { %v8045_v26 = vmul.f32 %v8011_v31, %v8011_v31  ;;  %v794_v27 = vmul.f32 0.0026041667, %v713_v20  ;;  %v907_v38 = vmul.f32 %v8024_v61, %v8024_v61  ;;  %v902_v6 = vmul.f32 %v8027_v52, %v8027_v52  ;;  %v10449_v31 = vld [vmem:[#allocation29_spill] sm:$0xff] }
 0x1bf   : > { %v8048_v29 = vsub.f32 %v7777_v42, %v795_v11  ;;  %v8051_v33 = vsub.f32 %v7779_v44, %v795_v11  ;;  %v8056_v54 = vsub.f32 %v7781_v45, %v795_v11  ;;  %v725_v3 = vpop.xlane.xlu1 %724  ;;  %v986_v37 = vadd.f32 %v906_v50, %v905_v21 }
 0x1c0   : > { %v903_v7 = vmul.f32 %v8030_v57, %v8030_v57  ;;  %v8063_v42 = vsub.f32 %v7787_v58, %v794_v27  ;;  %v8066_v44 = vsub.f32 %v7789_v59, %v794_v27  ;;  %980 = vadd.xlane.f32.xlu1 %v979_v32  ;;  %v797_v8 = vmul.f32 0.0026041667, %v725_v3 }
 0x1c1   : > { %v904_v45 = vmul.f32 %v8033_v49, %v8033_v49  ;;  %v721_v43 = vpop.xlane.xlu0 %720  ;;  %v987_v56 = vadd.f32 %v986_v37, %v907_v38  ;;  %v911_v11 = vmul.f32 %v8048_v29, %v8048_v29  ;;  %v912_v20 = vmul.f32 %v8051_v33, %v8051_v33 }
 0x1c2   : > { %v982_v62 = vadd.f32 %v903_v7, %v902_v6  ;;  %v8075_v58 = vsub.f32 %v7791_v2, %v794_v27  ;;  %v8078_v59 = vsub.f32 %v7796_v12, %v797_v8  ;;  %v8081_v32 = vsub.f32 %v7798_v13, %v797_v8 }
 0x1c3   : > { %v796_v21 = vmul.f32 0.0026041667, %v721_v43  ;;  %v733_v3 = vpop.xlane.xlu1 %732  ;;  %v913_v38 = vmul.f32 %v8056_v54, %v8056_v54  ;;  %v994_v37 = vadd.f32 %v912_v20, %v911_v11  ;;  %v908_v6 = vmul.f32 %v8063_v42, %v8063_v42 }
 0x1c4   : > { %10435 = vst [vmem:[#allocation61_spill] sm:$0xff] %v8075_v58  ;;  %10436 = vst [vmem:[#allocation62_spill] sm:$0xff] %v8078_v59  ;;  %v983_v50 = vadd.f32 %v982_v62, %v904_v45  ;;  %v8088_v7 = vsub.f32 %v7800_v22, %v797_v8  ;;  %988 = vadd.xlane.f32.xlu1 %v987_v56  ;;  %v799_v13 = vmul.f32 0.0026041667, %v733_v3 }
 0x1c5   : > { %10437 = vst [vmem:[#allocation63_spill] sm:$0xff] %v8081_v32  ;;  %v8091_v2 = vsub.f32 %v7805_v34, %v796_v21  ;;  %v8094_v12 = vsub.f32 %v7807_v35, %v796_v21  ;;  %v8097_v27 = vsub.f32 %v7809_v41, %v796_v21  ;;  %v729_v45 = vpop.xlane.xlu0 %728  ;;  %v995_v43 = vadd.f32 %v994_v37, %v913_v38  ;;  %v10447_v38 = vld [vmem:[#allocation28_spill] sm:$0xff] }
 0x1c6   : > { %10438 = vst [vmem:[#allocation64_spill] sm:$0xff] %v8088_v7  ;;  %984 = vadd.xlane.f32.xlu0 %v983_v50  ;;  %v909_v62 = vmul.f32 %v8066_v44, %v8066_v44  ;;  %v917_v22 = vmul.f32 %v8078_v59, %v8078_v59  ;;  %v8104_v34 = vsub.f32 %v7814_v53, %v799_v13  ;;  %v798_v8 = vmul.f32 0.0026041667, %v729_v45 }
 0x1c7   : > { %10439 = vst [vmem:[#allocation65_spill] sm:$0xff] %v8091_v2  ;;  %10440 = vst [vmem:[#allocation66_spill] sm:$0xff] %v8094_v12  ;;  %v8107_v35 = vsub.f32 %v7816_v55, %v799_v13  ;;  %v910_v41 = vmul.f32 %v8075_v58, %v8075_v58  ;;  %v8112_v56 = vsub.f32 %v7818_v63, %v799_v13  ;;  %v741_v20 = vpop.xlane.xlu1 %740 }
 0x1c8   : > { %10441 = vst [vmem:[#allocation67_spill] sm:$0xff] %v8097_v27  ;;  %10442 = vst [vmem:[#allocation68_spill] sm:$0xff] %v8104_v34  ;;  %v990_v11 = vadd.f32 %v909_v62, %v908_v6  ;;  %v918_v21 = vmul.f32 %v8081_v32, %v8081_v32  ;;  %v914_v50 = vmul.f32 %v8091_v2, %v8091_v2  ;;  %996 = vadd.xlane.f32.xlu1 %v995_v43 }
 0x1c9   : > { %10443 = vst [vmem:[#allocation69_spill] sm:$0xff] %v8107_v35  ;;  %10444 = vst [vmem:[#allocation70_spill] sm:$0xff] %v8112_v56  ;;  %v8119_v53 = vsub.f32 %v7823_v10, %v798_v8  ;;  %v8122_v55 = vsub.f32 %v7825_v14, %v798_v8  ;;  %v801_v3 = vmul.f32 0.0026041667, %v741_v20  ;;  %v919_v63 = vmul.f32 %v8088_v7, %v8088_v7  ;;  %v737_v13 = vpop.xlane.xlu0 %736 }
 0x1ca   : > { %v8127_v37 = vsub.f32 %v10447_v38, %v798_v8  ;;  %v991_v6 = vadd.f32 %v990_v11, %v910_v41  ;;  %v1002_v45 = vadd.f32 %v918_v21, %v917_v22  ;;  %v915_v62 = vmul.f32 %v8094_v12, %v8094_v12  ;;  %v10453_v11 = vld [vmem:[#allocation31_spill] sm:$0xff]  ;;  %v10455_v21 = vld [vmem:[#allocation32_spill] sm:$0xff] }
 0x1cb   : > { %10445 = vst [vmem:[#allocation71_spill] sm:$0xff] %v8119_v53  ;;  %10446 = vst [vmem:[#allocation72_spill] sm:$0xff] %v8122_v55  ;;  %v8132_v10 = vsub.f32 %v10449_v31, %v801_v3  ;;  %v8135_v14 = vsub.f32 %v10451_v30, %v801_v3  ;;  %v800_v43 = vmul.f32 0.0026041667, %v737_v13  ;;  %v916_v20 = vmul.f32 %v8097_v27, %v8097_v27  ;;  %v749_v38 = vpop.xlane.xlu1 %748  ;;  %v10457_v13 = vld [vmem:[#allocation33_spill] sm:$0xff] }
 0x1cc   : > { %10448 = vst [vmem:[#allocation28_spill] sm:$0xff] %v8127_v37  ;;  %992 = vadd.xlane.f32.xlu0 %v991_v6  ;;  %v1003_v2 = vadd.f32 %v1002_v45, %v919_v63  ;;  %v998_v8 = vadd.f32 %v915_v62, %v914_v50  ;;  %v923_v22 = vmul.f32 %v8104_v34, %v8104_v34  ;;  %v803_v27 = vmul.f32 0.0026041667, %v749_v38  ;;  %v10462_v34 = vld [vmem:[#allocation36_spill] sm:$0xff] }
 0x1cd   : > { %10450 = vst [vmem:[#allocation29_spill] sm:$0xff] %v8132_v10  ;;  %10452 = vst [vmem:[#allocation30_spill] sm:$0xff] %v8135_v14  ;;  %v924_v41 = vmul.f32 %v8107_v35, %v8107_v35  ;;  %v8144_v31 = vsub.f32 %v10453_v11, %v801_v3  ;;  %v8147_v30 = vsub.f32 %v10455_v21, %v800_v43  ;;  %v745_v50 = vpop.xlane.xlu0 %744  ;;  %v10459_v35 = vld [vmem:[#allocation34_spill] sm:$0xff]  ;;  %v10460_v11 = vld [vmem:[#allocation35_spill] sm:$0xff] }
 0x1ce   : > { %v8150_v12 = vsub.f32 %v10457_v13, %v800_v43  ;;  %1004 = vadd.xlane.f32.xlu1 %v1003_v2  ;;  %v999_v63 = vadd.f32 %v998_v8, %v916_v20  ;;  %v925_v6 = vmul.f32 %v8112_v56, %v8112_v56  ;;  %v920_v62 = vmul.f32 %v8119_v53, %v8119_v53  ;;  %v10464_v2 = vld [vmem:[#allocation37_spill] sm:$0xff] }
 0x1cf   : > { %10454 = vst [vmem:[#allocation31_spill] sm:$0xff] %v8144_v31  ;;  %10456 = vst [vmem:[#allocation32_spill] sm:$0xff] %v8147_v30  ;;  %v1010_v45 = vadd.f32 %v924_v41, %v923_v22  ;;  %v8157_v3 = vsub.f32 %v10459_v35, %v800_v43  ;;  %v8160_v21 = vsub.f32 %v10460_v11, %v803_v27  ;;  %v802_v38 = vmul.f32 0.0026041667, %v745_v50  ;;  %v757_v41 = vpop.xlane.xlu1 %756  ;;  %v10465_v43 = vld [vmem:[#allocation38_spill] sm:$0xff]  ;;  %v10467_v11 = vld [vmem:[#allocation39_spill] sm:$0xff] }
 0x1d0   : > { %10458 = vst [vmem:[#allocation33_spill] sm:$0xff] %v8150_v12  ;;  %v8163_v13 = vsub.f32 %v10462_v34, %v803_v27  ;;  %1000 = vadd.xlane.f32.xlu0 %v999_v63  ;;  %v8166_v20 = vsub.f32 %v10464_v2, %v803_v27  ;;  %v921_v22 = vmul.f32 %v8122_v55, %v8122_v55  ;;  %v805_v63 = vmul.f32 0.0026041667, %v757_v41  ;;  %v10468_v27 = vld [vmem:[#allocation40_spill] sm:$0xff] }
 0x1d1   : > { %10461 = vst [vmem:[#allocation34_spill] sm:$0xff] %v8160_v21  ;;  %v1011_v8 = vadd.f32 %v1010_v45, %v925_v6  ;;  %v929_v35 = vmul.f32 %v8132_v10, %v8132_v10  ;;  %v8173_v53 = vsub.f32 %v10465_v43, %v802_v38  ;;  %v8176_v56 = vsub.f32 %v10467_v11, %v802_v38  ;;  %v10469_v10 = vld [vmem:[#allocation41_spill] sm:$0xff]  ;;  %v10470_v11 = vld [vmem:[#allocation42_spill] sm:$0xff] }
 0x1d2   : > { %10463 = vst [vmem:[#allocation35_spill] sm:$0xff] %v8163_v13  ;;  %v922_v34 = vmul.f32 %v8127_v37, %v8127_v37  ;;  %v8181_v50 = vsub.f32 %v10468_v27, %v802_v38  ;;  %v1006_v6 = vadd.f32 %v921_v22, %v920_v62  ;;  %v753_v45 = vpop.xlane.xlu0 %752  ;;  %v930_v2 = vmul.f32 %v8135_v14, %v8135_v14 }
 0x1d3   : > { %10466 = vst [vmem:[#allocation36_spill] sm:$0xff] %v8173_v53  ;;  %1012 = vadd.xlane.f32.xlu1 %v1011_v8  ;;  %v926_v43 = vmul.f32 %v8147_v30, %v8147_v30  ;;  %v8188_v55 = vsub.f32 %v10469_v10, %v805_v63  ;;  %v8191_v7 = vsub.f32 %v10470_v11, %v805_v63  ;;  %v804_v37 = vmul.f32 0.0026041667, %v753_v45  ;;  %v10471_v8 = vld [vmem:[#allocation43_spill] sm:$0xff]  ;;  %v10472_v30 = vld [vmem:[#allocation44_spill] sm:$0xff]  ;;  %v10473_v10 = vld [vmem:[#allocation45_spill] sm:$0xff] }
 0x1d4   : > { %v931_v38 = vmul.f32 %v8144_v31, %v8144_v31  ;;  %v1007_v41 = vadd.f32 %v1006_v6, %v922_v34  ;;  %v8196_v62 = vsub.f32 %v10471_v8, %v805_v63  ;;  %v1018_v22 = vadd.f32 %v930_v2, %v929_v35  ;;  %v765_v14 = vpop.xlane.xlu1 %764  ;;  %v10474_v8 = vld [vmem:[#allocation46_spill] sm:$0xff]  ;;  %v10476_v31 = vld [vmem:[#allocation48_spill] sm:$0xff] }
 0x1d5   : > { %v927_v27 = vmul.f32 %v8150_v12, %v8150_v12  ;;  %v8201_v32 = vsub.f32 %v10472_v30, %v804_v37  ;;  %v8204_v59 = vsub.f32 %v10473_v10, %v804_v37  ;;  %v928_v45 = vmul.f32 %v8157_v3, %v8157_v3  ;;  %v10475_v12 = vld [vmem:[#allocation47_spill] sm:$0xff] }
 0x1d6   : > { %v807_v11 = vmul.f32 0.0026041667, %v765_v14  ;;  %1008 = vadd.xlane.f32.xlu0 %v1007_v41  ;;  %v1019_v34 = vadd.f32 %v1018_v22, %v931_v38  ;;  %v935_v35 = vmul.f32 %v8160_v21, %v8160_v21  ;;  %v936_v2 = vmul.f32 %v8163_v13, %v8163_v13  ;;  %v10478_v13 = vld [vmem:[#allocation49_spill] sm:$0xff]  ;;  %v10481_v21 = vld [vmem:[#allocation51_spill] sm:$0xff] }
 0x1d7   : > { %v1014_v6 = vadd.f32 %v927_v27, %v926_v43  ;;  %v761_v63 = vpop.xlane.xlu0 %760  ;;  %v8213_v30 = vsub.f32 %v10474_v8, %v804_v37  ;;  %v937_v43 = vmul.f32 %v8166_v20, %v8166_v20  ;;  %v932_v22 = vmul.f32 %v8173_v53, %v8173_v53  ;;  %v10479_v8 = vld [vmem:[#allocation50_spill] sm:$0xff] }
 0x1d8   : > { %v8216_v10 = vsub.f32 %v10475_v12, %v807_v11  ;;  %v8219_v58 = vsub.f32 %v10476_v31, %v807_v11  ;;  %v806_v14 = vmul.f32 0.0026041667, %v761_v63  ;;  %1020 = vadd.xlane.f32.xlu1 %v1019_v34  ;;  %v1026_v41 = vadd.f32 %v936_v2, %v935_v35  ;;  %v773_v27 = vpop.xlane.xlu1 %772  ;;  %v10483_v34 = vld [vmem:[#allocation52_spill] sm:$0xff] }
 0x1d9   : > { %v1015_v38 = vadd.f32 %v1014_v6, %v928_v45  ;;  %v8226_v37 = vsub.f32 %v10478_v13, %v807_v11  ;;  %v933_v45 = vmul.f32 %v8176_v56, %v8176_v56  ;;  %v809_v35 = vmul.f32 0.0026041667, %v773_v27 }
 0x1da   : > { %10477 = vst [vmem:[#allocation37_spill] sm:$0xff] %v8219_v58  ;;  %v8229_v12 = vsub.f32 %v10479_v8, %v806_v14  ;;  %v8232_v31 = vsub.f32 %v10481_v21, %v806_v14  ;;  %v8237_v6 = vsub.f32 %v10483_v34, %v806_v14  ;;  %v1027_v63 = vadd.f32 %v1026_v41, %v937_v43 }
 0x1db   : > { %1016 = vadd.xlane.f32.xlu0 %v1015_v38  ;;  %v769_v2 = vpop.xlane.xlu0 %768  ;;  %v941_v13 = vmul.f32 %v8188_v55, %v8188_v55  ;;  %v934_v11 = vmul.f32 %v8181_v50, %v8181_v50  ;;  %v1022_v8 = vadd.f32 %v933_v45, %v932_v22  ;;  %v942_v21 = vmul.f32 %v8191_v7, %v8191_v7 }
 0x1dc   : > { %10480 = vst [vmem:[#allocation38_spill] sm:$0xff] %v8229_v12  ;;  %10482 = vst [vmem:[#allocation39_spill] sm:$0xff] %v8232_v31  ;;  %v808_v53 = vmul.f32 0.0026041667, %v769_v2  ;;  %1028 = vadd.xlane.f32.xlu1 %v1027_v63  ;;  %v8246_v38 = vsub.f32 %v7904_v15, %v809_v35  ;;  %v8249_v14 = vsub.f32 %v7906_v36, %v809_v35 }
 0x1dd   : > { %v943_v43 = vmul.f32 %v8196_v62, %v8196_v62  ;;  %v938_v41 = vmul.f32 %v8201_v32, %v8201_v32  ;;  %v1023_v27 = vadd.f32 %v1022_v8, %v934_v11  ;;  %v8256_v22 = vsub.f32 %v7908_v51, %v809_v35 }
 0x1de   : > { %v8259_v45 = vsub.f32 %v7913_v48, %v808_v53  ;;  %v8262_v34 = vsub.f32 %v7915_v0, %v808_v53  ;;  %v8265_v15 = vsub.f32 %v7917_v5, %v808_v53  ;;  %v1034_v36 = vadd.f32 %v942_v21, %v941_v13 }
 0x1df   : > { %v939_v63 = vmul.f32 %v8204_v59, %v8204_v59  ;;  %v777_v2 = vpop.xlane.xlu0 %776  ;;  %v947_v11 = vmul.f32 %v8216_v10, %v8216_v10  ;;  %1024 = vadd.xlane.f32.xlu0 %v1023_v27  ;;  %v940_v51 = vmul.f32 %v8213_v30, %v8213_v30  ;;  %v948_v0 = vmul.f32 %v8219_v58, %v8219_v58 }
 0x1e0   : > { %v810_v48 = vmul.f32 0.0026041667, %v777_v2  ;;  %v944_v5 = vmul.f32 %v8229_v12, %v8229_v12  ;;  %v1035_v53 = vadd.f32 %v1034_v36, %v943_v43  ;;  %v949_v13 = vmul.f32 %v8226_v37, %v8226_v37 }
 0x1e1   : > { %v1030_v35 = vadd.f32 %v939_v63, %v938_v41  ;;  %v945_v8 = vmul.f32 %v8232_v31, %v8232_v31  ;;  %v1042_v2 = vadd.f32 %v948_v0, %v947_v11  ;;  %v946_v58 = vmul.f32 %v8237_v6, %v8237_v6  ;;  %v10486_v63 = vld [vmem:[#allocation27_spill] sm:$0xff] }
 0x1e2   : > { %v8282_v21 = vsub.f32 %v7922_v19, %v810_v48  ;;  %v8285_v27 = vsub.f32 %v7924_v1, %v810_v48  ;;  %1036 = vadd.xlane.f32.xlu1 %v1035_v53  ;;  %v953_v41 = vmul.f32 %v8246_v38, %v8246_v38  ;;  %v954_v36 = vmul.f32 %v8249_v14, %v8249_v14 }
 0x1e3   : > { %v1031_v12 = vadd.f32 %v1030_v35, %v940_v51  ;;  %v1038_v43 = vadd.f32 %v945_v8, %v944_v5  ;;  %v8295_v19 = vsub.f32 %v10486_v63, %v7993_v46  ;;  %v1043_v31 = vadd.f32 %v1042_v2, %v949_v13 }
 0x1e4   : > { %10484 = vst [vmem:[#allocation40_spill] sm:$0xff] %v8282_v21  ;;  %10485 = vst [vmem:[#allocation41_spill] sm:$0xff] %v8285_v27  ;;  %v950_v1 = vmul.f32 %v8259_v45, %v8259_v45  ;;  %v951_v11 = vmul.f32 %v8262_v34, %v8262_v34  ;;  %v955_v0 = vmul.f32 %v8256_v22, %v8256_v22  ;;  %v1058_v35 = vsel %vm778_vm0, %v8041_v25, 0.0 }
 0x1e5   : > { %10487 = vst [vmem:[#allocation42_spill] sm:$0xff] %v8295_v19  ;;  %1032 = vadd.xlane.f32.xlu0 %v1031_v12  ;;  %v1039_v51 = vadd.f32 %v1038_v43, %v946_v58  ;;  %v1050_v5 = vadd.f32 %v954_v36, %v953_v41  ;;  %v1059_v46 = vsel %vm778_vm0, %v8045_v26, 0.0  ;;  %v956_v13 = vmul.f32 %v8282_v21, %v8282_v21  ;;  %v10490_v21 = vld [vmem:[#allocation54_spill] sm:$0xff] }
 0x1e6   : > { %v1046_v53 = vadd.f32 %v951_v11, %v950_v1  ;;  %v8310_v8 = vsub.f32 %v7926_v4, %v810_v48  ;;  %1044 = vadd.xlane.f32.xlu1 %v1043_v31  ;;  %v952_v58 = vmul.f32 %v8265_v15, %v8265_v15  ;;  %v957_v2 = vmul.f32 %v8285_v27, %v8285_v27 }
 0x1e7   : > { %v1051_v12 = vadd.f32 %v1050_v5, %v955_v0  ;;  %v961_v25 = vmul.f32 %v8295_v19, %v8295_v19  ;;  %v1060_v26 = vadd.f32 %v1059_v46, %v1058_v35  ;;  %v1217_v11 = vlaneseq }
 0x1e8   : > { %10488 = vst [vmem:[#allocation43_spill] sm:$0xff] %v8310_v8  ;;  %v1047_v43 = vadd.f32 %v1046_v53, %v952_v58  ;;  %v1054_v41 = vadd.f32 %v957_v2, %v956_v13  ;;  %v958_v4 = vmul.f32 %v8310_v8, %v8310_v8 }
 0x1e9   : > { %1040 = vadd.xlane.f32.xlu0 %v1039_v51  ;;  %v1061_v31 = vsel %vm778_vm0, %v961_v25, 0.0  ;;  %v1218_v35 = vshrl.u32 %v1217_v11, 7 }
 0x1ea   : > { %1052 = vadd.xlane.f32.xlu1 %v1051_v12  ;;  %v1062_v48 = vadd.f32 %v1061_v31, %v1060_v26  ;;  %v1055_v36 = vadd.f32 %v1054_v41, %v958_v4  ;;  %v1215_v4 = vld [vmem:[#allocation8] sm:$0x7] }
 0x1eb   : > { %v1219_v25 = vsub.s32 0, %v1218_v35  ;;  %v1227_v31 = vsub.s32 2, %v1218_v35 }
 0x1ed   : > { %1048 = vadd.xlane.f32.xlu0 %v1047_v43  ;;  %v1223_v43 = vsub.s32 1, %v1218_v35 }
 0x1ee   : > { %1063 = vadd.xlane.f32.xlu1 %v1062_v48 }
 0x1ef   : > { %v8323_v11 = vrot.slane %v1215_v4, %v1223_v43 }
 0x1f1   : > { %1056 = vadd.xlane.f32.xlu0 %v1055_v36  ;;  %v1307_v36 = vld [vmem:[#allocation9] sm:$0x7] }
 0x243   : > { %v969_v63 = vpop.xlane.xlu0 %968 }
 0x244   : > { %v1066_v1 = vmul.f32 0.0026041667, %v969_v63 }
 0x245   : > { %v965_v0 = vpop.xlane.xlu1 %964 }
 0x246   : > { %v1065_v5 = vmul.f32 0.0026041667, %v965_v0  ;;  %v1091_v51 = vadd.f32 1e-05, %v1066_v1  ;;  %v8321_v1 = vrot.slane %v1215_v4, %v1219_v25 }
 0x248   : > { %v1090_v53 = vadd.f32 1e-05, %v1065_v5  ;;  %6456 = vrsqrt.f32 %v1091_v51  ;;  %v8325_v51 = vrot.slane %v1215_v4, %v1227_v31 }
 0x249   : > { %v973_v46 = vpop.xlane.xlu1 %972 }
 0x24a   : > { %6458 = vrsqrt.f32 %v1090_v53  ;;  %v1067_v13 = vmul.f32 0.0026041667, %v973_v46  ;;  %v977_v12 = vpop.xlane.xlu0 %976  ;;  %v8327_v53 = vrot.slane %v1307_v36, %v1219_v25 }
 0x24b   : > { %v1068_v58 = vmul.f32 0.0026041667, %v977_v12 }
 0x24c   : > { %v1092_v2 = vadd.f32 1e-05, %v1067_v13 }
 0x24d   : > { %v1093_v26 = vadd.f32 1e-05, %v1068_v58  ;;  %v981_v41 = vpop.xlane.xlu1 %980 }
 0x24e   : > { %6460 = vrsqrt.f32 %v1092_v2  ;;  %v1069_v48 = vmul.f32 0.0026041667, %v981_v41  ;;  %v8332_v41 = vrot.slane %v1307_v36, %v1223_v43 }
 0x24f   : > { %6462 = vrsqrt.f32 %v1093_v26 }
 0x250   : > { %v1094_v63 = vadd.f32 1e-05, %v1069_v48  ;;  %v8334_v48 = vrot.slane %v1307_v36, %v1227_v31 }
 0x251   : > { %v989_v0 = vpop.xlane.xlu1 %988 }
 0x252   : > { %v6457_v5 = vpop.eup %6456  ;;  %6464 = vrsqrt.f32 %v1094_v63  ;;  %v1071_v46 = vmul.f32 0.0026041667, %v989_v0  ;;  %v10489_v63 = vld [vmem:[#allocation53_spill] sm:$0xff] }
 0x253   : > { %v985_v13 = vpop.xlane.xlu0 %984  ;;  %v1143_v35 = vmul.f32 %v6457_v5, %v7933_v40  ;;  %v1144_v12 = vmul.f32 %v6457_v5, %v7936_v9  ;;  %v1145_v58 = vmul.f32 %v6457_v5, %v7939_v24 }
 0x254   : > { %v1070_v2 = vmul.f32 0.0026041667, %v985_v13  ;;  %v6459_v26 = vpop.eup %6458  ;;  %v1096_v8 = vadd.f32 1e-05, %v1071_v46 }
 0x255   : > { %v1140_v4 = vmul.f32 %v6459_v26, %v7942_v47  ;;  %v1141_v25 = vmul.f32 %v6459_v26, %v7945_v23  ;;  %v1142_v0 = vmul.f32 %v6459_v26, %v10489_v63  ;;  %v1235_v27 = vmul.f32 %v8321_v1, %v1143_v35  ;;  %v997_v40 = vpop.xlane.xlu1 %996 }
 0x256   : > { %v1236_v9 = vmul.f32 %v8323_v11, %v1144_v12  ;;  %v1237_v24 = vmul.f32 %v8325_v51, %v1145_v58  ;;  %6466 = vrsqrt.f32 %v1096_v8  ;;  %v1095_v5 = vadd.f32 1e-05, %v1070_v2 }
 0x257   : > { %v1232_v43 = vmul.f32 %v8321_v1, %v1140_v4  ;;  %v1233_v31 = vmul.f32 %v8323_v11, %v1141_v25  ;;  %v1234_v36 = vmul.f32 %v8325_v51, %v1142_v0  ;;  %v1327_v47 = vadd.f32 %v8327_v53, %v1235_v27 }
 0x258   : > { %v6461_v23 = vpop.eup %6460  ;;  %v1328_v46 = vadd.f32 %v8332_v41, %v1236_v9  ;;  %v1329_v13 = vadd.f32 %v8334_v48, %v1237_v24  ;;  %6468 = vrsqrt.f32 %v1095_v5  ;;  %v8348_v35 = vmul.f32 0.0026041667, %v997_v40 }
 0x259   : > { %v8350_v12 = vpop.xlane.xlu0 %992  ;;  %v6463_v8 = vpop.eup %6462  ;;  %v1324_v58 = vadd.f32 %v8327_v53, %v1232_v43  ;;  %v1325_v2 = vadd.f32 %v8332_v41, %v1233_v31  ;;  %v1326_v26 = vadd.f32 %v8334_v48, %v1234_v36  ;;  %v1146_v4 = vmul.f32 %v6461_v23, %v7957_v16  ;;  %v10491_v36 = vld [vmem:[#allocation55_spill] sm:$0xff] }
 0x25a   : > { %v5843_v27 = vpack.c.bf16 %v1328_v46, %v1327_v47  ;;  %v5844_v25 = vpack.c.bf16 %v1329_v13, %v1329_v13  ;;  %v1147_v63 = vmul.f32 %v6461_v23, %v7960_v17  ;;  %v1148_v0 = vmul.f32 %v6461_v23, %v7963_v18  ;;  %v10492_v17 = vld [vmem:[#allocation56_spill] sm:$0xff] }
 0x25b   : > { %v8358_v9 = vpop.xlane.xlu1 %1004  ;;  %v5841_v40 = vpack.c.bf16 %v1325_v2, %v1324_v58  ;;  %v5842_v24 = vpack.c.bf16 %v1326_v26, %v1326_v26  ;;  %v1238_v5 = vmul.f32 %v8321_v1, %v1146_v4  ;;  %v1149_v43 = vmul.f32 %v6463_v8, %v10490_v21  ;;  %v10493_v21 = vld [vmem:[#allocation57_spill] sm:$0xff]  ;;  %v10494_v2 = vld [vmem:[#allocation58_spill] sm:$0xff] }
 0x25c   : > { %v6465_v19 = vpop.eup %6464  ;;  %1654 = vst [vmem:[#allocation2 + $0xc] sm:$0xff] %v5843_v27  ;;  %1655 = vst [vmem:[#allocation2 + $0x14] sm:$0xf] %v5844_v25  ;;  %v1239_v31 = vmul.f32 %v8323_v11, %v1147_v63  ;;  %v1240_v16 = vmul.f32 %v8325_v51, %v1148_v0  ;;  %v1150_v47 = vmul.f32 %v6463_v8, %v10491_v36 }
 0x25d   : > { %v1151_v46 = vmul.f32 %v6463_v8, %v10492_v17  ;;  %v8366_v18 = vpop.xlane.xlu0 %1000  ;;  %1652 = vst [vmem:[#allocation2] sm:$0xff] %v5841_v40  ;;  %1653 = vst [vmem:[#allocation2 + $0x8] sm:$0xf] %v5842_v24  ;;  %v1330_v23 = vadd.f32 %v8327_v53, %v1238_v5  ;;  %v1241_v13 = vmul.f32 %v8321_v1, %v1149_v43 }
 0x25e   : > { %v1152_v58 = vmul.f32 %v6465_v19, %v10493_v21  ;;  %v1153_v26 = vmul.f32 %v6465_v19, %v10494_v2  ;;  %v1331_v4 = vadd.f32 %v8332_v41, %v1239_v31  ;;  %v1332_v27 = vadd.f32 %v8334_v48, %v1240_v16 }
 0x25f   : > { %v1242_v25 = vmul.f32 %v8323_v11, %v1150_v47  ;;  %v1243_v8 = vmul.f32 %v8325_v51, %v1151_v46  ;;  %v1333_v0 = vadd.f32 %v8327_v53, %v1241_v13  ;;  %v1154_v40 = vmul.f32 %v6465_v19, %v7991_v39 }
 0x260   : > { %v1013_v63 = vpop.xlane.xlu1 %1012  ;;  %v1244_v24 = vmul.f32 %v8321_v1, %v1152_v58  ;;  %v1245_v5 = vmul.f32 %v8323_v11, %v1153_v26  ;;  %v6467_v43 = vpop.eup %6466  ;;  %v5845_v36 = vpack.c.bf16 %v1331_v4, %v1330_v23  ;;  %v5846_v17 = vpack.c.bf16 %v1332_v27, %v1332_v27 }
 0x261   : > { %v1334_v31 = vadd.f32 %v8332_v41, %v1242_v25  ;;  %v1335_v16 = vadd.f32 %v8334_v48, %v1243_v8  ;;  %v1246_v47 = vmul.f32 %v8325_v51, %v1154_v40  ;;  %v1158_v13 = vmul.f32 %v6467_v43, %v8018_v28 }
 0x262   : > { %v1336_v46 = vadd.f32 %v8327_v53, %v1244_v24  ;;  %v1337_v21 = vadd.f32 %v8332_v41, %v1245_v5  ;;  %v6469_v39 = vpop.eup %6468  ;;  %1656 = vst [vmem:[#allocation2 + $0x18] sm:$0xff] %v5845_v36  ;;  %1657 = vst [vmem:[#allocation2 + $0x20] sm:$0xf] %v5846_v17  ;;  %v1159_v23 = vmul.f32 %v6467_v43, %v8021_v60  ;;  %v1098_v36 = vadd.f32 1e-05, %v8348_v35 }
 0x263   : > { %v5847_v19 = vpack.c.bf16 %v1334_v31, %v1333_v0  ;;  %v5848_v58 = vpack.c.bf16 %v1335_v16, %v1335_v16  ;;  %v1160_v2 = vmul.f32 %v6467_v43, %v8024_v61  ;;  %v1009_v26 = vpop.xlane.xlu0 %1008  ;;  %v1338_v4 = vadd.f32 %v8334_v48, %v1246_v47 }
 0x264   : > { %v5849_v27 = vpack.c.bf16 %v1337_v21, %v1336_v46  ;;  %v1250_v25 = vmul.f32 %v8321_v1, %v1158_v13  ;;  %v1155_v8 = vmul.f32 %v6469_v39, %v8027_v52  ;;  %v1251_v28 = vmul.f32 %v8323_v11, %v1159_v23 }
 0x265   : > { %1658 = vst [vmem:[#allocation2 + $0x24] sm:$0xff] %v5847_v19  ;;  %1659 = vst [vmem:[#allocation2 + $0x2c] sm:$0xf] %v5848_v58  ;;  %v1252_v40 = vmul.f32 %v8325_v51, %v1160_v2  ;;  %v1156_v0 = vmul.f32 %v6469_v39, %v8030_v57  ;;  %v1157_v60 = vmul.f32 %v6469_v39, %v8033_v49  ;;  %v1021_v24 = vpop.xlane.xlu1 %1020  ;;  %6470 = vrsqrt.f32 %v1098_v36 }
 0x266   : > { %v5850_v61 = vpack.c.bf16 %v1338_v4, %v1338_v4  ;;  %1660 = vst [vmem:[#allocation2 + $0x30] sm:$0xff] %v5849_v27  ;;  %v1342_v5 = vadd.f32 %v8327_v53, %v1250_v25  ;;  %v1247_v43 = vmul.f32 %v8321_v1, %v1155_v8  ;;  %v1343_v52 = vadd.f32 %v8332_v41, %v1251_v28 }
 0x267   : > { %v1344_v17 = vadd.f32 %v8334_v48, %v1252_v40  ;;  %v1248_v31 = vmul.f32 %v8323_v11, %v1156_v0  ;;  %v1249_v16 = vmul.f32 %v8325_v51, %v1157_v60  ;;  %v1072_v47 = vmul.f32 0.0026041667, %v8350_v12 }
 0x268   : > { %v1017_v57 = vpop.xlane.xlu0 %1016  ;;  %1661 = vst [vmem:[#allocation2 + $0x38] sm:$0xf] %v5850_v61  ;;  %v1339_v49 = vadd.f32 %v8327_v53, %v1247_v43  ;;  %v1075_v46 = vmul.f32 0.0026041667, %v8358_v9  ;;  %v5853_v21 = vpack.c.bf16 %v1343_v52, %v1342_v5  ;;  %v1074_v2 = vmul.f32 0.0026041667, %v8366_v18 }
 0x269   : > { %v5854_v13 = vpack.c.bf16 %v1344_v17, %v1344_v17  ;;  %v1340_v35 = vadd.f32 %v8332_v41, %v1248_v31  ;;  %v1341_v39 = vadd.f32 %v8334_v48, %v1249_v16  ;;  %v1029_v19 = vpop.xlane.xlu1 %1028  ;;  %v1097_v58 = vadd.f32 1e-05, %v1072_v47 }
 0x26a   : > { %v1100_v23 = vadd.f32 1e-05, %v1075_v46  ;;  %1664 = vst [vmem:[#allocation2 + $0x48] sm:$0xff] %v5853_v21  ;;  %v1077_v25 = vmul.f32 0.0026041667, %v1013_v63 }
 0x26b   : > { %1665 = vst [vmem:[#allocation2 + $0x50] sm:$0xf] %v5854_v13  ;;  %v5851_v4 = vpack.c.bf16 %v1340_v35, %v1339_v49  ;;  %v5852_v27 = vpack.c.bf16 %v1341_v39, %v1341_v39  ;;  %v1076_v8 = vmul.f32 0.0026041667, %v1009_v26  ;;  %6472 = vrsqrt.f32 %v1097_v58 }
 0x26c   : > { %v1099_v12 = vadd.f32 1e-05, %v1074_v2  ;;  %v1079_v9 = vmul.f32 0.0026041667, %v1021_v24  ;;  %v1078_v28 = vmul.f32 0.0026041667, %v1017_v57  ;;  %v1025_v40 = vpop.xlane.xlu0 %1024  ;;  %6474 = vrsqrt.f32 %v1100_v23 }
 0x26d   : > { %1662 = vst [vmem:[#allocation2 + $0x3c] sm:$0xff] %v5851_v4  ;;  %1663 = vst [vmem:[#allocation2 + $0x44] sm:$0xf] %v5852_v27  ;;  %v1102_v0 = vadd.f32 1e-05, %v1077_v25 }
 0x26e   : > { %v1101_v60 = vadd.f32 1e-05, %v1076_v8  ;;  %v1081_v61 = vmul.f32 0.0026041667, %v1029_v19  ;;  %6476 = vrsqrt.f32 %v1099_v12  ;;  %v1104_v5 = vadd.f32 1e-05, %v1079_v9 }
 0x26f   : > { %v1103_v18 = vadd.f32 1e-05, %v1078_v28  ;;  %v1080_v43 = vmul.f32 0.0026041667, %v1025_v40  ;;  %6478 = vrsqrt.f32 %v1102_v0  ;;  %v1037_v52 = vpop.xlane.xlu1 %1036  ;;  %v6471_v17 = vpop.eup %6470  ;;  %v10495_v9 = vld [vmem:[#allocation61_spill] sm:$0xff]  ;;  %v10496_v40 = vld [vmem:[#allocation62_spill] sm:$0xff] }
 0x270   : > { %v1106_v36 = vadd.f32 1e-05, %v1081_v61  ;;  %6480 = vrsqrt.f32 %v1101_v60  ;;  %v1083_v26 = vmul.f32 0.0026041667, %v1037_v52  ;;  %v1164_v57 = vmul.f32 %v6471_v17, %v8048_v29  ;;  %v10497_v60 = vld [vmem:[#allocation63_spill] sm:$0xff]  ;;  %v10498_v52 = vld [vmem:[#allocation64_spill] sm:$0xff] }
 0x271   : > { %v1105_v63 = vadd.f32 1e-05, %v1080_v43  ;;  %6482 = vrsqrt.f32 %v1104_v5  ;;  %v1165_v49 = vmul.f32 %v6471_v17, %v8051_v33  ;;  %v1166_v47 = vmul.f32 %v6471_v17, %v8056_v54 }
 0x272   : > { %v1033_v24 = vpop.xlane.xlu0 %1032  ;;  %6484 = vrsqrt.f32 %v1103_v18  ;;  %v1108_v31 = vadd.f32 1e-05, %v1083_v26  ;;  %v1256_v35 = vmul.f32 %v8321_v1, %v1164_v57 }
 0x273   : > { %v1082_v16 = vmul.f32 0.0026041667, %v1033_v24  ;;  %6486 = vrsqrt.f32 %v1106_v36  ;;  %v1045_v46 = vpop.xlane.xlu1 %1044  ;;  %v1257_v39 = vmul.f32 %v8323_v11, %v1165_v49  ;;  %v1258_v19 = vmul.f32 %v8325_v51, %v1166_v47  ;;  %v10499_v49 = vld [vmem:[#allocation65_spill] sm:$0xff] }
 0x274   : > { %6488 = vrsqrt.f32 %v1105_v63  ;;  %v1085_v13 = vmul.f32 0.0026041667, %v1045_v46  ;;  %v1348_v2 = vadd.f32 %v8327_v53, %v1256_v35  ;;  %v10500_v46 = vld [vmem:[#allocation66_spill] sm:$0xff] }
 0x275   : > { %v1107_v21 = vadd.f32 1e-05, %v1082_v16  ;;  %6490 = vrsqrt.f32 %v1108_v31  ;;  %v6473_v23 = vpop.eup %6472  ;;  %v1349_v4 = vadd.f32 %v8332_v41, %v1257_v39  ;;  %v1350_v27 = vadd.f32 %v8334_v48, %v1258_v19 }
 0x276   : > { %v1041_v58 = vpop.xlane.xlu0 %1040  ;;  %v8414_v29 = vadd.f32 1e-05, %v1085_v13  ;;  %v6475_v54 = vpop.eup %6474  ;;  %v1161_v25 = vmul.f32 %v6473_v23, %v8063_v42  ;;  %v1162_v12 = vmul.f32 %v6473_v23, %v8066_v44  ;;  %v1163_v28 = vmul.f32 %v6473_v23, %v10495_v9 }
 0x277   : > { %6492 = vrsqrt.f32 %v1107_v21  ;;  %v8416_v33 = vmul.f32 0.0026041667, %v1041_v58  ;;  %v1170_v0 = vmul.f32 %v6475_v54, %v10496_v40  ;;  %v1171_v61 = vmul.f32 %v6475_v54, %v10497_v60 }
 0x278   : > { %v6477_v8 = vpop.eup %6476  ;;  %v5857_v18 = vpack.c.bf16 %v1349_v4, %v1348_v2  ;;  %v5858_v43 = vpack.c.bf16 %v1350_v27, %v1350_v27  ;;  %v1253_v36 = vmul.f32 %v8321_v1, %v1161_v25  ;;  %v1172_v63 = vmul.f32 %v6475_v54, %v10498_v52  ;;  %v10501_v2 = vld [vmem:[#allocation67_spill] sm:$0xff] }
 0x279   : > { %v6479_v5 = vpop.eup %6478  ;;  %v1254_v24 = vmul.f32 %v8323_v11, %v1162_v12  ;;  %v1255_v42 = vmul.f32 %v8325_v51, %v1163_v28  ;;  %v1262_v44 = vmul.f32 %v8321_v1, %v1170_v0  ;;  %v1263_v17 = vmul.f32 %v8323_v11, %v1171_v61  ;;  %v10502_v0 = vld [vmem:[#allocation68_spill] sm:$0xff] }
 0x27a   : > { %v6481_v26 = vpop.eup %6480  ;;  %1668 = vst [vmem:[#allocation2 + $0x60] sm:$0xff] %v5857_v18  ;;  %1669 = vst [vmem:[#allocation2 + $0x68] sm:$0xf] %v5858_v43  ;;  %v1345_v16 = vadd.f32 %v8327_v53, %v1253_v36  ;;  %v1264_v57 = vmul.f32 %v8325_v51, %v1172_v63  ;;  %v1167_v47 = vmul.f32 %v6477_v8, %v10499_v49  ;;  %v10503_v63 = vld [vmem:[#allocation69_spill] sm:$0xff]  ;;  %6494 = vrsqrt.f32 %v8414_v29 }
 0x27b   : > { %v6483_v31 = vpop.eup %6482  ;;  %v1168_v21 = vmul.f32 %v6477_v8, %v10500_v46  ;;  %v1346_v35 = vadd.f32 %v8332_v41, %v1254_v24  ;;  %v1347_v39 = vadd.f32 %v8334_v48, %v1255_v42  ;;  %v1354_v19 = vadd.f32 %v8327_v53, %v1262_v44  ;;  %v10504_v42 = vld [vmem:[#allocation70_spill] sm:$0xff]  ;;  %v10506_v46 = vld [vmem:[#allocation72_spill] sm:$0xff] }
 0x27c   : > { %v8436_v13 = vpop.eup %6484  ;;  %v1355_v58 = vadd.f32 %v8332_v41, %v1263_v17  ;;  %v1356_v54 = vadd.f32 %v8334_v48, %v1264_v57  ;;  %v1169_v4 = vmul.f32 %v6477_v8, %v10501_v2  ;;  %v1259_v27 = vmul.f32 %v8321_v1, %v1167_v47 }
 0x27d   : > { %v8442_v23 = vpop.eup %6486  ;;  %v1260_v25 = vmul.f32 %v8323_v11, %v1168_v21  ;;  %v5855_v9 = vpack.c.bf16 %v1346_v35, %v1345_v16  ;;  %v5856_v28 = vpack.c.bf16 %v1347_v39, %v1347_v39  ;;  %v1176_v60 = vmul.f32 %v6479_v5, %v10502_v0  ;;  %v10505_v16 = vld [vmem:[#allocation71_spill] sm:$0xff]  ;;  %v10507_v35 = vld [vmem:[#allocation28_spill] sm:$0xff]  ;;  %v10509_v0 = vld [vmem:[#allocation30_spill] sm:$0xff] }
 0x27e   : > { %v8448_v12 = vpop.eup %6488  ;;  %v5861_v40 = vpack.c.bf16 %v1355_v58, %v1354_v19  ;;  %v5862_v18 = vpack.c.bf16 %v1356_v54, %v1356_v54  ;;  %v1261_v43 = vmul.f32 %v8325_v51, %v1169_v4  ;;  %v1351_v36 = vadd.f32 %v8327_v53, %v1259_v27 }
 0x27f   : > { %v8451_v61 = vpop.eup %6490  ;;  %v1352_v8 = vadd.f32 %v8332_v41, %v1260_v25  ;;  %1666 = vst [vmem:[#allocation2 + $0x54] sm:$0xff] %v5855_v9  ;;  %1667 = vst [vmem:[#allocation2 + $0x5c] sm:$0xf] %v5856_v28  ;;  %v1177_v24 = vmul.f32 %v6479_v5, %v10503_v63  ;;  %v1178_v44 = vmul.f32 %v6479_v5, %v10504_v42  ;;  %v10508_v25 = vld [vmem:[#allocation29_spill] sm:$0xff] }
 0x280   : > { %1672 = vst [vmem:[#allocation2 + $0x78] sm:$0xff] %v5861_v40  ;;  %v1268_v17 = vmul.f32 %v8321_v1, %v1176_v60  ;;  %v1173_v57 = vmul.f32 %v6481_v26, %v10505_v16  ;;  %1673 = vst [vmem:[#allocation2 + $0x80] sm:$0xf] %v5862_v18  ;;  %v1353_v49 = vadd.f32 %v8334_v48, %v1261_v43 }
 0x281   : > { %v8456_v52 = vpop.eup %6492  ;;  %v5859_v47 = vpack.c.bf16 %v1352_v8, %v1351_v36  ;;  %v1174_v21 = vmul.f32 %v6481_v26, %v10506_v46  ;;  %v1175_v39 = vmul.f32 %v6481_v26, %v10507_v35  ;;  %v1269_v19 = vmul.f32 %v8323_v11, %v1177_v24  ;;  %v10510_v36 = vld [vmem:[#allocation31_spill] sm:$0xff] }
 0x282   : > { %v1270_v58 = vmul.f32 %v8325_v51, %v1178_v44  ;;  %v1360_v54 = vadd.f32 %v8327_v53, %v1268_v17  ;;  %v1265_v5 = vmul.f32 %v8321_v1, %v1173_v57  ;;  %v5860_v2 = vpack.c.bf16 %v1353_v49, %v1353_v49  ;;  %v10511_v17 = vld [vmem:[#allocation32_spill] sm:$0xff] }
 0x283   : > { %1670 = vst [vmem:[#allocation2 + $0x6c] sm:$0xff] %v5859_v47  ;;  %v1266_v4 = vmul.f32 %v8323_v11, %v1174_v21  ;;  %v1267_v27 = vmul.f32 %v8325_v51, %v1175_v39  ;;  %v1182_v9 = vmul.f32 %v6483_v31, %v10508_v25  ;;  %v1361_v28 = vadd.f32 %v8332_v41, %v1269_v19 }
 0x284   : > { %v1362_v26 = vadd.f32 %v8334_v48, %v1270_v58  ;;  %v1357_v40 = vadd.f32 %v8327_v53, %v1265_v5  ;;  %v1183_v60 = vmul.f32 %v6483_v31, %v10509_v0  ;;  %1671 = vst [vmem:[#allocation2 + $0x74] sm:$0xf] %v5860_v2  ;;  %v1184_v8 = vmul.f32 %v6483_v31, %v10510_v36  ;;  %v10512_v31 = vld [vmem:[#allocation33_spill] sm:$0xff]  ;;  %v10514_v2 = vld [vmem:[#allocation35_spill] sm:$0xff] }
 0x285   : > { %v1358_v18 = vadd.f32 %v8332_v41, %v1266_v4  ;;  %v1359_v43 = vadd.f32 %v8334_v48, %v1267_v27  ;;  %v1274_v63 = vmul.f32 %v8321_v1, %v1182_v9  ;;  %v5865_v24 = vpack.c.bf16 %v1361_v28, %v1360_v54  ;;  %v10513_v54 = vld [vmem:[#allocation34_spill] sm:$0xff] }
 0x286   : > { %v5866_v42 = vpack.c.bf16 %v1362_v26, %v1362_v26  ;;  %v1275_v44 = vmul.f32 %v8323_v11, %v1183_v60  ;;  %v1179_v16 = vmul.f32 %v8436_v13, %v10511_v17  ;;  %v1276_v47 = vmul.f32 %v8325_v51, %v1184_v8 }
 0x287   : > { %v5863_v57 = vpack.c.bf16 %v1358_v18, %v1357_v40  ;;  %v5864_v49 = vpack.c.bf16 %v1359_v43, %v1359_v43  ;;  %v1366_v46 = vadd.f32 %v8327_v53, %v1274_v63  ;;  %1676 = vst [vmem:[#allocation2 + $0x90] sm:$0xff] %v5865_v24  ;;  %v1180_v35 = vmul.f32 %v8436_v13, %v10512_v31 }
 0x288   : > { %1677 = vst [vmem:[#allocation2 + $0x98] sm:$0xf] %v5866_v42  ;;  %v1367_v21 = vadd.f32 %v8332_v41, %v1275_v44  ;;  %v1181_v39 = vmul.f32 %v8436_v13, %v8157_v3  ;;  %v1271_v19 = vmul.f32 %v8321_v1, %v1179_v16  ;;  %v1368_v58 = vadd.f32 %v8334_v48, %v1276_v47 }
 0x289   : > { %1674 = vst [vmem:[#allocation2 + $0x84] sm:$0xff] %v5863_v57  ;;  %1675 = vst [vmem:[#allocation2 + $0x8c] sm:$0xf] %v5864_v49  ;;  %v1188_v5 = vmul.f32 %v8442_v23, %v10513_v54  ;;  %v1189_v4 = vmul.f32 %v8442_v23, %v10514_v2  ;;  %v1190_v27 = vmul.f32 %v8442_v23, %v8166_v20  ;;  %v10515_v20 = vld [vmem:[#allocation36_spill] sm:$0xff]  ;;  %v1053_v57 = vpop.xlane.xlu1 %1052 }
 0x28a   : > { %v5869_v25 = vpack.c.bf16 %v1367_v21, %v1366_v46  ;;  %v1272_v9 = vmul.f32 %v8323_v11, %v1180_v35  ;;  %v1273_v3 = vmul.f32 %v8325_v51, %v1181_v39  ;;  %v1363_v13 = vadd.f32 %v8327_v53, %v1271_v19  ;;  %v1049_v21 = vpop.xlane.xlu0 %1048 }
 0x28b   : > { %v5870_v28 = vpack.c.bf16 %v1368_v58, %v1368_v58  ;;  %v1280_v26 = vmul.f32 %v8321_v1, %v1188_v5  ;;  %v1281_v40 = vmul.f32 %v8323_v11, %v1189_v4  ;;  %v1282_v0 = vmul.f32 %v8325_v51, %v1190_v27 }
 0x28c   : > { %1680 = vst [vmem:[#allocation2 + $0xa8] sm:$0xff] %v5869_v25  ;;  %v1364_v60 = vadd.f32 %v8332_v41, %v1272_v9  ;;  %v1365_v18 = vadd.f32 %v8334_v48, %v1273_v3  ;;  %v1185_v23 = vmul.f32 %v8448_v12, %v10515_v20  ;;  %v1186_v43 = vmul.f32 %v8448_v12, %v8176_v56 }
 0x28d   : > { %1681 = vst [vmem:[#allocation2 + $0xb0] sm:$0xf] %v5870_v28  ;;  %v1372_v36 = vadd.f32 %v8327_v53, %v1280_v26  ;;  %v1373_v8 = vadd.f32 %v8332_v41, %v1281_v40  ;;  %v1374_v63 = vadd.f32 %v8334_v48, %v1282_v0  ;;  %v1187_v24 = vmul.f32 %v8448_v12, %v8181_v50  ;;  %v1064_v9 = vpop.xlane.xlu1 %1063 }
 0x28e   : > { %v5867_v42 = vpack.c.bf16 %v1364_v60, %v1363_v13  ;;  %v5868_v44 = vpack.c.bf16 %v1365_v18, %v1365_v18  ;;  %v1277_v17 = vmul.f32 %v8321_v1, %v1185_v23  ;;  %v1278_v16 = vmul.f32 %v8323_v11, %v1186_v43  ;;  %v1057_v28 = vpop.xlane.xlu0 %1056 }
 0x28f   : > { %v5873_v49 = vpack.c.bf16 %v1373_v8, %v1372_v36  ;;  %v5874_v47 = vpack.c.bf16 %v1374_v63, %v1374_v63  ;;  %v1279_v56 = vmul.f32 %v8325_v51, %v1187_v24  ;;  %v1194_v46 = vmul.f32 %v8451_v61, %v8188_v55  ;;  %v6495_v63 = vpop.eup %6494 }
 0x290   : > { %1678 = vst [vmem:[#allocation2 + $0x9c] sm:$0xff] %v5867_v42  ;;  %1679 = vst [vmem:[#allocation2 + $0xa4] sm:$0xf] %v5868_v44  ;;  %v1369_v31 = vadd.f32 %v8327_v53, %v1277_v17  ;;  %v1370_v50 = vadd.f32 %v8332_v41, %v1278_v16  ;;  %v1195_v12 = vmul.f32 %v8451_v61, %v8191_v7  ;;  %v1109_v3 = vadd.f32 1e-05, %v8416_v33  ;;  %v10516_v42 = vld [vmem:[#allocation37_spill] sm:$0xff] }
 0x291   : > { %v1196_v35 = vmul.f32 %v8451_v61, %v8196_v62  ;;  %1684 = vst [vmem:[#allocation2 + $0xc0] sm:$0xff] %v5873_v49  ;;  %1685 = vst [vmem:[#allocation2 + $0xc8] sm:$0xf] %v5874_v47  ;;  %v1371_v39 = vadd.f32 %v8334_v48, %v1279_v56  ;;  %v1286_v19 = vmul.f32 %v8321_v1, %v1194_v46  ;;  %v1087_v13 = vmul.f32 0.0026041667, %v1053_v57  ;;  %v10517_v56 = vld [vmem:[#allocation38_spill] sm:$0xff] }
 0x292   : > { %v1191_v55 = vmul.f32 %v8456_v52, %v8201_v32  ;;  %v1192_v58 = vmul.f32 %v8456_v52, %v8204_v59  ;;  %v5871_v54 = vpack.c.bf16 %v1370_v50, %v1369_v31  ;;  %v1287_v5 = vmul.f32 %v8323_v11, %v1195_v12 }
 0x293   : > { %v1288_v7 = vmul.f32 %v8325_v51, %v1196_v35  ;;  %v1193_v62 = vmul.f32 %v8456_v52, %v8213_v30  ;;  %v5872_v61 = vpack.c.bf16 %v1371_v39, %v1371_v39  ;;  %v1378_v2 = vadd.f32 %v8327_v53, %v1286_v19 }
 0x294   : > { %v1283_v4 = vmul.f32 %v8321_v1, %v1191_v55  ;;  %v1284_v27 = vmul.f32 %v8323_v11, %v1192_v58  ;;  %1682 = vst [vmem:[#allocation2 + $0xb4] sm:$0xff] %v5871_v54  ;;  %v1379_v32 = vadd.f32 %v8332_v41, %v1287_v5  ;;  %v1086_v60 = vmul.f32 0.0026041667, %v1049_v21  ;;  %v10518_v21 = vld [vmem:[#allocation39_spill] sm:$0xff] }
 0x295   : > { %v1380_v59 = vadd.f32 %v8334_v48, %v1288_v7  ;;  %v1285_v25 = vmul.f32 %v8325_v51, %v1193_v62  ;;  %1683 = vst [vmem:[#allocation2 + $0xbc] sm:$0xf] %v5872_v61  ;;  %6496 = vrsqrt.f32 %v1109_v3  ;;  %v1112_v20 = vadd.f32 1e-05, %v1087_v13 }
 0x296   : > { %v1375_v30 = vadd.f32 %v8327_v53, %v1283_v4  ;;  %v1376_v52 = vadd.f32 %v8332_v41, %v1284_v27  ;;  %v5877_v26 = vpack.c.bf16 %v1379_v32, %v1378_v2  ;;  %v1089_v23 = vmul.f32 0.0026041667, %v1064_v9 }
 0x297   : > { %v5878_v40 = vpack.c.bf16 %v1380_v59, %v1380_v59  ;;  %v1377_v0 = vadd.f32 %v8334_v48, %v1285_v25  ;;  %v1111_v43 = vadd.f32 1e-05, %v1086_v60  ;;  %v1088_v36 = vmul.f32 0.0026041667, %v1057_v28  ;;  %v10520_v60 = vld [vmem:[#allocation60_spill] sm:$0xff] }
 0x298   : > { %v5875_v18 = vpack.c.bf16 %v1376_v52, %v1375_v30  ;;  %1688 = vst [vmem:[#allocation2 + $0xd8] sm:$0xff] %v5877_v26  ;;  %6498 = vrsqrt.f32 %v1112_v20  ;;  %v1114_v8 = vadd.f32 1e-05, %v1089_v23  ;;  %v1200_v24 = vmul.f32 %v6495_v63, %v8216_v10  ;;  %v10521_v20 = vld [vmem:[#allocation42_spill] sm:$0xff] }
 0x299   : > { %1689 = vst [vmem:[#allocation2 + $0xe0] sm:$0xf] %v5878_v40  ;;  %v5876_v29 = vpack.c.bf16 %v1377_v0, %v1377_v0  ;;  %6500 = vrsqrt.f32 %v1111_v43  ;;  %v1113_v33 = vadd.f32 1e-05, %v1088_v36  ;;  %v1201_v44 = vmul.f32 %v6495_v63, %v10516_v42 }
 0x29a   : > { %1686 = vst [vmem:[#allocation2 + $0xcc] sm:$0xff] %v5875_v18  ;;  %6502 = vrsqrt.f32 %v1114_v8  ;;  %v1202_v17 = vmul.f32 %v6495_v63, %v8226_v37  ;;  %v1292_v57 = vmul.f32 %v8321_v1, %v1200_v24 }
 0x29b   : > { %1687 = vst [vmem:[#allocation2 + $0xd4] sm:$0xf] %v5876_v29  ;;  %6504 = vrsqrt.f32 %v1113_v33  ;;  %v1293_v49 = vmul.f32 %v8323_v11, %v1201_v44  ;;  %v10522_v44 = vld [vmem:[#allocation40_spill] sm:$0xff] }
 0x29c   : > { %v1294_v47 = vmul.f32 %v8325_v51, %v1202_v17  ;;  %v1384_v10 = vadd.f32 %v8327_v53, %v1292_v57 }
 0x29d   : > { %v1385_v35 = vadd.f32 %v8332_v41, %v1293_v49  ;;  %v10524_v49 = vld [vmem:[#allocation43_spill] sm:$0xff] }
 0x29e   : > { %v1386_v37 = vadd.f32 %v8334_v48, %v1294_v47 }
 0x29f   : > { %v6497_v16 = vpop.eup %6496  ;;  %v5881_v5 = vpack.c.bf16 %v1385_v35, %v1384_v10 }
 0x2a0   : > { %v1197_v46 = vmul.f32 %v6497_v16, %v10517_v56  ;;  %v1198_v31 = vmul.f32 %v6497_v16, %v10518_v21  ;;  %v1199_v50 = vmul.f32 %v6497_v16, %v8237_v6  ;;  %v5882_v7 = vpack.c.bf16 %v1386_v37, %v1386_v37  ;;  %v10523_v16 = vld [vmem:[#allocation41_spill] sm:$0xff] }
 0x2a1   : > { %1692 = vst [vmem:[#allocation2 + $0xf0] sm:$0xff] %v5881_v5 }
 0x2a2   : > { %v6499_v12 = vpop.eup %6498  ;;  %v1289_v19 = vmul.f32 %v8321_v1, %v1197_v46  ;;  %v1290_v55 = vmul.f32 %v8323_v11, %v1198_v31  ;;  %v1291_v58 = vmul.f32 %v8325_v51, %v1199_v50  ;;  %1693 = vst [vmem:[#allocation2 + $0xf8] sm:$0xf] %v5882_v7 }
 0x2a3   : > { %v6501_v39 = vpop.eup %6500  ;;  %v1206_v54 = vmul.f32 %v6499_v12, %v8246_v38  ;;  %v1207_v6 = vmul.f32 %v6499_v12, %v8249_v14  ;;  %v1208_v62 = vmul.f32 %v6499_v12, %v8256_v22 }
 0x2a4   : > { %v1381_v61 = vadd.f32 %v8327_v53, %v1289_v19  ;;  %v1382_v2 = vadd.f32 %v8332_v41, %v1290_v55  ;;  %v1383_v4 = vadd.f32 %v8334_v48, %v1291_v58  ;;  %v6503_v32 = vpop.eup %6502  ;;  %v1203_v25 = vmul.f32 %v6501_v39, %v8259_v45 }
 0x2a5   : > { %v1298_v27 = vmul.f32 %v8321_v1, %v1206_v54  ;;  %v1299_v59 = vmul.f32 %v8323_v11, %v1207_v6  ;;  %v1300_v38 = vmul.f32 %v8325_v51, %v1208_v62  ;;  %v1204_v14 = vmul.f32 %v6501_v39, %v8262_v34  ;;  %v6505_v40 = vpop.eup %6504  ;;  %v10519_v34 = vld [vmem:[#allocation59_spill] sm:$0xff] }
 0x2a6   : > { %v5879_v22 = vpack.c.bf16 %v1382_v2, %v1381_v61  ;;  %v5880_v9 = vpack.c.bf16 %v1383_v4, %v1383_v4  ;;  %v1205_v52 = vmul.f32 %v6501_v39, %v8265_v15  ;;  %v1295_v28 = vmul.f32 %v8321_v1, %v1203_v25 }
 0x2a7   : > { %v1390_v30 = vadd.f32 %v8327_v53, %v1298_v27  ;;  %v1391_v3 = vadd.f32 %v8332_v41, %v1299_v59  ;;  %v1392_v13 = vadd.f32 %v8334_v48, %v1300_v38  ;;  %v1296_v26 = vmul.f32 %v8323_v11, %v1204_v14 }
 0x2a8   : > { %1690 = vst [vmem:[#allocation2 + $0xe4] sm:$0xff] %v5879_v22  ;;  %1691 = vst [vmem:[#allocation2 + $0xec] sm:$0xf] %v5880_v9  ;;  %v1297_v45 = vmul.f32 %v8325_v51, %v1205_v52  ;;  %v1212_v0 = vmul.f32 %v6503_v32, %v10519_v34  ;;  %v1213_v18 = vmul.f32 %v6503_v32, %v10520_v60 }
 0x2a9   : > { %v1214_v23 = vmul.f32 %v6503_v32, %v10521_v20  ;;  %v5885_v15 = vpack.c.bf16 %v1391_v3, %v1390_v30  ;;  %v5886_v29 = vpack.c.bf16 %v1392_v13, %v1392_v13  ;;  %v1387_v43 = vadd.f32 %v8327_v53, %v1295_v28 }
 0x2aa   : > { %v1388_v36 = vadd.f32 %v8332_v41, %v1296_v26  ;;  %v1389_v8 = vadd.f32 %v8334_v48, %v1297_v45  ;;  %v1304_v33 = vmul.f32 %v8321_v1, %v1212_v0  ;;  %v1305_v63 = vmul.f32 %v8323_v11, %v1213_v18 }
 0x2ab   : > { %v1306_v24 = vmul.f32 %v8325_v51, %v1214_v23  ;;  %1696 = vst [vmem:[#allocation2 + $0x108] sm:$0xff] %v5885_v15  ;;  %1697 = vst [vmem:[#allocation2 + $0x110] sm:$0xf] %v5886_v29  ;;  %v1209_v17 = vmul.f32 %v6505_v40, %v10522_v44  ;;  %v1210_v57 = vmul.f32 %v6505_v40, %v10523_v16 }
 0x2ac   : > { %v5883_v42 = vpack.c.bf16 %v1388_v36, %v1387_v43  ;;  %v1211_v47 = vmul.f32 %v6505_v40, %v10524_v49  ;;  %v5884_v56 = vpack.c.bf16 %v1389_v8, %v1389_v8  ;;  %v1396_v46 = vadd.f32 %v8327_v53, %v1304_v33 }
 0x2ad   : > { %v1397_v21 = vadd.f32 %v8332_v41, %v1305_v63  ;;  %v1398_v31 = vadd.f32 %v8334_v48, %v1306_v24  ;;  %v1301_v50 = vmul.f32 %v8321_v1, %v1209_v17  ;;  %v1302_v12 = vmul.f32 %v8323_v11, %v1210_v57 }
 0x2ae   : > { %1694 = vst [vmem:[#allocation2 + $0xfc] sm:$0xff] %v5883_v42  ;;  %v1303_v10 = vmul.f32 %v8325_v51, %v1211_v47  ;;  %1695 = vst [vmem:[#allocation2 + $0x104] sm:$0xf] %v5884_v56 }
 0x2af   : > { %v5889_v35 = vpack.c.bf16 %v1397_v21, %v1396_v46  ;;  %v5890_v37 = vpack.c.bf16 %v1398_v31, %v1398_v31  ;;  %v1393_v39 = vadd.f32 %v8327_v53, %v1301_v50  ;;  %v1394_v19 = vadd.f32 %v8332_v41, %v1302_v12 }
 0x2b0   : > { %v1395_v55 = vadd.f32 %v8334_v48, %v1303_v10 }
 0x2b1   : > { %1700 = vst [vmem:[#allocation2 + $0x120] sm:$0x33] %v5889_v35  ;;  %1701 = vst [vmem:[#allocation2 + $0x128] sm:$0x3] %v5890_v37  ;;  %v5887_v58 = vpack.c.bf16 %v1394_v19, %v1393_v39 }
 0x2b2   : > { %v5888_v54 = vpack.c.bf16 %v1395_v55, %v1395_v55 }
 0x2b3   : > { %1698 = vst [vmem:[#allocation2 + $0x114] sm:$0xff] %v5887_v58 }
 0x2b4   : > { %1699 = vst [vmem:[#allocation2 + $0x11c] sm:$0xf] %v5888_v54 }
 0x2b5 PF: > { %v6506_v1 = vld [vmem:[%s7687_s0 + $0x4] ss:$16 sps:$4 sm:$0xff]   ;;  %v6508_v11 = vld [vmem:[%s7687_s0 + $0xc] ss:$16 sps:$4 sm:$0xff]   ;;  %v6510_v51 = vld [vmem:[%s7687_s0] ss:$16 sps:$4 sm:$0xff]  }
 0x2b6   : > { %2553 = vmatprep.subr.bf16.mxu0 %v6506_v1  ;;  %v6511_v53 = vld [vmem:[%s7687_s0 + $0x8] ss:$16 sps:$4 sm:$0xff]   ;;  %2875 = vmatprep.subr.bf16.mxu1 %v6508_v11  ;;  %v6512_v41 = vld [vmem:[%s7687_s0 + $0x24] ss:$16 sps:$4 sm:$0xff]   ;;  %v6514_v48 = vld [vmem:[%s7687_s0 + $0x2c] ss:$16 sps:$4 sm:$0xff]  }
 0x2b7   : > { %2554 = vmatpush1.bf16.msra.mxu0 %v6510_v51  ;;  %2876 = vmatpush1.bf16.msra.mxu1 %v6511_v53  ;;  %v6516_v5 = vld [vmem:[%s7687_s0 + $0x20] ss:$16 sps:$4 sm:$0xff]   ;;  %v6517_v7 = vld [vmem:[%s7687_s0 + $0x28] ss:$16 sps:$4 sm:$0xff]   ;;  %v6518_v6 = vld [vmem:[%s7687_s0 + $0x44] ss:$16 sps:$4 sm:$0xff]  }
 0x2b8   : > { %2555 = vmatprep.subr.bf16.mxu0 %v6512_v41  ;;  %2877 = vmatprep.subr.bf16.mxu1 %v6514_v48  ;;  %v6520_v62 = vld [vmem:[%s7687_s0 + $0x4c] ss:$16 sps:$4 sm:$0xff]   ;;  %v6522_v61 = vld [vmem:[%s7687_s0 + $0x40] ss:$16 sps:$4 sm:$0xff]   ;;  %v6523_v2 = vld [vmem:[%s7687_s0 + $0x48] ss:$16 sps:$4 sm:$0xff]  }
 0x2b9   : > { %v6524_v4 = vld [vmem:[%s7687_s0 + $0x64] ss:$16 sps:$4 sm:$0xff]   ;;  %v6526_v27 = vld [vmem:[%s7687_s0 + $0x6c] ss:$16 sps:$4 sm:$0xff]   ;;  %v6528_v32 = vld [vmem:[%s7687_s0 + $0x60] ss:$16 sps:$4 sm:$0xff]  }
 0x2ba   : > { %v6529_v59 = vld [vmem:[%s7687_s0 + $0x68] ss:$16 sps:$4 sm:$0xff]   ;;  %v6530_v38 = vld [vmem:[%s7687_s0 + $0x84] ss:$16 sps:$4 sm:$0xff]   ;;  %v6532_v25 = vld [vmem:[%s7687_s0 + $0x8c] ss:$16 sps:$4 sm:$0xff]  }
 0x2bb   : > { %2556 = vmatpush1.bf16.msra.mxu0 %v6516_v5  ;;  %2878 = vmatpush1.bf16.msra.mxu1 %v6517_v7  ;;  %v6534_v14 = vld [vmem:[%s7687_s0 + $0x80] ss:$16 sps:$4 sm:$0xff]   ;;  %v6535_v22 = vld [vmem:[%s7687_s0 + $0x88] ss:$16 sps:$4 sm:$0xff]   ;;  %v6536_v9 = vld [vmem:[%s7687_s0 + $0xa4] ss:$16 sps:$4 sm:$0xff]  }
 0x2bc   : > { %2557 = vmatprep.subr.bf16.mxu0 %v6518_v6  ;;  %2879 = vmatprep.subr.bf16.mxu1 %v6520_v62  ;;  %v6538_v30 = vld [vmem:[%s7687_s0 + $0xac] ss:$16 sps:$4 sm:$0xff]   ;;  %v6540_v52 = vld [vmem:[%s7687_s0 + $0xa0] ss:$16 sps:$4 sm:$0xff]   ;;  %v6541_v3 = vld [vmem:[%s7687_s0 + $0xa8] ss:$16 sps:$4 sm:$0xff]  }
 0x2bd   : > { %v6542_v13 = vld [vmem:[%s7687_s0 + $0xc4] ss:$16 sps:$4 sm:$0xff]   ;;  %v6544_v28 = vld [vmem:[%s7687_s0 + $0xcc] ss:$16 sps:$4 sm:$0xff]   ;;  %v6546_v26 = vld [vmem:[%s7687_s0 + $0xc0] ss:$16 sps:$4 sm:$0xff]  }
 0x2be   : > { %v6547_v40 = vld [vmem:[%s7687_s0 + $0xc8] ss:$16 sps:$4 sm:$0xff]   ;;  %v6548_v45 = vld [vmem:[%s7687_s0 + $0xe4] ss:$16 sps:$4 sm:$0xff]   ;;  %v6550_v34 = vld [vmem:[%s7687_s0 + $0xec] ss:$16 sps:$4 sm:$0xff]  }
 0x2bf   : > { %2558 = vmatpush1.bf16.msra.mxu0 %v6522_v61  ;;  %2880 = vmatpush1.bf16.msra.mxu1 %v6523_v2  ;;  %v6552_v0 = vld [vmem:[%s7687_s0 + $0xe0] ss:$16 sps:$4 sm:$0xff]   ;;  %v6553_v60 = vld [vmem:[%s7687_s0 + $0xe8] ss:$16 sps:$4 sm:$0xff]   ;;  %v6554_v18 = vld [vmem:[%s7687_s0 + $0x104] ss:$16 sps:$4 sm:$0xff]  }
 0x2c0   : > { %2559 = vmatprep.subr.bf16.mxu0 %v6524_v4  ;;  %2881 = vmatprep.subr.bf16.mxu1 %v6526_v27  ;;  %v6556_v20 = vld [vmem:[%s7687_s0 + $0x10c] ss:$16 sps:$4 sm:$0xff]   ;;  %v6558_v23 = vld [vmem:[%s7687_s0 + $0x100] ss:$16 sps:$4 sm:$0xff]   ;;  %v6559_v15 = vld [vmem:[%s7687_s0 + $0x108] ss:$16 sps:$4 sm:$0xff]  }
 0x2c1   : > { %v6560_v29 = vld [vmem:[%s7687_s0 + $0x124] ss:$16 sps:$4 sm:$0xff]   ;;  %v6562_v43 = vld [vmem:[%s7687_s0 + $0x12c] ss:$16 sps:$4 sm:$0xff]   ;;  %v6564_v36 = vld [vmem:[%s7687_s0 + $0x120] ss:$16 sps:$4 sm:$0xff]  }
 0x2c2   : > { %v6565_v8 = vld [vmem:[%s7687_s0 + $0x128] ss:$16 sps:$4 sm:$0xff]   ;;  %v6566_v33 = vld [vmem:[%s7687_s0 + $0x144] ss:$16 sps:$4 sm:$0xff]   ;;  %v6568_v63 = vld [vmem:[%s7687_s0 + $0x14c] ss:$16 sps:$4 sm:$0xff]  }
 0x2c3   : > { %2560 = vmatpush1.bf16.msra.mxu0 %v6528_v32  ;;  %2882 = vmatpush1.bf16.msra.mxu1 %v6529_v59  ;;  %v6570_v24 = vld [vmem:[%s7687_s0 + $0x140] ss:$16 sps:$4 sm:$0xff]   ;;  %v6571_v42 = vld [vmem:[%s7687_s0 + $0x148] ss:$16 sps:$4 sm:$0xff]   ;;  %v6572_v44 = vld [vmem:[%s7687_s0 + $0x164] ss:$16 sps:$4 sm:$0xff]  }
 0x2c4   : > { %2561 = vmatprep.subr.bf16.mxu0 %v6530_v38  ;;  %2883 = vmatprep.subr.bf16.mxu1 %v6532_v25  ;;  %v6574_v17 = vld [vmem:[%s7687_s0 + $0x16c] ss:$16 sps:$4 sm:$0xff]   ;;  %v6576_v16 = vld [vmem:[%s7687_s0 + $0x160] ss:$16 sps:$4 sm:$0xff]   ;;  %v6577_v57 = vld [vmem:[%s7687_s0 + $0x168] ss:$16 sps:$4 sm:$0xff]  }
 0x2c5   : > { %v6604_v49 = vld [vmem:[#allocation2 + $0x4] ss:$12 sps:$4 sm:$0xff]   ;;  %v6578_v47 = vld [vmem:[%s7687_s0 + $0x184] ss:$16 sps:$4 sm:$0xff]   ;;  %v6583_v21 = vld [vmem:[%s7687_s0 + $0x188] ss:$16 sps:$4 sm:$0xff]  }
 0x2c6   : > { %v6580_v56 = vld [vmem:[%s7687_s0 + $0x18c] ss:$16 sps:$4 sm:$0xff]   ;;  %2585 = vmatprep.mubr.bf16.mxu0 %v6604_v49  ;;  %2907 = vmatprep.mubr.bf16.mxu1 %v6604_v49  ;;  %v6582_v46 = vld [vmem:[%s7687_s0 + $0x180] ss:$16 sps:$4 sm:$0xff]   ;;  %v6584_v31 = vld [vmem:[%s7687_s0 + $0x1a4] ss:$16 sps:$4 sm:$0xff]  }
 0x2c7   : > { %2562 = vmatpush1.bf16.msra.mxu0 %v6534_v14  ;;  %2884 = vmatpush1.bf16.msra.mxu1 %v6535_v22  ;;  %v6586_v50 = vld [vmem:[%s7687_s0 + $0x1ac] ss:$16 sps:$4 sm:$0xff]   ;;  %v6588_v12 = vld [vmem:[%s7687_s0 + $0x1a0] ss:$16 sps:$4 sm:$0xff]   ;;  %v6589_v10 = vld [vmem:[%s7687_s0 + $0x1a8] ss:$16 sps:$4 sm:$0xff]  }
 0x2c8   : > { %2563 = vmatprep.subr.bf16.mxu0 %v6536_v9  ;;  %2885 = vmatprep.subr.bf16.mxu1 %v6538_v30  ;;  %v6590_v35 = vld [vmem:[%s7687_s0 + $0x1c4] ss:$16 sps:$4 sm:$0xff]   ;;  %v6592_v37 = vld [vmem:[%s7687_s0 + $0x1cc] ss:$16 sps:$4 sm:$0xff]   ;;  %v6594_v39 = vld [vmem:[%s7687_s0 + $0x1c0] ss:$16 sps:$4 sm:$0xff]  }
 0x2c9   : > { %v6595_v19 = vld [vmem:[%s7687_s0 + $0x1c8] ss:$16 sps:$4 sm:$0xff]   ;;  %v6596_v55 = vld [vmem:[%s7687_s0 + $0x1e4] ss:$16 sps:$4 sm:$0xff]   ;;  %v6598_v58 = vld [vmem:[%s7687_s0 + $0x1ec] ss:$16 sps:$4 sm:$0xff]  }
 0x2ca   : > { %v6600_v54 = vld [vmem:[%s7687_s0 + $0x1e0] ss:$16 sps:$4 sm:$0xff]   ;;  %v6601_v1 = vld [vmem:[%s7687_s0 + $0x1e8] ss:$16 sps:$4 sm:$0xff]   ;;  %v6607_v11 = vld [vmem:[%s7687_s0 + $0x204] ss:$16 sps:$4 sm:$0xff]  }
 0x2cb   : > { %2564 = vmatpush1.bf16.msra.mxu0 %v6540_v52  ;;  %2886 = vmatpush1.bf16.msra.mxu1 %v6541_v3  ;;  %v6602_v51 = vld [vmem:[#allocation2] ss:$12 sps:$4 sm:$0xff]   ;;  %v6605_v53 = vld [vmem:[%s7687_s0 + $0x200] ss:$16 sps:$4 sm:$0xff]   ;;  %v6608_v41 = vld [vmem:[#allocation2 + $0x1c] ss:$12 sps:$4 sm:$0xff]  }
 0x2cc   : > { %2565 = vmatprep.subr.bf16.mxu0 %v6542_v13  ;;  %2887 = vmatprep.subr.bf16.mxu1 %v6544_v28  ;;  %v6613_v48 = vld [vmem:[%s7687_s0 + $0x224] ss:$16 sps:$4 sm:$0xff]   ;;  %v6652_v5 = vld [vmem:[%s7687_s0 + $0x20c] ss:$16 sps:$4 sm:$0xff]   ;;  %v6611_v7 = vld [vmem:[%s7687_s0 + $0x220] ss:$16 sps:$4 sm:$0xff]  }
 0x2cd   : > { %v6650_v6 = vld [vmem:[%s7687_s0 + $0x208] ss:$16 sps:$4 sm:$0xff]   ;;  %v6655_v62 = vld [vmem:[%s7687_s0 + $0x22c] ss:$16 sps:$4 sm:$0xff]   ;;  %v6622_v61 = vld [vmem:[%s7687_s0 + $0x244] ss:$16 sps:$4 sm:$0xff]  }
 0x2ce   : > { %v6610_v2 = vld [vmem:[#allocation2 + $0x18] ss:$12 sps:$4 sm:$0xff]   ;;  %v6614_v4 = vld [vmem:[#allocation2 + $0x34] ss:$12 sps:$4 sm:$0xff]   ;;  %v6653_v32 = vld [vmem:[%s7687_s0 + $0x228] ss:$16 sps:$4 sm:$0xff]  }
 0x2cf   : > { %2566 = vmatpush1.bf16.msra.mxu0 %v6546_v26  ;;  %2888 = vmatpush1.bf16.msra.mxu1 %v6547_v40  ;;  %v6620_v27 = vld [vmem:[%s7687_s0 + $0x240] ss:$16 sps:$4 sm:$0xff]   ;;  %v6630_v59 = vld [vmem:[%s7687_s0 + $0x264] ss:$16 sps:$4 sm:$0xff]   ;;  %v6664_v38 = vld [vmem:[%s7687_s0 + $0x24c] ss:$16 sps:$4 sm:$0xff]  }
 0x2d0   : > { %2567 = vmatprep.subr.bf16.mxu0 %v6548_v45  ;;  %2889 = vmatprep.subr.bf16.mxu1 %v6550_v34  ;;  %v6616_v25 = vld [vmem:[#allocation2 + $0x30] ss:$12 sps:$4 sm:$0xff]   ;;  %v6628_v14 = vld [vmem:[%s7687_s0 + $0x260] ss:$16 sps:$4 sm:$0xff]   ;;  %v6617_v9 = vld [vmem:[#allocation2 + $0x4c] ss:$12 sps:$4 sm:$0xff]  }
 0x2d1   : > { %v6662_v22 = vld [vmem:[%s7687_s0 + $0x248] ss:$16 sps:$4 sm:$0xff]   ;;  %v6637_v30 = vld [vmem:[%s7687_s0 + $0x284] ss:$16 sps:$4 sm:$0xff]   ;;  %v6667_v52 = vld [vmem:[%s7687_s0 + $0x26c] ss:$16 sps:$4 sm:$0xff]  }
 0x2d2   : > { %v6635_v3 = vld [vmem:[%s7687_s0 + $0x280] ss:$16 sps:$4 sm:$0xff]   ;;  %v6646_v13 = vld [vmem:[%s7687_s0 + $0x2a4] ss:$16 sps:$4 sm:$0xff]   ;;  %v6665_v28 = vld [vmem:[%s7687_s0 + $0x268] ss:$16 sps:$4 sm:$0xff]  }
 0x2d3   : > { %2568 = vmatpush1.bf16.msra.mxu0 %v6552_v0  ;;  %2890 = vmatpush1.bf16.msra.mxu1 %v6553_v60  ;;  %v6673_v26 = vld [vmem:[%s7687_s0 + $0x28c] ss:$16 sps:$4 sm:$0xff]   ;;  %v6644_v40 = vld [vmem:[%s7687_s0 + $0x2a0] ss:$16 sps:$4 sm:$0xff]   ;;  %v6658_v45 = vld [vmem:[%s7687_s0 + $0x2c4] ss:$16 sps:$4 sm:$0xff]  }
 0x2d4   : > { %2569 = vmatprep.subr.bf16.mxu0 %v6554_v18  ;;  %2891 = vmatprep.subr.bf16.mxu1 %v6556_v20  ;;  %v6619_v34 = vld [vmem:[#allocation2 + $0x48] ss:$12 sps:$4 sm:$0xff]   ;;  %v6671_v0 = vld [vmem:[%s7687_s0 + $0x288] ss:$16 sps:$4 sm:$0xff]   ;;  %v6623_v60 = vld [vmem:[#allocation2 + $0x64] ss:$12 sps:$4 sm:$0xff]  }
 0x2d5   : > { %v6679_v18 = vld [vmem:[%s7687_s0 + $0x2ac] ss:$16 sps:$4 sm:$0xff]   ;;  %v6656_v20 = vld [vmem:[%s7687_s0 + $0x2c0] ss:$16 sps:$4 sm:$0xff]   ;;  %s10645_s1 = sld [smem:[#allocation23_spill]] }
 0x2d6   : > { %v6641_v49 = vld [vmem:[#allocation2 + $0xc4] ss:$12 sps:$4 sm:$0xff]  }
 0x2d7   : > { %2570 = vmatpush1.bf16.msra.mxu0 %v6558_v23  ;;  %2892 = vmatpush1.bf16.msra.mxu1 %v6559_v15  ;;  %v6677_v23 = vld [vmem:[%s7687_s0 + $0x2a8] ss:$16 sps:$4 sm:$0xff]   ;;  %v6676_v15 = vld [vmem:[%s7687_s0 + $0x2e4] ss:$16 sps:$4 sm:$0xff]  }
 0x2d8   : > { %2571 = vmatprep.subr.bf16.mxu0 %v6560_v29  ;;  %2893 = vmatprep.subr.bf16.mxu1 %v6562_v43  ;;  %v6684_v29 = vld [vmem:[%s7687_s0 + $0x2cc] ss:$16 sps:$4 sm:$0xff]   ;;  %v6674_v43 = vld [vmem:[%s7687_s0 + $0x2e0] ss:$16 sps:$4 sm:$0xff]  }
 0x2db   : > { %2572 = vmatpush1.bf16.msra.mxu0 %v6564_v36  ;;  %2894 = vmatpush1.bf16.msra.mxu1 %v6565_v8  ;;  %v6682_v36 = vld [vmem:[%s7687_s0 + $0x2c8] ss:$16 sps:$4 sm:$0xff]   ;;  %v6687_v8 = vld [vmem:[%s7687_s0 + $0x2ec] ss:$16 sps:$4 sm:$0xff]   ;;  %p10646_p9 = scmp.ne.s32.totalorder %s10645_s1, 0 }
 0x2dc   : > { %2573 = vmatprep.subr.bf16.mxu0 %v6566_v33  ;;  %2895 = vmatprep.subr.bf16.mxu1 %v6568_v63  ;;  %v6625_v33 = vld [vmem:[#allocation2 + $0x60] ss:$12 sps:$4 sm:$0xff]   ;;  %v6626_v63 = vld [vmem:[#allocation2 + $0x7c] ss:$12 sps:$4 sm:$0xff]  }
 0x2df   : > { %2574 = vmatpush1.bf16.msra.mxu0 %v6570_v24  ;;  %2896 = vmatpush1.bf16.msra.mxu1 %v6571_v42  ;;  %v6685_v24 = vld [vmem:[%s7687_s0 + $0x2e8] ss:$16 sps:$4 sm:$0xff]   ;;  %v6631_v42 = vld [vmem:[#allocation2 + $0x78] ss:$12 sps:$4 sm:$0xff]  }
 0x2e0   : > { %2575 = vmatprep.subr.bf16.mxu0 %v6572_v44  ;;  %2897 = vmatprep.subr.bf16.mxu1 %v6574_v17  ;;  %v6632_v44 = vld [vmem:[#allocation2 + $0x94] ss:$12 sps:$4 sm:$0xff]   ;;  %v6634_v17 = vld [vmem:[#allocation2 + $0x90] ss:$12 sps:$4 sm:$0xff]  }
 0x2e3   : > { %2576 = vmatpush1.bf16.msra.mxu0 %v6576_v16  ;;  %2898 = vmatpush1.bf16.msra.mxu1 %v6577_v57  ;;  %v6638_v16 = vld [vmem:[#allocation2 + $0xac] ss:$12 sps:$4 sm:$0xff]   ;;  %v6640_v57 = vld [vmem:[#allocation2 + $0xa8] ss:$12 sps:$4 sm:$0xff]  }
 0x2e4   : > { %2577 = vmatprep.subr.bf16.mxu0 %v6578_v47  ;;  %2899 = vmatprep.subr.bf16.mxu1 %v6580_v56  ;;  %v6643_v47 = vld [vmem:[#allocation2 + $0xc0] ss:$12 sps:$4 sm:$0xff]   ;;  %v6647_v56 = vld [vmem:[#allocation2 + $0xdc] ss:$12 sps:$4 sm:$0xff]  }
 0x2e7   : > { %2578 = vmatpush1.bf16.msra.mxu0 %v6582_v46  ;;  %2900 = vmatpush1.bf16.msra.mxu1 %v6583_v21  ;;  %v6649_v46 = vld [vmem:[#allocation2 + $0xd8] ss:$12 sps:$4 sm:$0xff]   ;;  %v6659_v21 = vld [vmem:[#allocation2 + $0xf4] ss:$12 sps:$4 sm:$0xff]  }
 0x2e8   : > { %2579 = vmatprep.subr.bf16.mxu0 %v6584_v31  ;;  %2901 = vmatprep.subr.bf16.mxu1 %v6586_v50  ;;  %v6701_v31 = vld [vmem:[%s7696_s12 + $0xc8] ss:$12 sps:$4 sm:$0xff]   ;;  %v6704_v50 = vld [vmem:[%s7696_s12 + $0x4] ss:$12 sps:$4 sm:$0xff]  }
 0x2eb   : > { %2580 = vmatpush1.bf16.msra.mxu0 %v6588_v12  ;;  %2902 = vmatpush1.bf16.msra.mxu1 %v6589_v10  ;;  %v6661_v12 = vld [vmem:[#allocation2 + $0xf0] ss:$12 sps:$4 sm:$0xff]   ;;  %v6668_v10 = vld [vmem:[#allocation2 + $0x10c] ss:$12 sps:$4 sm:$0xff]  }
 0x2ec   : > { %2581 = vmatprep.subr.bf16.mxu0 %v6590_v35  ;;  %2903 = vmatprep.subr.bf16.mxu1 %v6592_v37  ;;  %v1750_v35 = vld [vmem:[#allocation2 + $0x120] sm:$0x33]  ;;  %v6670_v37 = vld [vmem:[#allocation2 + $0x108] ss:$12 sps:$4 sm:$0xff]  }
 0x2ef   : > { %2582 = vmatpush1.bf16.msra.mxu0 %v6594_v39  ;;  %2904 = vmatpush1.bf16.msra.mxu1 %v6595_v19  ;;  %v5639_v39 = vcombine.high %v1750_v35, %v1750_v35  ;;  %v5638_v19 = vcombine.low %v1750_v35, %v1750_v35  ;;  %v6765_v35 = vld [vmem:[%s7696_s12 + $0x248] ss:$12 sps:$4 sm:$0xff]  }
 0x2f0   : > { %2583 = vmatprep.subr.bf16.mxu0 %v6596_v55  ;;  %2905 = vmatprep.subr.bf16.mxu1 %v6598_v58  ;;  %v7356_v55 = vmov 0   ;;  %v6688_v58 = vld [vmem:[#allocation2 + $0x8] ss:$12 sps:$4 sm:$0xff]  }
 0x2f3   : > { %2584 = vmatpush1.bf16.msra.mxu0 %v6600_v54  ;;  %2906 = vmatpush1.bf16.msra.mxu1 %v6601_v1  ;;  %v6702_v54 = vld [vmem:[%s7696_s12] ss:$12 sps:$4 sm:$0xff]   ;;  %v6705_v1 = vld [vmem:[%s7696_s12 + $0x8] ss:$12 sps:$4 sm:$0xff]  }
 0x2f4   : > { %2714 = vmatprep.subr.bf16.mxu0 %v6607_v11  ;;  %3036 = vmatprep.subr.bf16.mxu1 %v6652_v5  ;;  %v6708_v11 = vld [vmem:[%s7696_s12 + $0x1c] ss:$12 sps:$4 sm:$0xff]   ;;  %v6717_v5 = vld [vmem:[%s7696_s12 + $0xf8] ss:$12 sps:$4 sm:$0xff]  }
 0x2f6   : > { %2586 = vmatmul.mubr.bf16.vlgmr.msra.gmra.mrb[0].mxu0 %v6602_v51  ;;  %2908 = vmatmul.mubr.bf16.vlgmr.msra.gmra.mrb[0].mxu1 %v6602_v51  ;;  %v6709_v51 = vld [vmem:[%s7696_s12 + $0xe0] ss:$12 sps:$4 sm:$0xff]  }
 0x2f7   : > { %2715 = vmatpush1.bf16.msra.mxu0 %v6605_v53  ;;  %2595 = vmatprep.mubr.bf16.mxu0 %v6608_v41  ;;  %v6706_v53 = vld [vmem:[%s7696_s12 + $0x18] ss:$12 sps:$4 sm:$0xff]  }
 0x2f8   : > { %2917 = vmatprep.mubr.bf16.mxu1 %v6608_v41  ;;  %2716 = vmatprep.subr.bf16.mxu0 %v6613_v48  ;;  %v6713_v41 = vld [vmem:[%s7696_s12 + $0x20] ss:$12 sps:$4 sm:$0xff]  }
 0x2f9   : > { %3037 = vmatpush1.bf16.msra.mxu1 %v6650_v6  ;;  %v6712_v48 = vld [vmem:[%s7696_s12 + $0x34] ss:$12 sps:$4 sm:$0xff]   ;;  %v6710_v6 = vld [vmem:[%s7696_s12 + $0x30] ss:$12 sps:$4 sm:$0xff]  }
 0x2fa   : > { %3038 = vmatprep.subr.bf16.mxu1 %v6655_v62  ;;  %v6721_v62 = vld [vmem:[%s7696_s12 + $0x38] ss:$12 sps:$4 sm:$0xff]  }
 0x2fb   : > { %2717 = vmatpush1.bf16.msra.mxu0 %v6611_v7  ;;  %v6689_v7 = vld [vmem:[#allocation2 + $0x20] ss:$12 sps:$4 sm:$0xff]  }
 0x2fc   : > { %2718 = vmatprep.subr.bf16.mxu0 %v6622_v61  ;;  %v6716_v61 = vld [vmem:[%s7696_s12 + $0x4c] ss:$12 sps:$4 sm:$0xff]  }
 0x2fd   : > { %3039 = vmatpush1.bf16.msra.mxu1 %v6653_v32  ;;  %v6720_v32 = vld [vmem:[%s7696_s12 + $0x64] ss:$12 sps:$4 sm:$0xff]  }
 0x2fe   : > { %2596 = vmatmul.mubr.bf16.gmra.mrb[4].mxu0 %v6610_v2  ;;  %2918 = vmatmul.mubr.bf16.gmra.mrb[4].mxu1 %v6610_v2  ;;  %v6725_v2 = vld [vmem:[%s7696_s12 + $0x110] ss:$12 sps:$4 sm:$0xff]  }
 0x2ff   : > { %2605 = vmatprep.mubr.bf16.mxu0 %v6614_v4  ;;  %2927 = vmatprep.mubr.bf16.mxu1 %v6614_v4  ;;  %v6714_v4 = vld [vmem:[%s7696_s12 + $0x48] ss:$12 sps:$4 sm:$0xff]  }
 0x300   : > { %2719 = vmatpush1.bf16.msra.mxu0 %v6620_v27  ;;  %3040 = vmatprep.subr.bf16.mxu1 %v6664_v38  ;;  %v6729_v27 = vld [vmem:[%s7696_s12 + $0x50] ss:$12 sps:$4 sm:$0xff]   ;;  %v6690_v38 = vld [vmem:[#allocation2 + $0x38] ss:$12 sps:$4 sm:$0xff]  }
 0x301   : > { %2720 = vmatprep.subr.bf16.mxu0 %v6630_v59  ;;  %3041 = vmatpush1.bf16.msra.mxu1 %v6662_v22  ;;  %v6733_v59 = vld [vmem:[%s7696_s12 + $0x128] ss:$12 sps:$4 sm:$0xff]  }
 0x302   : > { %3042 = vmatprep.subr.bf16.mxu1 %v6667_v52  ;;  %v6724_v22 = vld [vmem:[%s7696_s12 + $0x7c] ss:$12 sps:$4 sm:$0xff]   ;;  %v6745_v52 = vld [vmem:[%s7696_s12 + $0x80] ss:$12 sps:$4 sm:$0xff]  }
 0x304   : > { %2721 = vmatpush1.bf16.msra.mxu0 %v6628_v14  ;;  %v6737_v14 = vld [vmem:[%s7696_s12 + $0x68] ss:$12 sps:$4 sm:$0xff]  }
 0x305   : > { %2722 = vmatprep.subr.bf16.mxu0 %v6637_v30  ;;  %3043 = vmatpush1.bf16.msra.mxu1 %v6665_v28  ;;  %v6722_v30 = vld [vmem:[%s7696_s12 + $0x78] ss:$12 sps:$4 sm:$0xff]   ;;  %v6726_v28 = vld [vmem:[%s7696_s12 + $0x90] ss:$12 sps:$4 sm:$0xff]  }
 0x306   : > { %2606 = vmatmul.mubr.bf16.gmra.mrb[8].mxu0 %v6616_v25  ;;  %2928 = vmatmul.mubr.bf16.gmra.mrb[8].mxu1 %v6616_v25  ;;  %v6718_v25 = vld [vmem:[%s7696_s12 + $0x60] ss:$12 sps:$4 sm:$0xff]  }
 0x307   : > { %2615 = vmatprep.mubr.bf16.mxu0 %v6617_v9  ;;  %2937 = vmatprep.mubr.bf16.mxu1 %v6617_v9  ;;  %v6741_v9 = vld [vmem:[%s7696_s12 + $0x140] ss:$12 sps:$4 sm:$0xff]  }
 0x308   : > { %2723 = vmatpush1.bf16.msra.mxu0 %v6635_v3  ;;  %3044 = vmatprep.subr.bf16.mxu1 %v6673_v26  ;;  %v6728_v3 = vld [vmem:[%s7696_s12 + $0x94] ss:$12 sps:$4 sm:$0xff]   ;;  %v6732_v26 = vld [vmem:[%s7696_s12 + $0xac] ss:$12 sps:$4 sm:$0xff]  }
 0x309   : > { %2724 = vmatprep.subr.bf16.mxu0 %v6646_v13  ;;  %3045 = vmatpush1.bf16.msra.mxu1 %v6671_v0  ;;  %v6691_v13 = vld [vmem:[#allocation2 + $0x50] ss:$12 sps:$4 sm:$0xff]   ;;  %v6734_v0 = vld [vmem:[%s7696_s12 + $0xc0] ss:$12 sps:$4 sm:$0xff]  }
 0x30a   : > { %3046 = vmatprep.subr.bf16.mxu1 %v6679_v18  ;;  %v6738_v18 = vld [vmem:[%s7696_s12 + $0xd8] ss:$12 sps:$4 sm:$0xff]  }
 0x30c   : > { %2725 = vmatpush1.bf16.msra.mxu0 %v6644_v40  ;;  %v6730_v40 = vld [vmem:[%s7696_s12 + $0xa8] ss:$12 sps:$4 sm:$0xff]  }
 0x30d   : > { %2726 = vmatprep.subr.bf16.mxu0 %v6658_v45  ;;  %3047 = vmatpush1.bf16.msra.mxu1 %v6677_v23  ;;  %v6736_v45 = vld [vmem:[%s7696_s12 + $0xc4] ss:$12 sps:$4 sm:$0xff]   ;;  %v6693_v23 = vld [vmem:[#allocation2 + $0x80] ss:$12 sps:$4 sm:$0xff]  }
 0x30e   : > { %2616 = vmatmul.mubr.bf16.gmra.mrb[12].mxu0 %v6619_v34  ;;  %2938 = vmatmul.mubr.bf16.gmra.mrb[12].mxu1 %v6619_v34  ;;  %v6692_v34 = vld [vmem:[#allocation2 + $0x68] ss:$12 sps:$4 sm:$0xff]  }
 0x30f   : > { %2625 = vmatprep.mubr.bf16.mxu0 %v6623_v60  ;;  %2947 = vmatprep.mubr.bf16.mxu1 %v6623_v60  ;;  %v6740_v60 = vld [vmem:[%s7696_s12 + $0xdc] ss:$12 sps:$4 sm:$0xff]  }
 0x310   : > { %2727 = vmatpush1.bf16.msra.mxu0 %v6656_v20  ;;  %3048 = vmatprep.subr.bf16.mxu1 %v6684_v29  ;;  %v6744_v20 = vld [vmem:[%s7696_s12 + $0xf4] ss:$12 sps:$4 sm:$0xff]   ;;  %v6748_v29 = vld [vmem:[%s7696_s12 + $0x10c] ss:$12 sps:$4 sm:$0xff]  }
 0x311   : > { %2728 = vmatprep.subr.bf16.mxu0 %v6676_v15  ;;  %3049 = vmatpush1.bf16.msra.mxu1 %v6682_v36  ;;  %v6742_v15 = vld [vmem:[%s7696_s12 + $0xf0] ss:$12 sps:$4 sm:$0xff]   ;;  %v6694_v36 = vld [vmem:[#allocation2 + $0x98] ss:$12 sps:$4 sm:$0xff]  }
 0x312   : > { %3050 = vmatprep.subr.bf16.mxu1 %v6687_v8  ;;  %v6695_v8 = vld [vmem:[#allocation2 + $0xb0] ss:$12 sps:$4 sm:$0xff]  }
 0x314   : > { %2729 = vmatpush1.bf16.msra.mxu0 %v6674_v43  ;;  %v6746_v43 = vld [vmem:[%s7696_s12 + $0x108] ss:$12 sps:$4 sm:$0xff]  }
 0x315   : > { %3051 = vmatpush1.bf16.msra.mxu1 %v6685_v24  ;;  %4389 = vmatprep.subr.bf16.mxu0 %v6704_v50  ;;  %v6698_v24 = vld [vmem:[#allocation2 + $0xf8] ss:$12 sps:$4 sm:$0xff]   ;;  %v6761_v50 = vld [vmem:[%s7696_s12 + $0xb0] ss:$12 sps:$4 sm:$0xff]  }
 0x316   : > { %2626 = vmatmul.mubr.bf16.gmra.mrb[16].mxu0 %v6625_v33  ;;  %2948 = vmatmul.mubr.bf16.gmra.mrb[16].mxu1 %v6625_v33  ;;  %v6696_v33 = vld [vmem:[#allocation2 + $0xc8] ss:$12 sps:$4 sm:$0xff]  }
 0x317   : > { %2635 = vmatprep.mubr.bf16.mxu0 %v6626_v63  ;;  %2957 = vmatprep.mubr.bf16.mxu1 %v6626_v63  ;;  %v6697_v63 = vld [vmem:[#allocation2 + $0xe0] ss:$12 sps:$4 sm:$0xff]  }
 0x318   : > { %5891 = vmatprep.subr.bf16.mxu1 %v6701_v31  ;;  %v6757_v31 = vld [vmem:[%s7696_s12 + $0x170] ss:$12 sps:$4 sm:$0xff]  }
 0x31e   : > { %2636 = vmatmul.mubr.bf16.gmra.mrb[20].mxu0 %v6631_v42  ;;  %2958 = vmatmul.mubr.bf16.gmra.mrb[20].mxu1 %v6631_v42  ;;  %v6699_v42 = vld [vmem:[#allocation2 + $0x110] ss:$12 sps:$4 sm:$0xff]  }
 0x31f   : > { %2645 = vmatprep.mubr.bf16.mxu0 %v6632_v44  ;;  %2967 = vmatprep.mubr.bf16.mxu1 %v6632_v44  ;;  %v6700_v44 = vld [vmem:[#allocation2 + $0x128] ss:$0 sps:$4 sm:$0x33]  }
 0x326   : > { %2646 = vmatmul.mubr.bf16.gmra.mrb[24].mxu0 %v6634_v17  ;;  %2968 = vmatmul.mubr.bf16.gmra.mrb[24].mxu1 %v6634_v17  ;;  %v6752_v17 = vld [vmem:[%s7696_s12 + $0x124] ss:$12 sps:$4 sm:$0xff]  }
 0x327   : > { %2655 = vmatprep.mubr.bf16.mxu0 %v6638_v16  ;;  %2977 = vmatprep.mubr.bf16.mxu1 %v6638_v16  ;;  %v6750_v16 = vld [vmem:[%s7696_s12 + $0x120] ss:$12 sps:$4 sm:$0xff]  }
 0x32e   : > { %2656 = vmatmul.mubr.bf16.gmra.mrb[28].mxu0 %v6640_v57  ;;  %2978 = vmatmul.mubr.bf16.gmra.mrb[28].mxu1 %v6640_v57  ;;  %v6756_v57 = vld [vmem:[%s7696_s12 + $0x13c] ss:$12 sps:$4 sm:$0xff]  }
 0x32f   : > { %2665 = vmatprep.mubr.bf16.mxu0 %v6641_v49  ;;  %2987 = vmatprep.mubr.bf16.mxu1 %v6641_v49  ;;  %v6749_v49 = vld [vmem:[%s7696_s12 + $0x158] ss:$12 sps:$4 sm:$0xff]  }
 0x336   : > { %2666 = vmatmul.mubr.bf16.gmra.mrb[32].mxu0 %v6643_v47  ;;  %2988 = vmatmul.mubr.bf16.gmra.mrb[32].mxu1 %v6643_v47  ;;  %v6754_v47 = vld [vmem:[%s7696_s12 + $0x138] ss:$12 sps:$4 sm:$0xff]  }
 0x337   : > { %2675 = vmatprep.mubr.bf16.mxu0 %v6647_v56  ;;  %2997 = vmatprep.mubr.bf16.mxu1 %v6647_v56  ;;  %v6753_v56 = vld [vmem:[%s7696_s12 + $0x98] ss:$12 sps:$4 sm:$0xff]  }
 0x33e   : > { %2676 = vmatmul.mubr.bf16.gmra.mrb[36].mxu0 %v6649_v46  ;;  %2998 = vmatmul.mubr.bf16.gmra.mrb[36].mxu1 %v6649_v46  ;;  %v6760_v46 = vld [vmem:[%s7696_s12 + $0x154] ss:$12 sps:$4 sm:$0xff]  }
 0x33f   : > { %2685 = vmatprep.mubr.bf16.mxu0 %v6659_v21  ;;  %3007 = vmatprep.mubr.bf16.mxu1 %v6659_v21  ;;  %v6758_v21 = vld [vmem:[%s7696_s12 + $0x150] ss:$12 sps:$4 sm:$0xff]  }
 0x346   : > { %2686 = vmatmul.mubr.bf16.gmra.mrb[40].mxu0 %v6661_v12  ;;  %3008 = vmatmul.mubr.bf16.gmra.mrb[40].mxu1 %v6661_v12  ;;  %v6764_v12 = vld [vmem:[%s7696_s12 + $0x16c] ss:$12 sps:$4 sm:$0xff]  }
 0x347   : > { %2695 = vmatprep.mubr.bf16.mxu0 %v6668_v10  ;;  %3017 = vmatprep.mubr.bf16.mxu1 %v6668_v10  ;;  %v6762_v10 = vld [vmem:[%s7696_s12 + $0x168] ss:$12 sps:$4 sm:$0xff]  }
 0x34e   : > { %2696 = vmatmul.mubr.bf16.gmra.mrb[44].mxu0 %v6670_v37  ;;  %3018 = vmatmul.mubr.bf16.gmra.mrb[44].mxu1 %v6670_v37  ;;  %v6768_v37 = vld [vmem:[%s7696_s12 + $0x184] ss:$12 sps:$4 sm:$0xff]  }
 0x34f   : > { %2705 = vmatprep.mubr.bf16.mxu0 %v5639_v39  ;;  %3027 = vmatprep.mubr.bf16.mxu1 %v5639_v39  ;;  %v1850_v39 = vlaneseq }
 0x356   : > { %2706 = vmatmul.mubr.bf16.gmra.mrb[48].mxu0 %v5638_v19  ;;  %3028 = vmatmul.mubr.bf16.gmra.mrb[48].mxu1 %v5638_v19  ;;  %v8773_v19 = vshrl.u32 %v1850_v39, 7 }
 0x357   : > { %2746 = vmatprep.mubr.bf16.mxu0 %v7356_v55  ;;  %3068 = vmatprep.mubr.bf16.mxu1 %v7356_v55 }
 0x358   : > { %10525 = vst [vmem:[#allocation73_spill] sm:$0xff] %v8773_v19 }
 0x35e   : > { %2747 = vmatmul.mubr.bf16.vlgmr.msra.gmra.mrb[0].mxu0 %v6688_v58  ;;  %3069 = vmatmul.mubr.bf16.vlgmr.msra.gmra.mrb[0].mxu1 %v6688_v58  ;;  %v10349_v58 = vsub.s32 2, %v8773_v19 }
 0x35f   : > { %2756 = vmatprep.mubr.bf16.mxu0 %v7356_v55  ;;  %3078 = vmatprep.mubr.bf16.mxu1 %v7356_v55 }
 0x360   : > { %5892 = vmatpush3.bf16.msra.mxu1 %v6705_v1  ;;  %4390 = vmatpush1.bf16.msra.mxu0 %v6702_v54  ;;  %v1848_v54 = vld [vmem:[%s398_s22] sm:$0xf]  ;;  %v10350_v1 = vsub.s32 1, %v8773_v19 }
 0x361   : > { %4391 = vmatprep.subr.bf16.mxu0 %v6708_v11  ;;  %5893 = vmatprep.subr.bf16.mxu1 %v6709_v51  ;;  %v1864_v11 = vsub.s32 3, %v8773_v19 }
 0x364   : > { %4392 = vmatpush1.bf16.msra.mxu0 %v6706_v53  ;;  %5894 = vmatpush3.bf16.msra.mxu1 %v6713_v41  ;;  %v8787_v53 = vrot.slane %v1848_v54, %v10349_v58  ;;  %v8791_v41 = vrot.slane %v1848_v54, %v10350_v1  ;;  %v6777_v58 = vld [vmem:[%s7696_s12 + $0x1a0] ss:$12 sps:$4 sm:$0xff]  }
 0x365   : > { %4393 = vmatprep.subr.bf16.mxu0 %v6712_v48  ;;  %5895 = vmatprep.subr.bf16.mxu1 %v6717_v5  ;;  %v8793_v48 = vrot.slane %v1848_v54, %v1864_v11 }
 0x366   : > { %2757 = vmatmul.mubr.bf16.gmra.mrb[4].mxu0 %v6689_v7  ;;  %3079 = vmatmul.mubr.bf16.gmra.mrb[4].mxu1 %v6689_v7 }
 0x367   : > { %2766 = vmatprep.mubr.bf16.mxu0 %v7356_v55  ;;  %3088 = vmatprep.mubr.bf16.mxu1 %v7356_v55 }
 0x368   : > { %4394 = vmatpush1.bf16.msra.mxu0 %v6710_v6  ;;  %5896 = vmatpush3.bf16.msra.mxu1 %v6721_v62 }
 0x369   : > { %4395 = vmatprep.subr.bf16.mxu0 %v6716_v61  ;;  %5897 = vmatprep.subr.bf16.mxu1 %v6725_v2 }
 0x36c   : > { %4396 = vmatpush1.bf16.msra.mxu0 %v6714_v4  ;;  %5898 = vmatpush3.bf16.msra.mxu1 %v6729_v27 }
 0x36d   : > { %4397 = vmatprep.subr.bf16.mxu0 %v6720_v32  ;;  %5899 = vmatprep.subr.bf16.mxu1 %v6733_v59 }
 0x36e   : > { %2767 = vmatmul.mubr.bf16.gmra.mrb[8].mxu0 %v6690_v38  ;;  %3089 = vmatmul.mubr.bf16.gmra.mrb[8].mxu1 %v6690_v38 }
 0x36f   : > { %2776 = vmatprep.mubr.bf16.mxu0 %v7356_v55  ;;  %3098 = vmatprep.mubr.bf16.mxu1 %v7356_v55 }
 0x370   : > { %4398 = vmatpush1.bf16.msra.mxu0 %v6718_v25  ;;  %5900 = vmatpush3.bf16.msra.mxu1 %v6737_v14 }
 0x371   : > { %4399 = vmatprep.subr.bf16.mxu0 %v6724_v22  ;;  %5901 = vmatprep.subr.bf16.mxu1 %v6741_v9 }
 0x374   : > { %4400 = vmatpush1.bf16.msra.mxu0 %v6722_v30  ;;  %5902 = vmatpush3.bf16.msra.mxu1 %v6745_v52 }
 0x375   : > { %4401 = vmatprep.subr.bf16.mxu0 %v6728_v3  ;;  %5903 = vmatprep.subr.bf16.mxu1 %v6749_v49 }
 0x376   : > { %2777 = vmatmul.mubr.bf16.gmra.mrb[12].mxu0 %v6691_v13  ;;  %3099 = vmatmul.mubr.bf16.gmra.mrb[12].mxu1 %v6691_v13 }
 0x377   : > { %2786 = vmatprep.mubr.bf16.mxu0 %v7356_v55  ;;  %3108 = vmatprep.mubr.bf16.mxu1 %v7356_v55 }
 0x378   : > { %4402 = vmatpush1.bf16.msra.mxu0 %v6726_v28  ;;  %5904 = vmatpush3.bf16.msra.mxu1 %v6753_v56 }
 0x379   : > { %4403 = vmatprep.subr.bf16.mxu0 %v6732_v26  ;;  %5905 = vmatprep.subr.bf16.mxu1 %v6757_v31 }
 0x37c   : > { %4404 = vmatpush1.bf16.msra.mxu0 %v6730_v40  ;;  %5906 = vmatpush3.bf16.msra.mxu1 %v6761_v50 }
 0x37d   : > { %4405 = vmatprep.subr.bf16.mxu0 %v6736_v45  ;;  %5985 = vmatprep.subr.bf16.mxu1 %v6765_v35 }
 0x37e   : > { %2787 = vmatmul.mubr.bf16.gmra.mrb[16].mxu0 %v6692_v34  ;;  %3109 = vmatmul.mubr.bf16.gmra.mrb[16].mxu1 %v6692_v34 }
 0x37f   : > { %2796 = vmatprep.mubr.bf16.mxu0 %v7356_v55  ;;  %3118 = vmatprep.mubr.bf16.mxu1 %v7356_v55 }
 0x380   : > { %4406 = vmatpush1.bf16.msra.mxu0 %v6734_v0 }
 0x381   : > { %4407 = vmatprep.subr.bf16.mxu0 %v6740_v60 }
 0x384   : > { %4408 = vmatpush1.bf16.msra.mxu0 %v6738_v18 }
 0x385   : > { %4409 = vmatprep.subr.bf16.mxu0 %v6744_v20 }
 0x386   : > { %2797 = vmatmul.mubr.bf16.gmra.mrb[20].mxu0 %v6693_v23  ;;  %3119 = vmatmul.mubr.bf16.gmra.mrb[20].mxu1 %v6693_v23 }
 0x387   : > { %2806 = vmatprep.mubr.bf16.mxu0 %v7356_v55  ;;  %3128 = vmatprep.mubr.bf16.mxu1 %v7356_v55 }
 0x388   : > { %4410 = vmatpush1.bf16.msra.mxu0 %v6742_v15 }
 0x389   : > { %4411 = vmatprep.subr.bf16.mxu0 %v6748_v29 }
 0x38c   : > { %4412 = vmatpush1.bf16.msra.mxu0 %v6746_v43 }
 0x38d   : > { %4413 = vmatprep.subr.bf16.mxu0 %v6752_v17 }
 0x38e   : > { %2807 = vmatmul.mubr.bf16.gmra.mrb[24].mxu0 %v6694_v36  ;;  %3129 = vmatmul.mubr.bf16.gmra.mrb[24].mxu1 %v6694_v36 }
 0x38f   : > { %2816 = vmatprep.mubr.bf16.mxu0 %v7356_v55  ;;  %3138 = vmatprep.mubr.bf16.mxu1 %v7356_v55 }
 0x390   : > { %4414 = vmatpush1.bf16.msra.mxu0 %v6750_v16 }
 0x391   : > { %4415 = vmatprep.subr.bf16.mxu0 %v6756_v57 }
 0x394   : > { %4416 = vmatpush1.bf16.msra.mxu0 %v6754_v47 }
 0x395   : > { %4417 = vmatprep.subr.bf16.mxu0 %v6760_v46 }
 0x396   : > { %2817 = vmatmul.mubr.bf16.gmra.mrb[28].mxu0 %v6695_v8  ;;  %3139 = vmatmul.mubr.bf16.gmra.mrb[28].mxu1 %v6695_v8 }
 0x397   : > { %2826 = vmatprep.mubr.bf16.mxu0 %v7356_v55  ;;  %3148 = vmatprep.mubr.bf16.mxu1 %v7356_v55 }
 0x398   : > { %4418 = vmatpush1.bf16.msra.mxu0 %v6758_v21 }
 0x399   : > { %4419 = vmatprep.subr.bf16.mxu0 %v6764_v12 }
 0x39c   : > { %4420 = vmatpush1.bf16.msra.mxu0 %v6762_v10 }
 0x39d   : > { %4550 = vmatprep.subr.bf16.mxu0 %v6768_v37 }
 0x39e   : > { %2827 = vmatmul.mubr.bf16.gmra.mrb[32].mxu0 %v6696_v33  ;;  %3149 = vmatmul.mubr.bf16.gmra.mrb[32].mxu1 %v6696_v33 }
 0x39f   : > { %2836 = vmatprep.mubr.bf16.mxu0 %v7356_v55  ;;  %3158 = vmatprep.mubr.bf16.mxu1 %v7356_v55 }
 0x3a6   : > { %2837 = vmatmul.mubr.bf16.gmra.mrb[36].mxu0 %v6697_v63  ;;  %3159 = vmatmul.mubr.bf16.gmra.mrb[36].mxu1 %v6697_v63 }
 0x3a7   : > { %2846 = vmatprep.mubr.bf16.mxu0 %v7356_v55  ;;  %3168 = vmatprep.mubr.bf16.mxu1 %v7356_v55 }
 0x3ae   : > { %2847 = vmatmul.mubr.bf16.gmra.mrb[40].mxu0 %v6698_v24  ;;  %3169 = vmatmul.mubr.bf16.gmra.mrb[40].mxu1 %v6698_v24 }
 0x3af   : > { %2856 = vmatprep.mubr.bf16.mxu0 %v7356_v55  ;;  %3178 = vmatprep.mubr.bf16.mxu1 %v7356_v55 }
 0x3b6   : > { %2857 = vmatmul.mubr.bf16.gmra.mrb[44].mxu0 %v6699_v42  ;;  %3179 = vmatmul.mubr.bf16.gmra.mrb[44].mxu1 %v6699_v42 }
 0x3b7   : > { %2866 = vmatprep.mubr.bf16.mxu0 %v7356_v55  ;;  %3188 = vmatprep.mubr.bf16.mxu1 %v7356_v55  ;;  %v10351_v55 = vsub.s32 0, %v8773_v19 }
 0x3b9   : > { %v8783_v51 = vrot.slane %v1848_v54, %v10351_v55 }
 0x3be   : > { %2867 = vmatmul.mubr.bf16.gmra.mrb[48].mxu0 %v6700_v44  ;;  %3189 = vmatmul.mubr.bf16.gmra.mrb[48].mxu1 %v6700_v44 }
 0x431   : > { %v2748_v5 = vpop.f32.mrb[0].mxu0  ;;  %v3070_v7 = vpop.f32.mrb[0].mxu1 }
 0x432   : > { %v6079_v6 = vadd.f32 %v2748_v5, %v8783_v51  ;;  %v6129_v62 = vadd.f32 %v3070_v7, %v8787_v53  ;;  %v2750_v61 = vpop.f32.mrb[1].mxu0  ;;  %v3072_v2 = vpop.f32.mrb[1].mxu1 }
 0x433   : > { %v6080_v4 = vadd.f32 %v2750_v61, %v8791_v41  ;;  %v6130_v27 = vadd.f32 %v3072_v2, %v8793_v48  ;;  %v2752_v32 = vpop.f32.mrb[2].mxu0  ;;  %v3074_v59 = vpop.f32.mrb[2].mxu1 }
 0x434   : > { %v3297_v38 = vmul.f32 0.70710677, %v6079_v6  ;;  %v3299_v25 = vmul.f32 0.70710677, %v6129_v62  ;;  %v6081_v9 = vadd.f32 %v2752_v32, %v8783_v51  ;;  %v6131_v30 = vadd.f32 %v3074_v59, %v8787_v53  ;;  %v2754_v52 = vpop.f32.mrb[3].mxu0  ;;  %v3076_v3 = vpop.f32.mrb[3].mxu1 }
 0x435   : > { %v3298_v14 = vmul.f32 0.70710677, %v6080_v4  ;;  %v3300_v22 = vmul.f32 0.70710677, %v6130_v27  ;;  %v6082_v13 = vadd.f32 %v2754_v52, %v8791_v41  ;;  %v6132_v28 = vadd.f32 %v3076_v3, %v8793_v48 }
 0x436   : > { %6829 = verf.f32 %v3297_v38  ;;  %v3301_v26 = vmul.f32 0.70710677, %v6081_v9  ;;  %v3303_v40 = vmul.f32 0.70710677, %v6131_v30  ;;  %v3197_v56 = vmul.f32 0.5, %v6079_v6 }
 0x437   : > { %6831 = verf.f32 %v3299_v25  ;;  %v3302_v45 = vmul.f32 0.70710677, %v6082_v13  ;;  %v3304_v0 = vmul.f32 0.70710677, %v6132_v28  ;;  %v3199_v46 = vmul.f32 0.5, %v6129_v62 }
 0x438   : > { %6833 = verf.f32 %v3298_v14  ;;  %v8813_v21 = vmul.f32 0.5, %v6080_v4  ;;  %v3200_v12 = vmul.f32 0.5, %v6130_v27  ;;  %v3201_v54 = vmul.f32 0.5, %v6081_v9 }
 0x439   : > { %6835 = verf.f32 %v3300_v22  ;;  %v2758_v34 = vpop.f32.mrb[4].mxu0  ;;  %v3080_v18 = vpop.f32.mrb[4].mxu1  ;;  %v3203_v11 = vmul.f32 0.5, %v6131_v30  ;;  %v8816_v6 = vmul.f32 0.5, %v6082_v13  ;;  %v8818_v62 = vmul.f32 0.5, %v6132_v28 }
 0x43a   : > { %6837 = verf.f32 %v3301_v26  ;;  %v6083_v60 = vadd.f32 %v2758_v34, %v8783_v51  ;;  %v2760_v20 = vpop.f32.mrb[5].mxu0  ;;  %v6133_v23 = vadd.f32 %v3080_v18, %v8787_v53  ;;  %v3082_v29 = vpop.f32.mrb[5].mxu1 }
 0x43b   : > { %6839 = verf.f32 %v3303_v40  ;;  %v6084_v15 = vadd.f32 %v2760_v20, %v8791_v41  ;;  %v2762_v43 = vpop.f32.mrb[6].mxu0  ;;  %v8807_v8 = vadd.f32 %v3082_v29, %v8793_v48  ;;  %v3084_v33 = vpop.f32.mrb[6].mxu1 }
 0x43c   : > { %6841 = verf.f32 %v3302_v45  ;;  %v3305_v36 = vmul.f32 0.70710677, %v6083_v60  ;;  %v2764_v63 = vpop.f32.mrb[7].mxu0  ;;  %v3307_v24 = vmul.f32 0.70710677, %v6133_v23  ;;  %v3086_v42 = vpop.f32.mrb[7].mxu1  ;;  %v6085_v16 = vadd.f32 %v2762_v43, %v8783_v51 }
 0x43d   : > { %6843 = verf.f32 %v3304_v0  ;;  %v3306_v44 = vmul.f32 0.70710677, %v6084_v15  ;;  %v3308_v17 = vmul.f32 0.70710677, %v8807_v8  ;;  %v6135_v57 = vadd.f32 %v3084_v33, %v8787_v53 }
 0x43e   : > { %6845 = verf.f32 %v3305_v36  ;;  %v6086_v49 = vadd.f32 %v2764_v63, %v8791_v41  ;;  %v3309_v10 = vmul.f32 0.70710677, %v6085_v16  ;;  %v6136_v7 = vadd.f32 %v3086_v42, %v8793_v48 }
 0x43f   : > { %6847 = verf.f32 %v3307_v24  ;;  %v3311_v5 = vmul.f32 0.70710677, %v6135_v57  ;;  %v8820_v25 = vmul.f32 0.5, %v6083_v60  ;;  %v8822_v14 = vmul.f32 0.5, %v6133_v23 }
 0x440   : > { %v6830_v47 = vpop.eup %6829  ;;  %6849 = verf.f32 %v3306_v44  ;;  %v3310_v4 = vmul.f32 0.70710677, %v6086_v49  ;;  %v8824_v22 = vmul.f32 0.5, %v6084_v15  ;;  %v3312_v34 = vmul.f32 0.70710677, %v6136_v7 }
 0x441   : > { %v6832_v31 = vpop.eup %6831  ;;  %v3497_v50 = vadd.f32 1.0, %v6830_v47  ;;  %6851 = verf.f32 %v3308_v17  ;;  %v2768_v35 = vpop.f32.mrb[8].mxu0  ;;  %v3208_v36 = vmul.f32 0.5, %v8807_v8  ;;  %v8835_v42 = vmul.f32 0.5, %v6085_v16 }
 0x442   : > { %v3090_v37 = vpop.f32.mrb[8].mxu1  ;;  %v6834_v39 = vpop.eup %6833  ;;  %v3499_v38 = vadd.f32 1.0, %v6832_v31  ;;  %6853 = verf.f32 %v3309_v10  ;;  %v6087_v0 = vadd.f32 %v2768_v35, %v8783_v51  ;;  %v8837_v44 = vmul.f32 0.5, %v6135_v57 }
 0x443   : > { %v2770_v61 = vpop.f32.mrb[9].mxu0  ;;  %v6836_v2 = vpop.eup %6835  ;;  %v3597_v3 = vmul.f32 %v3497_v50, %v3197_v56  ;;  %v3498_v13 = vadd.f32 1.0, %v6834_v39  ;;  %6855 = verf.f32 %v3311_v5  ;;  %v6137_v23 = vadd.f32 %v3090_v37, %v8787_v53 }
 0x444   : > { %v3092_v32 = vpop.f32.mrb[9].mxu1  ;;  %v2772_v59 = vpop.f32.mrb[10].mxu0  ;;  %v3500_v18 = vadd.f32 1.0, %v6836_v2  ;;  %6857 = verf.f32 %v3310_v4  ;;  %v3599_v29 = vmul.f32 %v3499_v38, %v3199_v46  ;;  %v3313_v33 = vmul.f32 0.70710677, %v6087_v0 }
 0x445   : > { %v6838_v27 = vpop.eup %6837  ;;  %v3094_v9 = vpop.f32.mrb[10].mxu1  ;;  %v6088_v17 = vadd.f32 %v2770_v61, %v8791_v41  ;;  %v8844_v10 = vmul.f32 0.5, %v6086_v49  ;;  %6859 = verf.f32 %v3312_v34  ;;  %v8849_v16 = vmul.f32 %v3498_v13, %v8813_v21 }
 0x446   : > { %v8826_v30 = vpop.f32.mrb[11].mxu0  ;;  %v6840_v52 = vpop.eup %6839  ;;  %v3501_v26 = vadd.f32 1.0, %v6838_v27  ;;  %v8851_v57 = vmul.f32 %v3500_v18, %v3200_v12  ;;  %v8853_v39 = vmul.f32 0.5, %v6136_v7  ;;  %6861 = verf.f32 %v3313_v33 }
 0x447   : > { %v8828_v28 = vpop.f32.mrb[11].mxu1  ;;  %v6842_v40 = vpop.eup %6841  ;;  %v3503_v45 = vadd.f32 1.0, %v6840_v52  ;;  %v6138_v49 = vadd.f32 %v3092_v32, %v8793_v48  ;;  %v3314_v21 = vmul.f32 0.70710677, %v6088_v17  ;;  %v6089_v12 = vadd.f32 %v2772_v59, %v8783_v51 }
 0x448   : > { %v6844_v60 = vpop.eup %6843  ;;  %v3601_v20 = vmul.f32 %v3501_v26, %v3201_v54  ;;  %v3502_v46 = vadd.f32 1.0, %v6842_v40  ;;  %10527 = vst [vmem:[#allocation75_spill] sm:$0xff] %v8851_v57  ;;  %v3315_v54 = vmul.f32 0.70710677, %v6137_v23  ;;  %v6139_v7 = vadd.f32 %v3094_v9, %v8787_v53 }
 0x449   : > { %v6846_v15 = vpop.eup %6845  ;;  %v3603_v43 = vmul.f32 %v3503_v45, %v3203_v11  ;;  %v2778_v47 = vpop.f32.mrb[12].mxu0  ;;  %v3504_v61 = vadd.f32 1.0, %v6844_v60  ;;  %v8865_v26 = vmul.f32 0.5, %v6087_v0  ;;  %v8867_v45 = vmul.f32 0.5, %v6137_v23 }
 0x44a   : > { %v6848_v63 = vpop.eup %6847  ;;  %v8833_v24 = vpack.c.bf16 %v3601_v20, %v3597_v3  ;;  %v8840_v56 = vpop.f32.mrb[12].mxu1  ;;  %v3505_v2 = vadd.f32 1.0, %v6846_v15  ;;  %v3602_v52 = vmul.f32 %v3502_v46, %v8816_v6  ;;  %6863 = verf.f32 %v3315_v54 }
 0x44b   : > { %v6850_v31 = vpop.eup %6849  ;;  %v8842_v50 = vpack.c.bf16 %v3603_v43, %v3599_v29  ;;  %v2780_v8 = vpop.f32.mrb[13].mxu0  ;;  %v3507_v38 = vadd.f32 1.0, %v6848_v63  ;;  %v3316_v32 = vmul.f32 0.70710677, %v6138_v49  ;;  %v3317_v34 = vmul.f32 0.70710677, %v6089_v12 }
 0x44c   : > { %v8846_v35 = vpop.f32.mrb[13].mxu1  ;;  %v6852_v37 = vpop.eup %6851  ;;  %v3506_v3 = vadd.f32 1.0, %v6850_v31  ;;  %v8870_v18 = vmul.f32 %v3504_v61, %v8818_v62  ;;  %v8873_v59 = vmul.f32 %v3505_v2, %v8820_v25  ;;  %v8875_v9 = vmul.f32 0.5, %v6088_v17 }
 0x44d   : > { %10526 = vst [vmem:[#allocation74_spill] sm:$0xff] %v8842_v50  ;;  %v2782_v11 = vpop.f32.mrb[14].mxu0  ;;  %v8855_v5 = vpop.f32.mrb[14].mxu1  ;;  %v3508_v13 = vadd.f32 1.0, %v6852_v37  ;;  %v3319_v6 = vmul.f32 0.70710677, %v6139_v7  ;;  %v8878_v0 = vmul.f32 %v3507_v38, %v8822_v14  ;;  %6865 = verf.f32 %v3314_v21 }
 0x44e   : > { %v8858_v4 = vpop.f32.mrb[15].mxu0  ;;  %v8860_v27 = vpop.f32.mrb[15].mxu1  ;;  %10528 = vst [vmem:[#allocation76_spill] sm:$0xff] %v8870_v18  ;;  %v6090_v23 = vadd.f32 %v8826_v30, %v8791_v41  ;;  %v6140_v15 = vadd.f32 %v8828_v28, %v8793_v48  ;;  %v8889_v25 = vmul.f32 %v3506_v3, %v8824_v22  ;;  %6867 = verf.f32 %v3316_v32  ;;  %v6766_v32 = vld [vmem:[%s7696_s12 + $0x180] ss:$12 sps:$4 sm:$0xff]  }
 0x44f   : > { %v6854_v40 = vpop.eup %6853  ;;  %10529 = vst [vmem:[#allocation77_spill] sm:$0xff] %v8878_v0  ;;  %v8891_v43 = vmul.f32 %v3508_v13, %v3208_v36  ;;  %v8894_v14 = vadd.f32 %v2778_v47, %v8783_v51  ;;  %v8900_v17 = vmul.f32 0.5, %v6138_v49  ;;  %6869 = verf.f32 %v3317_v34  ;;  %v6769_v34 = vld [vmem:[%s7696_s12 + $0x188] ss:$12 sps:$4 sm:$0xff]   ;;  %v6774_v50 = vld [vmem:[%s7696_s12 + $0x1b0] ss:$12 sps:$4 sm:$0xff]  }
 0x450   : > { %v6856_v60 = vpop.eup %6855  ;;  %v3509_v30 = vadd.f32 1.0, %v6854_v40  ;;  %v3318_v28 = vmul.f32 0.70710677, %v6090_v23  ;;  %6871 = verf.f32 %v3319_v6  ;;  %v3320_v47 = vmul.f32 0.70710677, %v6140_v15 }
 0x451   : > { %v6858_v20 = vpop.eup %6857  ;;  %v8884_v29 = vpop.f32.mrb[16].mxu0  ;;  %10530 = vst [vmem:[#allocation78_spill] sm:$0xff] %v8891_v43  ;;  %v3511_v36 = vadd.f32 1.0, %v6856_v60  ;;  %v8908_v61 = vmul.f32 0.5, %v6089_v12  ;;  %v3321_v2 = vmul.f32 0.70710677, %v8894_v14  ;;  %v6141_v49 = vadd.f32 %v8840_v56, %v8787_v53 }
 0x452   : > { %v8886_v62 = vpop.f32.mrb[16].mxu1  ;;  %v8896_v33 = vpop.f32.mrb[17].mxu0  ;;  %v3510_v37 = vadd.f32 1.0, %v6858_v20  ;;  %v6092_v38 = vadd.f32 %v2780_v8, %v8791_v41  ;;  %6873 = verf.f32 %v3318_v28  ;;  %v6142_v13 = vadd.f32 %v8846_v35, %v8793_v48  ;;  %v6772_v60 = vld [vmem:[%s7696_s12 + $0x19c] ss:$12 sps:$4 sm:$0xff]  }
 0x453   : > { %v8898_v63 = vpop.f32.mrb[17].mxu1  ;;  %v8902_v31 = vpop.f32.mrb[18].mxu0  ;;  %v3698_v40 = vpack.c.bf16 %v3602_v52, %v8849_v16  ;;  %v8920_v12 = vadd.f32 %v2782_v11, %v8783_v51  ;;  %v8926_v56 = vmul.f32 %v3509_v30, %v8835_v42  ;;  %6875 = verf.f32 %v3320_v47  ;;  %v6773_v20 = vld [vmem:[%s7696_s12 + $0x260] ss:$12 sps:$4 sm:$0xff]   ;;  %v6770_v52 = vld [vmem:[%s7696_s12 + $0x198] ss:$12 sps:$4 sm:$0xff]  }
 0x454   : > { %v8904_v46 = vpop.f32.mrb[18].mxu1  ;;  %v6860_v22 = vpop.eup %6859  ;;  %v3323_v6 = vmul.f32 0.70710677, %v6141_v49  ;;  %v8930_v28 = vmul.f32 %v3511_v36, %v8837_v44  ;;  %v8933_v35 = vmul.f32 %v3510_v37, %v8844_v10  ;;  %v8935_v16 = vmul.f32 0.5, %v6139_v7 }
 0x455   : > { %v8906_v54 = vpop.f32.mrb[19].mxu0  ;;  %v8914_v21 = vpop.f32.mrb[19].mxu1  ;;  %v3512_v8 = vadd.f32 1.0, %v6860_v22  ;;  %v3322_v11 = vmul.f32 0.70710677, %v6092_v38  ;;  %4421 = vmatprep.mubr.bf16.mxu0 %v3698_v40  ;;  %4743 = vmatprep.mubr.bf16.mxu1 %v3698_v40  ;;  %v8939_v30 = vmul.f32 0.5, %v6090_v23  ;;  %6877 = verf.f32 %v3321_v2 }
 0x456   : > { %v6862_v3 = vpop.eup %6861  ;;  %10531 = vst [vmem:[#allocation79_spill] sm:$0xff] %v8930_v28  ;;  %v3324_v22 = vmul.f32 0.70710677, %v6142_v13  ;;  %4422 = vmatmul.mubr.bf16.vlgmr.msra.gmra.mrb[52].mxu0 %v8833_v24  ;;  %4744 = vmatmul.mubr.bf16.vlgmr.msra.gmra.mrb[52].mxu1 %v8833_v24  ;;  %v8947_v7 = vmul.f32 0.5, %v6140_v15  ;;  %6879 = verf.f32 %v3323_v6  ;;  %v3325_v36 = vmul.f32 0.70710677, %v8920_v12 }
 0x457   : > { %v6864_v1 = vpop.eup %6863  ;;  %v3513_v42 = vadd.f32 1.0, %v6862_v3  ;;  %v6143_v23 = vadd.f32 %v8855_v5, %v8787_v53  ;;  %5986 = vmatpush3.bf16.msra.mxu1 %v6769_v34  ;;  %4551 = vmatpush1.bf16.msra.mxu0 %v6766_v32  ;;  %v8957_v2 = vmul.f32 %v3512_v8, %v8853_v39  ;;  %6881 = verf.f32 %v3322_v11  ;;  %v6776_v5 = vld [vmem:[%s7696_s12 + $0x1b4] ss:$12 sps:$4 sm:$0xff]   ;;  %v6781_v34 = vld [vmem:[%s7696_s12 + $0x278] ss:$12 sps:$4 sm:$0xff]  }
 0x458   : > { %v6866_v24 = vpop.eup %6865  ;;  %v6094_v15 = vadd.f32 %v8858_v4, %v8791_v41  ;;  %v6144_v3 = vadd.f32 %v8860_v27, %v8793_v48  ;;  %4552 = vmatprep.subr.bf16.mxu0 %v6772_v60  ;;  %5987 = vmatprep.subr.bf16.mxu1 %v6773_v20  ;;  %v3515_v55 = vadd.f32 1.0, %v6864_v1  ;;  %v8970_v39 = vmul.f32 0.5, %v8894_v14 }
 0x459   : > { %v8943_v44 = vpop.f32.mrb[20].mxu0  ;;  %v8945_v10 = vpop.f32.mrb[20].mxu1  ;;  %10532 = vst [vmem:[#allocation80_spill] sm:$0xff] %v8957_v2  ;;  %6883 = verf.f32 %v3324_v22  ;;  %v3327_v8 = vmul.f32 0.70710677, %v6143_v23  ;;  %v8977_v20 = vmul.f32 %v3513_v42, %v8865_v26  ;;  %v8979_v11 = vmul.f32 0.5, %v6141_v49 }
 0x45a   : > { %v8952_v37 = vpop.f32.mrb[21].mxu0  ;;  %v8954_v47 = vpop.f32.mrb[21].mxu1  ;;  %v8981_v19 = vmul.f32 0.5, %v6092_v38  ;;  %v3326_v1 = vmul.f32 0.70710677, %v6094_v15  ;;  %v3514_v22 = vadd.f32 1.0, %v6866_v24  ;;  %6885 = verf.f32 %v3325_v36 }
 0x45b   : > { %v8964_v40 = vpop.f32.mrb[22].mxu0  ;;  %v8966_v32 = vpop.f32.mrb[22].mxu1  ;;  %v8984_v28 = vmul.f32 0.5, %v6142_v13  ;;  %v3328_v0 = vmul.f32 0.70710677, %v6144_v3  ;;  %4553 = vmatpush1.bf16.msra.mxu0 %v6770_v52  ;;  %5988 = vmatpush3.bf16.msra.mxu1 %v6777_v58  ;;  %6887 = verf.f32 %v3327_v8  ;;  %v6095_v26 = vadd.f32 %v8884_v29, %v8783_v51 }
 0x45c   : > { %v6868_v6 = vpop.eup %6867  ;;  %v8972_v4 = vpop.f32.mrb[23].mxu0  ;;  %v6785_v2 = vld [vmem:[%s7696_s12 + $0x1b8] ss:$12 sps:$4 sm:$0xff]   ;;  %v6145_v49 = vadd.f32 %v8886_v62, %v8787_v53  ;;  %4554 = vmatprep.subr.bf16.mxu0 %v6776_v5  ;;  %5989 = vmatprep.subr.bf16.mxu1 %v6781_v34  ;;  %v6789_v42 = vld [vmem:[%s7696_s12 + $0x290] ss:$12 sps:$4 sm:$0xff]   ;;  %v8994_v36 = vmul.f32 %v3515_v55, %v8867_v45  ;;  %v8997_v58 = vmul.f32 0.5, %v8920_v12  ;;  %6889 = verf.f32 %v3326_v1 }
 0x45d   : > { %v8974_v27 = vpop.f32.mrb[23].mxu1  ;;  %v6870_v60 = vpop.eup %6869  ;;  %v3516_v43 = vadd.f32 1.0, %v6868_v6  ;;  %v6780_v38 = vld [vmem:[%s7696_s12 + $0x1cc] ss:$12 sps:$4 sm:$0xff]   ;;  %6891 = verf.f32 %v3328_v0  ;;  %v3329_v6 = vmul.f32 0.70710677, %v6095_v26  ;;  %v6096_v62 = vadd.f32 %v8896_v33, %v8791_v41 }
 0x45e   : > { %v6872_v14 = vpop.eup %6871  ;;  %10533 = vst [vmem:[#allocation81_spill] sm:$0xff] %v8994_v36  ;;  %v3517_v52 = vadd.f32 1.0, %v6870_v60  ;;  %v6778_v5 = vld [vmem:[%s7696_s12 + $0x1c8] ss:$12 sps:$4 sm:$0xff]   ;;  %v9005_v8 = vmul.f32 %v3514_v22, %v8875_v9  ;;  %v9007_v55 = vmul.f32 0.5, %v6143_v23  ;;  %v9009_v45 = vmul.f32 0.5, %v6094_v15 }
 0x45f   : > { %v6874_v13 = vpop.eup %6873  ;;  %v3519_v29 = vadd.f32 1.0, %v6872_v14  ;;  %v3331_v12 = vmul.f32 0.70710677, %v6145_v49  ;;  %4555 = vmatpush1.bf16.msra.mxu0 %v6774_v50  ;;  %v6784_v1 = vld [vmem:[%s7696_s12 + $0x1e4] ss:$12 sps:$4 sm:$0xff]   ;;  %5990 = vmatpush3.bf16.msra.mxu1 %v6785_v2  ;;  %v9017_v14 = vmul.f32 %v3516_v43, %v8900_v17  ;;  %v9019_v22 = vmul.f32 0.5, %v6144_v3 }
 0x460   : > { %v6876_v24 = vpop.eup %6875  ;;  %v3518_v9 = vadd.f32 1.0, %v6874_v13  ;;  %v6146_v23 = vadd.f32 %v8898_v63, %v8793_v48  ;;  %4556 = vmatprep.subr.bf16.mxu0 %v6780_v38  ;;  %5991 = vmatprep.subr.bf16.mxu1 %v6789_v42  ;;  %v6793_v36 = vld [vmem:[%s7696_s12 + $0x1d0] ss:$12 sps:$4 sm:$0xff]   ;;  %v9029_v2 = vmul.f32 %v3517_v52, %v8908_v61  ;;  %6893 = verf.f32 %v3329_v6  ;;  %v6797_v38 = vld [vmem:[%s7696_s12 + $0x2a8] ss:$12 sps:$4 sm:$0xff]  }
 0x461   : > { %v9002_v34 = vpop.f32.mrb[24].mxu0  ;;  %v9011_v60 = vpop.f32.mrb[24].mxu1  ;;  %10534 = vst [vmem:[#allocation82_spill] sm:$0xff] %v9017_v14  ;;  %v3520_v43 = vadd.f32 1.0, %v6876_v24  ;;  %v3702_v17 = vpack.c.bf16 %v8933_v35, %v8889_v25  ;;  %v9039_v14 = vmul.f32 %v3519_v29, %v8935_v16  ;;  %v9041_v42 = vmul.f32 0.5, %v6095_v26 }
 0x462   : > { %v9013_v0 = vpop.f32.mrb[25].mxu0  ;;  %v6878_v33 = vpop.eup %6877  ;;  %6895 = verf.f32 %v3331_v12  ;;  %v3330_v61 = vmul.f32 0.70710677, %v6096_v62  ;;  %v3332_v35 = vmul.f32 0.70710677, %v6146_v23  ;;  %v9047_v6 = vadd.f32 %v8902_v31, %v8783_v51 }
 0x463   : > { %v9023_v15 = vpop.f32.mrb[25].mxu1  ;;  %v9025_v50 = vpop.f32.mrb[26].mxu0  ;;  %10536 = vst [vmem:[#allocation84_spill] sm:$0xff] %v9039_v14  ;;  %v3521_v25 = vadd.f32 1.0, %v6878_v33  ;;  %4431 = vmatprep.mubr.bf16.mxu0 %v3702_v17  ;;  %4751 = vmatprep.mubr.bf16.mxu1 %v3702_v17  ;;  %v9051_v16 = vadd.f32 %v8904_v46, %v8787_v53  ;;  %v6782_v26 = vld [vmem:[%s7696_s12 + $0x1e0] ss:$12 sps:$4 sm:$0xff]   ;;  %v9055_v29 = vmul.f32 %v3518_v9, %v8939_v30 }
 0x464   : > { %v6880_v18 = vpop.eup %6879  ;;  %v9033_v3 = vpop.f32.mrb[26].mxu1  ;;  %v9057_v14 = vmul.f32 0.5, %v6145_v49  ;;  %v3701_v33 = vpack.c.bf16 %v8926_v56, %v8873_v59  ;;  %4557 = vmatpush1.bf16.msra.mxu0 %v6778_v5  ;;  %v6788_v17 = vld [vmem:[%s7696_s12 + $0x1fc] ss:$12 sps:$4 sm:$0xff]   ;;  %5992 = vmatpush3.bf16.msra.mxu1 %v6793_v36  ;;  %v3333_v30 = vmul.f32 0.70710677, %v9047_v6  ;;  %6897 = verf.f32 %v3330_v61 }
 0x465   : > { %v9035_v63 = vpop.f32.mrb[27].mxu0  ;;  %v6882_v13 = vpop.eup %6881  ;;  %v3523_v12 = vadd.f32 1.0, %v6880_v18  ;;  %v6801_v31 = vld [vmem:[%s7696_s12 + $0x1e8] ss:$12 sps:$4 sm:$0xff]   ;;  %4558 = vmatprep.subr.bf16.mxu0 %v6784_v1  ;;  %5993 = vmatprep.subr.bf16.mxu1 %v6797_v38  ;;  %v6805_v18 = vld [vmem:[%s7696_s12 + $0x2c0] ss:$12 sps:$4 sm:$0xff]   ;;  %v6098_v56 = vadd.f32 %v8906_v54, %v8791_v41  ;;  %v9079_v1 = vmul.f32 %v3521_v25, %v8970_v39  ;;  %6899 = verf.f32 %v3332_v35 }
 0x466   : > { %10535 = vst [vmem:[#allocation83_spill] sm:$0xff] %v9035_v63  ;;  %v9043_v52 = vpop.f32.mrb[27].mxu1  ;;  %v6884_v24 = vpop.eup %6883  ;;  %v3522_v46 = vadd.f32 1.0, %v6882_v13  ;;  %v9066_v63 = vmul.f32 0.5, %v6096_v62  ;;  %v3335_v59 = vmul.f32 0.70710677, %v9051_v16  ;;  %4432 = vmatmul.mubr.bf16.gmra.mrb[56].mxu0 %v3701_v33  ;;  %4752 = vmatmul.mubr.bf16.gmra.mrb[56].mxu1 %v3701_v33  ;;  %v6148_v38 = vadd.f32 %v8914_v21, %v8793_v48 }
 0x467   : > { %10537 = vst [vmem:[#allocation85_spill] sm:$0xff] %v9043_v52  ;;  %v6886_v57 = vpop.eup %6885  ;;  %v9064_v52 = vmul.f32 %v3520_v43, %v8947_v7  ;;  %v3524_v9 = vadd.f32 1.0, %v6884_v24  ;;  %v6786_v62 = vld [vmem:[%s7696_s12 + $0x1f8] ss:$12 sps:$4 sm:$0xff]   ;;  %v9081_v43 = vmul.f32 0.5, %v6146_v23  ;;  %6901 = verf.f32 %v3333_v30 }
 0x468   : > { %v6888_v49 = vpop.eup %6887  ;;  %v6792_v54 = vld [vmem:[%s7696_s12 + $0x214] ss:$12 sps:$4 sm:$0xff]   ;;  %v9096_v39 = vadd.f32 %v8943_v44, %v8783_v51  ;;  %4559 = vmatpush1.bf16.msra.mxu0 %v6782_v26  ;;  %5994 = vmatpush3.bf16.msra.mxu1 %v6801_v31  ;;  %v6813_v25 = vld [vmem:[%s7696_s12 + $0x2d8] ss:$12 sps:$4 sm:$0xff]   ;;  %6903 = verf.f32 %v3335_v59 }
 0x469   : > { %10538 = vst [vmem:[#allocation86_spill] sm:$0xff] %v9064_v52  ;;  %v9073_v7 = vpop.f32.mrb[28].mxu0  ;;  %v9075_v36 = vpop.f32.mrb[28].mxu1  ;;  %v6809_v24 = vld [vmem:[%s7696_s12 + $0x200] ss:$12 sps:$4 sm:$0xff]   ;;  %v9092_v52 = vmul.f32 %v3523_v12, %v8979_v11  ;;  %v3527_v35 = vadd.f32 1.0, %v6888_v49  ;;  %4560 = vmatprep.subr.bf16.mxu0 %v6788_v17  ;;  %5995 = vmatprep.subr.bf16.mxu1 %v6805_v18  ;;  %v9109_v44 = vmul.f32 %v3524_v9, %v8984_v28 }
 0x46a   : > { %10539 = vst [vmem:[#allocation87_spill] sm:$0xff] %v9075_v36  ;;  %v6890_v5 = vpop.eup %6889  ;;  %v9085_v13 = vpop.f32.mrb[29].mxu0  ;;  %v3525_v36 = vadd.f32 1.0, %v6886_v57  ;;  %v9106_v57 = vmul.f32 %v3522_v46, %v8981_v19  ;;  %v6149_v12 = vadd.f32 %v8945_v10, %v8787_v53  ;;  %v9117_v17 = vadd.f32 %v8952_v37, %v8791_v41  ;;  %v6790_v28 = vld [vmem:[%s7696_s12 + $0x210] ss:$12 sps:$4 sm:$0xff]  }
 0x46b   : > { %10540 = vst [vmem:[#allocation88_spill] sm:$0xff] %v9085_v13  ;;  %v9087_v61 = vpop.f32.mrb[29].mxu1  ;;  %v6892_v33 = vpop.eup %6891  ;;  %10542 = vst [vmem:[#allocation90_spill] sm:$0xff] %v9092_v52  ;;  %v3336_v13 = vmul.f32 0.70710677, %v6148_v38  ;;  %v3526_v26 = vadd.f32 1.0, %v6890_v5  ;;  %v9121_v19 = vadd.f32 %v8954_v47, %v8793_v48  ;;  %v9136_v47 = vmul.f32 %v3527_v35, %v9007_v55 }
 0x46c   : > { %10541 = vst [vmem:[#allocation89_spill] sm:$0xff] %v9087_v61  ;;  %v9098_v23 = vpop.f32.mrb[30].mxu0  ;;  %v9100_v21 = vpop.f32.mrb[30].mxu1  ;;  %v3334_v61 = vmul.f32 0.70710677, %v6098_v56  ;;  %10543 = vst [vmem:[#allocation91_spill] sm:$0xff] %v9109_v44  ;;  %v9125_v18 = vmul.f32 %v3525_v36, %v8997_v58  ;;  %4561 = vmatpush1.bf16.msra.mxu0 %v6786_v62  ;;  %5996 = vmatpush3.bf16.msra.mxu1 %v6809_v24 }
 0x46d   : > { %v9103_v11 = vpop.f32.mrb[31].mxu0  ;;  %v9113_v31 = vpop.f32.mrb[31].mxu1  ;;  %v3528_v49 = vadd.f32 1.0, %v6892_v33  ;;  %v9128_v10 = vmul.f32 0.5, %v9047_v6  ;;  %v9131_v9 = vmul.f32 0.5, %v9051_v16  ;;  %10544 = vst [vmem:[#allocation92_spill] sm:$0xff] %v9136_v47  ;;  %4562 = vmatprep.subr.bf16.mxu0 %v6792_v54  ;;  %5997 = vmatprep.subr.bf16.mxu1 %v6813_v25  ;;  %v9143_v36 = vmul.f32 %v3526_v26, %v9009_v45 }
 0x46e   : > { %v6894_v30 = vpop.eup %6893  ;;  %6905 = verf.f32 %v3334_v61  ;;  %v3337_v37 = vmul.f32 0.70710677, %v9096_v39  ;;  %v6817_v59 = vld [vmem:[%s7696_s12 + $0x218] ss:$12 sps:$4 sm:$0xff]   ;;  %v9138_v5 = vmul.f32 0.5, %v6098_v56  ;;  %v9145_v33 = vmul.f32 0.5, %v6148_v38 }
 0x46f   : > { %v6896_v46 = vpop.eup %6895  ;;  %6907 = verf.f32 %v3336_v13  ;;  %v3339_v61 = vmul.f32 0.70710677, %v6149_v12  ;;  %v6796_v58 = vld [vmem:[%s7696_s12 + $0x22c] ss:$12 sps:$4 sm:$0xff]   ;;  %v6821_v6 = vld [vmem:[%s7696_s12 + $0x2f0] ss:$12 sps:$4 sm:$0xff]   ;;  %v9153_v56 = vmul.f32 %v3528_v49, %v9019_v22  ;;  %v3706_v45 = vpack.c.bf16 %v9055_v29, %v9005_v8 }
 0x470   : > { %v3529_v16 = vadd.f32 1.0, %v6894_v30  ;;  %v3338_v62 = vmul.f32 0.70710677, %v9117_v17  ;;  %v3531_v13 = vadd.f32 1.0, %v6896_v46  ;;  %v3340_v54 = vmul.f32 0.70710677, %v9121_v19  ;;  %v6898_v35 = vpop.eup %6897  ;;  %4563 = vmatpush1.bf16.msra.mxu0 %v6790_v28  ;;  %5998 = vmatpush3.bf16.msra.mxu1 %v6817_v59 }
 0x471   : > { %v9148_v24 = vpop.f32.mrb[32].mxu0  ;;  %v9150_v55 = vpop.f32.mrb[32].mxu1  ;;  %10545 = vst [vmem:[#allocation93_spill] sm:$0xff] %v9153_v56  ;;  %6909 = verf.f32 %v3337_v37  ;;  %v6101_v26 = vadd.f32 %v8964_v40, %v8783_v51  ;;  %v9166_v22 = vadd.f32 %v8966_v32, %v8787_v53  ;;  %v3705_v30 = vpack.c.bf16 %v9029_v2, %v8977_v20  ;;  %v6794_v29 = vld [vmem:[%s7696_s12 + $0x228] ss:$12 sps:$4 sm:$0xff]   ;;  %4441 = vmatprep.mubr.bf16.mxu0 %v3706_v45 }
 0x472   : > { %v9158_v25 = vpop.f32.mrb[33].mxu0  ;;  %v9160_v38 = vpop.f32.mrb[33].mxu1  ;;  %v6825_v46 = vld [vmem:[%s7696_s12 + $0x230] ss:$12 sps:$4 sm:$0xff]   ;;  %v9177_v47 = vmul.f32 0.5, %v9096_v39  ;;  %v9179_v40 = vmul.f32 0.5, %v6149_v12  ;;  %6911 = verf.f32 %v3339_v61  ;;  %4759 = vmatprep.mubr.bf16.mxu1 %v3706_v45  ;;  %v6102_v32 = vadd.f32 %v8972_v4, %v8791_v41  ;;  %4564 = vmatprep.subr.bf16.mxu0 %v6796_v58 }
 0x473   : > { %v9170_v49 = vpop.f32.mrb[34].mxu0  ;;  %v9172_v8 = vpop.f32.mrb[34].mxu1  ;;  %v6800_v28 = vld [vmem:[%s7696_s12 + $0x244] ss:$12 sps:$4 sm:$0xff]   ;;  %v9189_v59 = vmul.f32 %v3529_v16, %v9041_v42  ;;  %6913 = verf.f32 %v3338_v62  ;;  %v3341_v39 = vmul.f32 0.70710677, %v6101_v26  ;;  %4442 = vmatmul.mubr.bf16.gmra.mrb[60].mxu0 %v3705_v30  ;;  %4760 = vmatmul.mubr.bf16.gmra.mrb[60].mxu1 %v3705_v30  ;;  %v6152_v12 = vadd.f32 %v8974_v27, %v8793_v48 }
 0x474   : > { %v6900_v37 = vpop.eup %6899  ;;  %v9183_v20 = vpop.f32.mrb[35].mxu0  ;;  %v3530_v45 = vadd.f32 1.0, %v6898_v35  ;;  %6915 = verf.f32 %v3340_v54  ;;  %v3343_v4 = vmul.f32 0.70710677, %v9166_v22  ;;  %v3342_v56 = vmul.f32 0.70710677, %v6102_v32  ;;  %5999 = vmatprep.subr.bf16.mxu1 %v6821_v6  ;;  %4565 = vmatpush1.bf16.msra.mxu0 %v6794_v29 }
 0x475   : > { %v9185_v2 = vpop.f32.mrb[35].mxu1  ;;  %v6902_v52 = vpop.eup %6901  ;;  %v9195_v42 = vmul.f32 %v3531_v13, %v9057_v14  ;;  %v3532_v16 = vadd.f32 1.0, %v6900_v37  ;;  %v9198_v62 = vmul.f32 0.5, %v9117_v17  ;;  %6917 = verf.f32 %v3341_v39  ;;  %v6798_v27 = vld [vmem:[%s7696_s12 + $0x240] ss:$12 sps:$4 sm:$0xff]   ;;  %6000 = vmatpush3.bf16.msra.mxu1 %v6825_v46  ;;  %4566 = vmatprep.subr.bf16.mxu0 %v6800_v28 }
 0x476   : > { %v6904_v61 = vpop.eup %6903  ;;  %v3533_v54 = vadd.f32 1.0, %v6902_v52  ;;  %6919 = verf.f32 %v3343_v4  ;;  %v6103_v30 = vadd.f32 %v9002_v34, %v8783_v51  ;;  %v6153_v58 = vadd.f32 %v9011_v60, %v8787_v53  ;;  %v6804_v14 = vld [vmem:[%s7696_s12 + $0x25c] ss:$12 sps:$4 sm:$0xff]   ;;  %v6802_v52 = vld [vmem:[%s7696_s12 + $0x258] ss:$12 sps:$4 sm:$0xff]  }
 0x477   : > { %10546 = vst [vmem:[#allocation94_spill] sm:$0xff] %v9195_v42  ;;  %v3535_v6 = vadd.f32 1.0, %v6904_v61  ;;  %6921 = verf.f32 %v3342_v56  ;;  %v3344_v17 = vmul.f32 0.70710677, %v6152_v12  ;;  %v9208_v13 = vadd.f32 %v9013_v0, %v8791_v41 }
 0x478   : > { %v6906_v35 = vpop.eup %6905  ;;  %v9216_v34 = vmul.f32 %v3530_v45, %v9066_v63  ;;  %v9219_v60 = vmul.f32 0.5, %v9121_v19  ;;  %v3345_v28 = vmul.f32 0.70710677, %v6103_v30  ;;  %v9223_v56 = vadd.f32 %v9023_v15, %v8793_v48  ;;  %4567 = vmatpush1.bf16.msra.mxu0 %v6798_v27 }
 0x479   : > { %v9210_v29 = vpop.f32.mrb[36].mxu0  ;;  %v9212_v46 = vpop.f32.mrb[36].mxu1  ;;  %v9230_v61 = vmul.f32 %v3532_v16, %v9081_v43  ;;  %v3534_v4 = vadd.f32 1.0, %v6906_v35  ;;  %v9232_v42 = vmul.f32 0.5, %v6101_v26  ;;  %v3347_v63 = vmul.f32 0.70710677, %v6153_v58  ;;  %4568 = vmatprep.subr.bf16.mxu0 %v6804_v14 }
 0x47a   : > { %v6908_v37 = vpop.eup %6907  ;;  %v9225_v39 = vpop.f32.mrb[37].mxu0  ;;  %v9239_v15 = vmul.f32 %v3533_v54, %v9128_v10  ;;  %v9242_v44 = vmul.f32 0.5, %v9166_v22  ;;  %v9246_v43 = vmul.f32 0.5, %v6152_v12  ;;  %6923 = verf.f32 %v3344_v17  ;;  %v6808_v22 = vld [vmem:[%s7696_s12 + $0x274] ss:$12 sps:$4 sm:$0xff]  }
 0x47b   : > { %v9227_v0 = vpop.f32.mrb[37].mxu1  ;;  %10548 = vst [vmem:[#allocation96_spill] sm:$0xff] %v9230_v61  ;;  %v9234_v45 = vpop.f32.mrb[38].mxu0  ;;  %v9253_v61 = vmul.f32 %v3535_v6, %v9131_v9  ;;  %v3536_v27 = vadd.f32 1.0, %v6908_v37  ;;  %v3346_v10 = vmul.f32 0.70710677, %v9208_v13  ;;  %6925 = verf.f32 %v3345_v28 }
 0x47c   : > { %10547 = vst [vmem:[#allocation95_spill] sm:$0xff] %v9227_v0  ;;  %v9236_v19 = vpop.f32.mrb[38].mxu1  ;;  %v9244_v0 = vmul.f32 0.5, %v6102_v32  ;;  %v9248_v16 = vpop.f32.mrb[39].mxu0  ;;  %v9257_v32 = vmul.f32 0.5, %v6103_v30  ;;  %v3710_v14 = vpack.c.bf16 %v9143_v36, %v9106_v57  ;;  %v9263_v9 = vmul.f32 %v3534_v4, %v9138_v5  ;;  %4569 = vmatpush1.bf16.msra.mxu0 %v6802_v52  ;;  %v10552_v5 = vld [vmem:[#allocation83_spill] sm:$0xff] }
 0x47d   : > { %10549 = vst [vmem:[#allocation97_spill] sm:$0xff] %v9248_v16  ;;  %v9250_v26 = vpop.f32.mrb[39].mxu1  ;;  %v6910_v35 = vpop.eup %6909  ;;  %10551 = vst [vmem:[#allocation99_spill] sm:$0xff] %v9253_v61  ;;  %v3348_v12 = vmul.f32 0.70710677, %v9223_v56  ;;  %6927 = verf.f32 %v3347_v63  ;;  %v6105_v6 = vadd.f32 %v9025_v50, %v8783_v51  ;;  %v6155_v17 = vadd.f32 %v9033_v3, %v8787_v53  ;;  %4570 = vmatprep.subr.bf16.mxu0 %v6808_v22 }
 0x47e   : > { %10550 = vst [vmem:[#allocation98_spill] sm:$0xff] %v9250_v26  ;;  %v6912_v54 = vpop.eup %6911  ;;  %v6806_v30 = vld [vmem:[%s7696_s12 + $0x270] ss:$12 sps:$4 sm:$0xff]   ;;  %v3537_v28 = vadd.f32 1.0, %v6910_v35  ;;  %v9270_v61 = vmul.f32 0.5, %v6153_v58  ;;  %4451 = vmatprep.mubr.bf16.mxu0 %v3710_v14  ;;  %4767 = vmatprep.mubr.bf16.mxu1 %v3710_v14  ;;  %v3709_v57 = vpack.c.bf16 %v9125_v18, %v9079_v1  ;;  %v6106_v36 = vadd.f32 %v10552_v5, %v8791_v41 }
 0x47f   : > { %v6914_v26 = vpop.eup %6913  ;;  %v6812_v4 = vld [vmem:[%s7696_s12 + $0x28c] ss:$12 sps:$4 sm:$0xff]   ;;  %v9278_v50 = vmul.f32 %v3536_v27, %v9145_v33  ;;  %v3539_v3 = vadd.f32 1.0, %v6912_v54  ;;  %6929 = verf.f32 %v3346_v10  ;;  %v3349_v52 = vmul.f32 0.70710677, %v6105_v6  ;;  %v10555_v27 = vld [vmem:[#allocation85_spill] sm:$0xff] }
 0x480   : > { %v6916_v37 = vpop.eup %6915  ;;  %v3538_v14 = vadd.f32 1.0, %v6914_v26  ;;  %6931 = verf.f32 %v3348_v12  ;;  %v3351_v1 = vmul.f32 0.70710677, %v6155_v17  ;;  %4452 = vmatmul.mubr.bf16.gmra.mrb[64].mxu0 %v3709_v57  ;;  %4768 = vmatmul.mubr.bf16.gmra.mrb[64].mxu1 %v3709_v57  ;;  %v3350_v18 = vmul.f32 0.70710677, %v6106_v36 }
 0x481   : > { %v6918_v63 = vpop.eup %6917  ;;  %10553 = vst [vmem:[#allocation83_spill] sm:$0xff] %v9278_v50  ;;  %v9280_v16 = vpop.f32.mrb[40].mxu0  ;;  %v3540_v33 = vadd.f32 1.0, %v6916_v37  ;;  %6933 = verf.f32 %v3349_v52  ;;  %v6156_v10 = vadd.f32 %v10555_v27, %v8793_v48  ;;  %v9288_v54 = vadd.f32 %v9073_v7, %v8783_v51  ;;  %4571 = vmatpush1.bf16.msra.mxu0 %v6806_v30  ;;  %v6810_v26 = vld [vmem:[%s7696_s12 + $0x288] ss:$12 sps:$4 sm:$0xff]   ;;  %v10558_v37 = vld [vmem:[#allocation87_spill] sm:$0xff] }
 0x482   : > { %v9282_v58 = vpop.f32.mrb[40].mxu1  ;;  %v6920_v35 = vpop.eup %6919  ;;  %v9296_v12 = vmul.f32 %v3537_v28, %v9177_v47  ;;  %v9299_v57 = vmul.f32 0.5, %v9208_v13  ;;  %6935 = verf.f32 %v3351_v1  ;;  %v9303_v52 = vadd.f32 %v10558_v37, %v8787_v53  ;;  %4572 = vmatprep.subr.bf16.mxu0 %v6812_v4 }
 0x483   : > { %10554 = vst [vmem:[#allocation100_spill] sm:$0xff] %v9282_v58  ;;  %v6922_v5 = vpop.eup %6921  ;;  %v9290_v22 = vpop.f32.mrb[41].mxu0  ;;  %v3543_v30 = vadd.f32 1.0, %v6920_v35  ;;  %v9311_v58 = vmul.f32 0.5, %v9223_v56  ;;  %6937 = verf.f32 %v3350_v18  ;;  %v9318_v28 = vmul.f32 %v3539_v3, %v9179_v40  ;;  %v10563_v3 = vld [vmem:[#allocation88_spill] sm:$0xff] }
 0x484   : > { %10556 = vst [vmem:[#allocation85_spill] sm:$0xff] %v9290_v22  ;;  %v9292_v50 = vpop.f32.mrb[41].mxu1  ;;  %v9305_v27 = vpop.f32.mrb[42].mxu0  ;;  %v6816_v22 = vld [vmem:[%s7696_s12 + $0x2a4] ss:$12 sps:$4 sm:$0xff]   ;;  %v9321_v1 = vmul.f32 %v3538_v14, %v9198_v62  ;;  %v3542_v37 = vadd.f32 1.0, %v6922_v5  ;;  %v9336_v14 = vadd.f32 %v10563_v3, %v8791_v41  ;;  %v9353_v3 = vadd.f32 %v9098_v23, %v8783_v51 }
 0x485   : > { %10557 = vst [vmem:[#allocation101_spill] sm:$0xff] %v9292_v50  ;;  %v9307_v7 = vpop.f32.mrb[42].mxu1  ;;  %v3541_v50 = vadd.f32 1.0, %v6918_v63  ;;  %v9313_v47 = vpop.f32.mrb[43].mxu0  ;;  %10561 = vst [vmem:[#allocation103_spill] sm:$0xff] %v9318_v28  ;;  %v9324_v63 = vmul.f32 %v3540_v33, %v9219_v60  ;;  %v9326_v56 = vmul.f32 0.5, %v6105_v6  ;;  %4573 = vmatpush1.bf16.msra.mxu0 %v6810_v26  ;;  %v3714_v26 = vpack.c.bf16 %v9263_v9, %v9216_v34 }
 0x486   : > { %10559 = vst [vmem:[#allocation87_spill] sm:$0xff] %v9307_v7  ;;  %v9315_v13 = vpop.f32.mrb[43].mxu1  ;;  %v3352_v4 = vmul.f32 0.70710677, %v6156_v10  ;;  %v6924_v7 = vpop.eup %6923  ;;  %v9328_v35 = vmul.f32 0.5, %v6155_v17  ;;  %v9331_v40 = vmul.f32 0.5, %v6106_v36  ;;  %4574 = vmatprep.subr.bf16.mxu0 %v6816_v22  ;;  %v9347_v36 = vmul.f32 %v3543_v30, %v9242_v44 }
 0x487   : > { %10560 = vst [vmem:[#allocation102_spill] sm:$0xff] %v9315_v13  ;;  %10562 = vst [vmem:[#allocation104_spill] sm:$0xff] %v9324_v63  ;;  %v3353_v18 = vmul.f32 0.70710677, %v9288_v54  ;;  %v6926_v13 = vpop.eup %6925  ;;  %v3355_v62 = vmul.f32 0.70710677, %v9303_v52  ;;  %v9344_v33 = vmul.f32 %v3541_v50, %v9232_v42  ;;  %v9361_v22 = vmul.f32 %v3542_v37, %v9244_v0  ;;  %4461 = vmatprep.mubr.bf16.mxu0 %v3714_v26 }
 0x488   : > { %v10564_v60 = vld [vmem:[#allocation89_spill] sm:$0xff]  ;;  %v6928_v17 = vpop.eup %6927  ;;  %10565 = vst [vmem:[#allocation88_spill] sm:$0xff] %v9347_v36  ;;  %v3544_v42 = vadd.f32 1.0, %v6924_v7  ;;  %v9363_v50 = vmul.f32 0.5, %v6156_v10  ;;  %6939 = verf.f32 %v3352_v4  ;;  %v6818_v34 = vld [vmem:[%s7696_s12 + $0x2b8] ss:$12 sps:$4 sm:$0xff]   ;;  %4775 = vmatprep.mubr.bf16.mxu1 %v3714_v26  ;;  %v6159_v37 = vadd.f32 %v9100_v21, %v8787_v53 }
 0x489   : > { %v9340_v5 = vadd.f32 %v10564_v60, %v8793_v48  ;;  %v6814_v6 = vld [vmem:[%s7696_s12 + $0x2a0] ss:$12 sps:$4 sm:$0xff]   ;;  %v9355_v28 = vpop.f32.mrb[44].mxu0  ;;  %v9357_v60 = vpop.f32.mrb[44].mxu1  ;;  %v6820_v63 = vld [vmem:[%s7696_s12 + $0x2bc] ss:$12 sps:$4 sm:$0xff]   ;;  %6941 = verf.f32 %v3353_v18  ;;  %v3713_v26 = vpack.c.bf16 %v9239_v15, %v9189_v59 }
 0x48a   : > { %10566 = vst [vmem:[#allocation89_spill] sm:$0xff] %v9357_v60  ;;  %v9365_v44 = vpop.f32.mrb[45].mxu0  ;;  %v9367_v30 = vpop.f32.mrb[45].mxu1  ;;  %v3545_v23 = vadd.f32 1.0, %v6926_v13  ;;  %v3354_v36 = vmul.f32 0.70710677, %v9336_v14  ;;  %6943 = verf.f32 %v3355_v62  ;;  %4575 = vmatpush1.bf16.msra.mxu0 %v6814_v6  ;;  %v6110_v62 = vadd.f32 %v9103_v11, %v8791_v41 }
 0x48b   : > { %10567 = vst [vmem:[#allocation105_spill] sm:$0xff] %v9365_v44  ;;  %10568 = vst [vmem:[#allocation106_spill] sm:$0xff] %v9367_v30  ;;  %v6930_v9 = vpop.eup %6929  ;;  %v3356_v60 = vmul.f32 0.70710677, %v9340_v5  ;;  %v3547_v7 = vadd.f32 1.0, %v6928_v17  ;;  %v9375_v4 = vpop.f32.mrb[46].mxu0  ;;  %4576 = vmatprep.subr.bf16.mxu0 %v6820_v63  ;;  %v9392_v6 = vmul.f32 %v3544_v42, %v9246_v43  ;;  %4462 = vmatmul.mubr.bf16.gmra.mrb[68].mxu0 %v3713_v26 }
 0x48c   : > { %v6932_v0 = vpop.eup %6931  ;;  %v3357_v10 = vmul.f32 0.70710677, %v9353_v3  ;;  %10569 = vst [vmem:[#allocation107_spill] sm:$0xff] %v9375_v4  ;;  %v9377_v30 = vpop.f32.mrb[46].mxu1  ;;  %v9380_v18 = vmul.f32 0.5, %v9288_v54  ;;  %6945 = verf.f32 %v3354_v36  ;;  %v9395_v54 = vmul.f32 0.5, %v9303_v52  ;;  %4776 = vmatmul.mubr.bf16.gmra.mrb[68].mxu1 %v3713_v26 }
 0x48d   : > { %v6934_v13 = vpop.eup %6933  ;;  %v9386_v17 = vpop.f32.mrb[47].mxu0  ;;  %v6824_v21 = vld [vmem:[%s7696_s12 + $0x2d4] ss:$12 sps:$4 sm:$0xff]   ;;  %10571 = vst [vmem:[#allocation109_spill] sm:$0xff] %v9392_v6  ;;  %6947 = verf.f32 %v3356_v60  ;;  %v3359_v36 = vmul.f32 0.70710677, %v6159_v37  ;;  %v9398_v15 = vmul.f32 %v3545_v23, %v9257_v32  ;;  %v6160_v52 = vadd.f32 %v9113_v31, %v8793_v48 }
 0x48e   : > { %v9388_v44 = vpop.f32.mrb[47].mxu1  ;;  %v6936_v4 = vpop.eup %6935  ;;  %v3546_v11 = vadd.f32 1.0, %v6930_v9  ;;  %6949 = verf.f32 %v3357_v10  ;;  %v3358_v63 = vmul.f32 0.70710677, %v6110_v62  ;;  %v3548_v43 = vadd.f32 1.0, %v6932_v0  ;;  %4577 = vmatpush1.bf16.msra.mxu0 %v6818_v34 }
 0x48f   : > { %10570 = vst [vmem:[#allocation108_spill] sm:$0xff] %v9388_v44  ;;  %v6938_v59 = vpop.eup %6937  ;;  %v9401_v44 = vmul.f32 %v3547_v7, %v9270_v61  ;;  %6951 = verf.f32 %v3359_v36  ;;  %v6822_v60 = vld [vmem:[%s7696_s12 + $0x2d0] ss:$12 sps:$4 sm:$0xff]   ;;  %v3549_v42 = vadd.f32 1.0, %v6934_v13  ;;  %v3551_v6 = vadd.f32 1.0, %v6936_v4  ;;  %4578 = vmatprep.subr.bf16.mxu0 %v6824_v21 }
 0x490   : > { %v6111_v32 = vadd.f32 %v9148_v24, %v8783_v51  ;;  %v6161_v9 = vadd.f32 %v9150_v55, %v8787_v53  ;;  %v6828_v61 = vld [vmem:[%s7696_s12 + $0x2ec] ss:$12 sps:$4 sm:$0xff]   ;;  %v3550_v0 = vadd.f32 1.0, %v6938_v59  ;;  %6953 = verf.f32 %v3358_v63 }
 0x491   : > { %10572 = vst [vmem:[#allocation110_spill] sm:$0xff] %v9401_v44  ;;  %v9410_v23 = vpop.f32.mrb[48].mxu0  ;;  %v9412_v10 = vpop.f32.mrb[48].mxu1  ;;  %v3360_v7 = vmul.f32 0.70710677, %v6160_v52  ;;  %v6112_v31 = vadd.f32 %v9158_v25, %v8791_v41  ;;  %v9422_v24 = vmul.f32 %v3546_v11, %v9299_v57  ;;  %v9425_v55 = vmul.f32 0.5, %v9336_v14 }
 0x492   : > { %10573 = vst [vmem:[#allocation111_spill] sm:$0xff] %v9412_v10  ;;  %v9417_v34 = vpop.f32.mrb[49].mxu0  ;;  %v9419_v4 = vpop.f32.mrb[49].mxu1  ;;  %v9428_v13 = vmul.f32 0.5, %v9340_v5  ;;  %v3361_v26 = vmul.f32 0.70710677, %v6111_v32  ;;  %v9431_v59 = vmul.f32 %v3548_v43, %v9311_v58  ;;  %4579 = vmatpush1.bf16.msra.mxu0 %v6822_v60  ;;  %v9439_v5 = vmul.f32 %v3549_v42, %v9326_v56 }
 0x493   : > { %10574 = vst [vmem:[#allocation112_spill] sm:$0xff] %v9419_v4  ;;  %v2872_v21 = vpop.f32.mrb[50].mxu0  ;;  %v6940_v36 = vpop.eup %6939  ;;  %v9434_v25 = vmul.f32 0.5, %v9353_v3  ;;  %v9436_v63 = vmul.f32 0.5, %v6159_v37  ;;  %v3363_v57 = vmul.f32 0.70710677, %v6161_v9  ;;  %6955 = verf.f32 %v3360_v7  ;;  %4580 = vmatprep.subr.bf16.mxu0 %v6828_v61 }
 0x494   : > { %v3194_v11 = vpop.f32.mrb[50].mxu1  ;;  %v2873_v10 = vpop.f32.mrb[51].mxu0  ;;  %v9441_v4 = vmul.f32 0.5, %v6110_v62  ;;  %v3362_v21 = vmul.f32 0.70710677, %v6112_v31  ;;  %v9445_v3 = vmul.f32 %v3551_v6, %v9328_v35  ;;  %v9448_v37 = vmul.f32 %v3550_v0, %v9331_v40 }
 0x495   : > { %v6942_v14 = vpop.eup %6941  ;;  %v3195_v44 = vpop.f32.mrb[51].mxu1  ;;  %v6826_v58 = vld [vmem:[%s7696_s12 + $0x2e8] ss:$12 sps:$4 sm:$0xff]   ;;  %v6162_v60 = vadd.f32 %v9160_v38, %v8793_v48  ;;  %v3718_v56 = vpack.c.bf16 %v9361_v22, %v9321_v1  ;;  %v3552_v42 = vadd.f32 1.0, %v6940_v36  ;;  %6957 = verf.f32 %v3361_v26 }
 0x496   : > { %v6944_v43 = vpop.eup %6943  ;;  %v6113_v44 = vadd.f32 %v9170_v49, %v8783_v51  ;;  %v6163_v10 = vadd.f32 %v9172_v8, %v8787_v53  ;;  %v9458_v6 = vmul.f32 0.5, %v6160_v52  ;;  %6959 = verf.f32 %v3363_v57  ;;  %4581 = vmatpush1.bf16.msra.mxu0 %v6826_v58 }
 0x497   : > { %v6946_v62 = vpop.eup %6945  ;;  %v3364_v40 = vmul.f32 0.70710677, %v6162_v60  ;;  %4471 = vmatprep.mubr.bf16.mxu0 %v3718_v56  ;;  %4783 = vmatprep.mubr.bf16.mxu1 %v3718_v56  ;;  %v3717_v38 = vpack.c.bf16 %v9344_v33, %v9296_v12  ;;  %v9462_v22 = vmul.f32 0.5, %v6111_v32  ;;  %v9464_v61 = vmul.f32 0.5, %v6161_v9 }
 0x498   : > { %v6948_v35 = vpop.eup %6947  ;;  %6961 = verf.f32 %v3362_v21  ;;  %v3365_v49 = vmul.f32 0.70710677, %v6113_v44  ;;  %v3553_v8 = vadd.f32 1.0, %v6942_v14  ;;  %v3555_v7 = vadd.f32 1.0, %v6944_v43 }
 0x499   : > { %v6950_v1 = vpop.eup %6949  ;;  %6963 = verf.f32 %v3364_v40  ;;  %v3367_v52 = vmul.f32 0.70710677, %v6163_v10  ;;  %4472 = vmatmul.mubr.bf16.gmra.mrb[72].mxu0 %v3717_v38  ;;  %4784 = vmatmul.mubr.bf16.gmra.mrb[72].mxu1 %v3717_v38  ;;  %v9467_v26 = vmul.f32 %v3552_v42, %v9363_v50  ;;  %v9469_v36 = vmul.f32 0.5, %v6112_v31 }
 0x49a   : > { %v6952_v0 = vpop.eup %6951  ;;  %6965 = verf.f32 %v3365_v49  ;;  %v6114_v12 = vadd.f32 %v9183_v20, %v8791_v41  ;;  %v3554_v32 = vadd.f32 1.0, %v6946_v62  ;;  %v3556_v9 = vadd.f32 1.0, %v6948_v35 }
 0x49b   : > { %v6954_v33 = vpop.eup %6953  ;;  %6967 = verf.f32 %v3367_v52  ;;  %v6164_v57 = vadd.f32 %v9185_v2, %v8793_v48  ;;  %v3557_v11 = vadd.f32 1.0, %v6950_v1  ;;  %v3559_v14 = vadd.f32 1.0, %v6952_v0 }
 0x49c   : > { %v3366_v21 = vmul.f32 0.70710677, %v6114_v12  ;;  %v6115_v50 = vadd.f32 %v9210_v29, %v8783_v51  ;;  %v9478_v31 = vmul.f32 %v3553_v8, %v9380_v18  ;;  %v9481_v58 = vmul.f32 %v3555_v7, %v9395_v54 }
 0x49d   : > { %v3368_v20 = vmul.f32 0.70710677, %v6164_v57  ;;  %v6165_v43 = vadd.f32 %v9212_v46, %v8787_v53  ;;  %v6956_v56 = vpop.eup %6955  ;;  %v3558_v62 = vadd.f32 1.0, %v6954_v33  ;;  %v9485_v42 = vmul.f32 0.5, %v6162_v60 }
 0x49e   : > { %v9487_v2 = vmul.f32 0.5, %v6113_v44  ;;  %v3369_v35 = vmul.f32 0.70710677, %v6115_v50  ;;  %v9490_v40 = vmul.f32 %v3554_v32, %v9425_v55  ;;  %v9493_v29 = vmul.f32 %v3556_v9, %v9428_v13 }
 0x49f   : > { %v9495_v18 = vmul.f32 0.5, %v6163_v10  ;;  %6969 = verf.f32 %v3366_v21  ;;  %v6958_v54 = vpop.eup %6957  ;;  %v9498_v38 = vmul.f32 %v3557_v11, %v9434_v25  ;;  %v9501_v46 = vmul.f32 %v3559_v14, %v9436_v63  ;;  %v10575_v10 = vld [vmem:[#allocation95_spill] sm:$0xff] }
 0x4a0   : > { %v9503_v60 = vmul.f32 0.5, %v6114_v12  ;;  %v6116_v44 = vadd.f32 %v9225_v39, %v8791_v41  ;;  %v6960_v55 = vpop.eup %6959  ;;  %v3560_v1 = vadd.f32 1.0, %v6956_v56  ;;  %6971 = verf.f32 %v3368_v20 }
 0x4a1   : > { %v3371_v13 = vmul.f32 0.70710677, %v6165_v43  ;;  %v6166_v49 = vadd.f32 %v10575_v10, %v8793_v48  ;;  %v3658_v8 = vmul.f32 %v3558_v62, %v9441_v4  ;;  %6973 = verf.f32 %v3369_v35  ;;  %v10578_v10 = vld [vmem:[#allocation100_spill] sm:$0xff] }
 0x4a2   : > { %v6962_v0 = vpop.eup %6961  ;;  %v3370_v25 = vmul.f32 0.70710677, %v6116_v44  ;;  %v3722_v63 = vpack.c.bf16 %v9448_v37, %v9422_v24  ;;  %v9512_v52 = vmul.f32 0.5, %v6164_v57  ;;  %v9514_v12 = vmul.f32 0.5, %v6115_v50 }
 0x4a3   : > { %v6964_v7 = vpop.eup %6963  ;;  %v3372_v39 = vmul.f32 0.70710677, %v6166_v49  ;;  %v6117_v33 = vadd.f32 %v9234_v45, %v8783_v51  ;;  %v3561_v9 = vadd.f32 1.0, %v6958_v54  ;;  %v9518_v11 = vmul.f32 0.5, %v6165_v43 }
 0x4a4   : > { %v6966_v32 = vpop.eup %6965  ;;  %4481 = vmatprep.mubr.bf16.mxu0 %v3722_v63  ;;  %4791 = vmatprep.mubr.bf16.mxu1 %v3722_v63  ;;  %v6167_v4 = vadd.f32 %v9236_v19, %v8787_v53  ;;  %v3721_v24 = vpack.c.bf16 %v9439_v5, %v9398_v15  ;;  %v9525_v57 = vmul.f32 %v3560_v1, %v9458_v6  ;;  %v3563_v14 = vadd.f32 1.0, %v6960_v55  ;;  %v10576_v19 = vld [vmem:[#allocation97_spill] sm:$0xff]  ;;  %v10577_v15 = vld [vmem:[#allocation98_spill] sm:$0xff] }
 0x4a5   : > { %v6968_v37 = vpop.eup %6967  ;;  %6975 = verf.f32 %v3371_v13  ;;  %v3373_v21 = vmul.f32 0.70710677, %v6117_v33  ;;  %v3562_v45 = vadd.f32 1.0, %v6962_v0  ;;  %v3564_v50 = vadd.f32 1.0, %v6964_v7 }
 0x4a6   : > { %v3565_v20 = vadd.f32 1.0, %v6966_v32  ;;  %6977 = verf.f32 %v3370_v25  ;;  %4482 = vmatmul.mubr.bf16.gmra.mrb[76].mxu0 %v3721_v24  ;;  %4792 = vmatmul.mubr.bf16.gmra.mrb[76].mxu1 %v3721_v24  ;;  %v3375_v43 = vmul.f32 0.70710677, %v6167_v4  ;;  %v6118_v56 = vadd.f32 %v10576_v19, %v8791_v41 }
 0x4a7   : > { %6979 = verf.f32 %v3372_v39  ;;  %v6168_v5 = vadd.f32 %v10577_v15, %v8793_v48  ;;  %v9532_v6 = vmul.f32 %v3561_v9, %v9462_v22  ;;  %v3567_v62 = vadd.f32 1.0, %v6968_v37  ;;  %v10579_v37 = vld [vmem:[#allocation85_spill] sm:$0xff] }
 0x4a8   : > { %6981 = verf.f32 %v3373_v21  ;;  %v6119_v35 = vadd.f32 %v9280_v16, %v8783_v51  ;;  %v9537_v55 = vmul.f32 %v3563_v14, %v9464_v61  ;;  %v9539_v1 = vmul.f32 0.5, %v6116_v44  ;;  %v10580_v14 = vld [vmem:[#allocation101_spill] sm:$0xff] }
 0x4a9   : > { %v6970_v54 = vpop.eup %6969  ;;  %v3374_v13 = vmul.f32 0.70710677, %v6118_v56  ;;  %v6169_v0 = vadd.f32 %v10578_v10, %v8787_v53  ;;  %v9544_v25 = vmul.f32 %v3562_v45, %v9469_v36  ;;  %v9546_v22 = vmul.f32 0.5, %v6166_v49 }
 0x4aa   : > { %v9548_v63 = vmul.f32 0.5, %v6117_v33  ;;  %v3376_v7 = vmul.f32 0.70710677, %v6168_v5  ;;  %v6972_v39 = vpop.eup %6971  ;;  %v9551_v16 = vmul.f32 %v3564_v50, %v9485_v42  ;;  %v9554_v61 = vmul.f32 %v3565_v20, %v9487_v2 }
 0x4ab   : > { %v9556_v44 = vmul.f32 0.5, %v6167_v4  ;;  %6983 = verf.f32 %v3375_v43  ;;  %v6974_v32 = vpop.eup %6973  ;;  %v9559_v9 = vmul.f32 %v3567_v62, %v9495_v18  ;;  %v3566_v36 = vadd.f32 1.0, %v6970_v54 }
 0x4ac   : > { %v9561_v49 = vmul.f32 0.5, %v6118_v56  ;;  %v3377_v33 = vmul.f32 0.70710677, %v6119_v35  ;;  %6985 = verf.f32 %v3374_v13  ;;  %v3379_v24 = vmul.f32 0.70710677, %v6169_v0 }
 0x4ad   : > { %v6120_v42 = vadd.f32 %v10579_v37, %v8791_v41  ;;  %v6170_v2 = vadd.f32 %v10580_v14, %v8793_v48  ;;  %v3568_v21 = vadd.f32 1.0, %v6972_v39  ;;  %6987 = verf.f32 %v3376_v7 }
 0x4ae   : > { %v3726_v4 = vpack.c.bf16 %v3658_v8, %v9490_v40  ;;  %v6121_v18 = vadd.f32 %v9305_v27, %v8783_v51  ;;  %v3569_v50 = vadd.f32 1.0, %v6974_v32  ;;  %v9570_v20 = vmul.f32 0.5, %v6168_v5  ;;  %v10581_v27 = vld [vmem:[#allocation87_spill] sm:$0xff] }
 0x4af   : > { %v6976_v45 = vpop.eup %6975  ;;  %v9572_v43 = vmul.f32 0.5, %v6119_v35  ;;  %v3378_v19 = vmul.f32 0.70710677, %v6120_v42  ;;  %v3666_v15 = vmul.f32 %v3566_v36, %v9503_v60  ;;  %6989 = verf.f32 %v3377_v33 }
 0x4b0   : > { %v6978_v56 = vpop.eup %6977  ;;  %v3380_v62 = vmul.f32 0.70710677, %v6170_v2  ;;  %4491 = vmatprep.mubr.bf16.mxu0 %v3726_v4  ;;  %4799 = vmatprep.mubr.bf16.mxu1 %v3726_v4  ;;  %v3381_v54 = vmul.f32 0.70710677, %v6121_v18  ;;  %v9575_v40 = vmul.f32 0.5, %v6169_v0  ;;  %6991 = verf.f32 %v3379_v24 }
 0x4b1   : > { %v6980_v13 = vpop.eup %6979  ;;  %v6171_v8 = vadd.f32 %v10581_v27, %v8787_v53  ;;  %v3725_v5 = vpack.c.bf16 %v9498_v38, %v9478_v31  ;;  %v9582_v10 = vmul.f32 %v3568_v21, %v9512_v52  ;;  %v3571_v60 = vadd.f32 1.0, %v6976_v45  ;;  %v10582_v38 = vld [vmem:[#allocation102_spill] sm:$0xff] }
 0x4b2   : > { %v6982_v35 = vpop.eup %6981  ;;  %6993 = verf.f32 %v3378_v19  ;;  %v6122_v7 = vadd.f32 %v9313_v47, %v8791_v41  ;;  %v9587_v39 = vmul.f32 %v3569_v50, %v9514_v12  ;;  %v3570_v0 = vadd.f32 1.0, %v6978_v56  ;;  %v10583_v12 = vld [vmem:[#allocation89_spill] sm:$0xff] }
 0x4b3   : > { %6995 = verf.f32 %v3381_v54  ;;  %v3383_v32 = vmul.f32 0.70710677, %v6171_v8  ;;  %4492 = vmatmul.mubr.bf16.gmra.mrb[80].mxu0 %v3725_v5  ;;  %4800 = vmatmul.mubr.bf16.gmra.mrb[80].mxu1 %v3725_v5  ;;  %v3572_v36 = vadd.f32 1.0, %v6980_v13  ;;  %v6172_v52 = vadd.f32 %v10582_v38, %v8793_v48 }
 0x4b4   : > { %6997 = verf.f32 %v3380_v62  ;;  %v3382_v31 = vmul.f32 0.70710677, %v6122_v7  ;;  %v3573_v24 = vadd.f32 1.0, %v6982_v35  ;;  %v6123_v47 = vadd.f32 %v9355_v28, %v8783_v51  ;;  %v10585_v35 = vld [vmem:[#allocation106_spill] sm:$0xff] }
 0x4b5   : > { %v6984_v33 = vpop.eup %6983  ;;  %6999 = verf.f32 %v3383_v32  ;;  %v6173_v37 = vadd.f32 %v10583_v12, %v8787_v53  ;;  %v9596_v14 = vmul.f32 %v3571_v60, %v9518_v11  ;;  %v9598_v21 = vmul.f32 0.5, %v6120_v42 }
 0x4b6   : > { %7001 = verf.f32 %v3382_v31  ;;  %v3384_v4 = vmul.f32 0.70710677, %v6172_v52  ;;  %v6986_v45 = vpop.eup %6985  ;;  %v9601_v50 = vmul.f32 %v3570_v0, %v9539_v1  ;;  %v9603_v19 = vmul.f32 0.5, %v6170_v2  ;;  %v10584_v1 = vld [vmem:[#allocation105_spill] sm:$0xff] }
 0x4b7   : > { %v9605_v56 = vmul.f32 0.5, %v6121_v18  ;;  %v3385_v62 = vmul.f32 0.70710677, %v6123_v47  ;;  %v6988_v28 = vpop.eup %6987  ;;  %v9608_v54 = vmul.f32 %v3572_v36, %v9546_v22  ;;  %v3575_v13 = vadd.f32 1.0, %v6984_v33 }
 0x4b8   : > { %7003 = verf.f32 %v3384_v4  ;;  %v3387_v11 = vmul.f32 0.70710677, %v6173_v37  ;;  %v9611_v42 = vmul.f32 %v3573_v24, %v9548_v63  ;;  %v9613_v27 = vmul.f32 0.5, %v6171_v8  ;;  %v10586_v63 = vld [vmem:[#allocation107_spill] sm:$0xff] }
 0x4b9   : > { %7005 = verf.f32 %v3385_v62  ;;  %v6124_v2 = vadd.f32 %v10584_v1, %v8791_v41  ;;  %v6990_v5 = vpop.eup %6989  ;;  %v3574_v18 = vadd.f32 1.0, %v6986_v45  ;;  %v6174_v60 = vadd.f32 %v10585_v35, %v8793_v48 }
 0x4ba   : > { %7007 = verf.f32 %v3387_v11  ;;  %v3730_v22 = vpack.c.bf16 %v3666_v15, %v9544_v25  ;;  %v6992_v0 = vpop.eup %6991  ;;  %v3576_v32 = vadd.f32 1.0, %v6988_v28  ;;  %v3282_v36 = vmul.f32 0.5, %v6122_v7 }
 0x4bb   : > { %v3386_v31 = vmul.f32 0.70710677, %v6124_v2  ;;  %v6125_v8 = vadd.f32 %v10586_v63, %v8783_v51  ;;  %v9623_v33 = vmul.f32 %v3575_v13, %v9556_v44  ;;  %v3284_v24 = vmul.f32 0.5, %v6172_v52 }
 0x4bc   : > { %v6994_v38 = vpop.eup %6993  ;;  %v3388_v12 = vmul.f32 0.70710677, %v6174_v60  ;;  %4501 = vmatprep.mubr.bf16.mxu0 %v3730_v22  ;;  %4807 = vmatprep.mubr.bf16.mxu1 %v3730_v22  ;;  %v6175_v4 = vadd.f32 %v9377_v30, %v8787_v53  ;;  %v3577_v25 = vadd.f32 1.0, %v6990_v5  ;;  %v3285_v15 = vmul.f32 0.5, %v6123_v47 }
 0x4bd   : > { %v6996_v45 = vpop.eup %6995  ;;  %7009 = verf.f32 %v3386_v31  ;;  %v3389_v7 = vmul.f32 0.70710677, %v6125_v8  ;;  %v3674_v28 = vmul.f32 %v3574_v18, %v9561_v49  ;;  %v3579_v11 = vadd.f32 1.0, %v6992_v0  ;;  %v10587_v49 = vld [vmem:[#allocation108_spill] sm:$0xff] }
 0x4be   : > { %v6998_v62 = vpop.eup %6997  ;;  %v3287_v1 = vmul.f32 0.5, %v6173_v37  ;;  %7011 = verf.f32 %v3388_v12  ;;  %v9629_v52 = vmul.f32 %v3576_v32, %v9570_v20  ;;  %v3391_v13 = vmul.f32 0.70710677, %v6175_v4 }
 0x4bf   : > { %v7000_v44 = vpop.eup %6999  ;;  %7013 = verf.f32 %v3389_v7  ;;  %v3729_v30 = vpack.c.bf16 %v9554_v61, %v9532_v6  ;;  %v3578_v5 = vadd.f32 1.0, %v6994_v38  ;;  %v3581_v47 = vadd.f32 1.0, %v6996_v45 }
 0x4c0   : > { %v7002_v35 = vpop.eup %7001  ;;  %v6126_v22 = vadd.f32 %v9386_v17, %v8791_v41  ;;  %v6176_v18 = vadd.f32 %v10587_v49, %v8793_v48  ;;  %v3677_v37 = vmul.f32 %v3577_v25, %v9572_v43  ;;  %7015 = verf.f32 %v3391_v13 }
 0x4c1   : > { %v3582_v0 = vadd.f32 1.0, %v7002_v35  ;;  %4502 = vmatmul.mubr.bf16.gmra.mrb[84].mxu0 %v3729_v30  ;;  %4808 = vmatmul.mubr.bf16.gmra.mrb[84].mxu1 %v3729_v30  ;;  %v9640_v20 = vadd.f32 %v9410_v23, %v8783_v51  ;;  %v9643_v61 = vmul.f32 %v3579_v11, %v9575_v40  ;;  %v3580_v32 = vadd.f32 1.0, %v6998_v62 }
 0x4c2   : > { %v7004_v6 = vpop.eup %7003  ;;  %v3286_v31 = vmul.f32 0.5, %v6124_v2  ;;  %v3390_v17 = vmul.f32 0.70710677, %v6126_v22  ;;  %v3583_v38 = vadd.f32 1.0, %v7000_v44  ;;  %v9645_v12 = vmul.f32 0.5, %v6174_v60 }
 0x4c3   : > { %v7006_v63 = vpop.eup %7005  ;;  %v3289_v43 = vmul.f32 0.5, %v6125_v8  ;;  %v3392_v45 = vmul.f32 0.70710677, %v6176_v18  ;;  %v3678_v7 = vmul.f32 %v3578_v5, %v9598_v21  ;;  %v3681_v13 = vmul.f32 %v3581_v47, %v9605_v56 }
 0x4c4   : > { %v7008_v25 = vpop.eup %7007  ;;  %v3584_v51 = vadd.f32 1.0, %v7004_v6  ;;  %7017 = verf.f32 %v3390_v17  ;;  %v3682_v23 = vmul.f32 %v3582_v0, %v3282_v36  ;;  %v3585_v30 = vadd.f32 1.0, %v7006_v63  ;;  %v10590_v6 = vld [vmem:[#allocation78_spill] sm:$0xff]  ;;  %v10592_v17 = vld [vmem:[#allocation77_spill] sm:$0xff]  ;;  %v10593_v63 = vld [vmem:[#allocation79_spill] sm:$0xff] }
 0x4c5   : > { %7019 = verf.f32 %v3392_v45  ;;  %v3393_v40 = vmul.f32 0.70710677, %v9640_v20  ;;  %v9651_v2 = vmul.f32 %v3580_v32, %v9603_v19  ;;  %v3587_v62 = vadd.f32 1.0, %v7008_v25  ;;  %v10594_v45 = vld [vmem:[#allocation82_spill] sm:$0xff] }
 0x4c6   : > { %v3291_v60 = vmul.f32 0.5, %v6175_v4  ;;  %v9655_v8 = vadd.f32 %v9417_v34, %v8791_v41  ;;  %v3683_v21 = vmul.f32 %v3583_v38, %v9613_v27  ;;  %v3290_v56 = vmul.f32 0.5, %v6126_v22  ;;  %v10595_v25 = vld [vmem:[#allocation86_spill] sm:$0xff] }
 0x4c7   : > { %v7010_v11 = vpop.eup %7009  ;;  %v3734_v44 = vpack.c.bf16 %v3674_v28, %v9601_v50  ;;  %v3733_v36 = vpack.c.bf16 %v9611_v42, %v9587_v39  ;;  %v3684_v5 = vmul.f32 %v3584_v51, %v3284_v24  ;;  %v3292_v19 = vmul.f32 0.5, %v6176_v18  ;;  %v10588_v50 = vld [vmem:[#allocation75_spill] sm:$0xff]  ;;  %v10589_v39 = vld [vmem:[#allocation76_spill] sm:$0xff] }
 0x4c8   : > { %v7012_v35 = vpop.eup %7011  ;;  %v3586_v47 = vadd.f32 1.0, %v7010_v11  ;;  %v3394_v49 = vmul.f32 0.70710677, %v9655_v8  ;;  %v3685_v0 = vmul.f32 %v3585_v30, %v3285_v15  ;;  %7021 = verf.f32 %v3393_v40  ;;  %v10591_v15 = vld [vmem:[#allocation80_spill] sm:$0xff]  ;;  %v10598_v30 = vld [vmem:[#allocation91_spill] sm:$0xff]  ;;  %v10599_v40 = vld [vmem:[#allocation93_spill] sm:$0xff] }
 0x4c9   : > { %v7014_v4 = vpop.eup %7013  ;;  %4511 = vmatprep.mubr.bf16.mxu0 %v3734_v44  ;;  %4815 = vmatprep.mubr.bf16.mxu1 %v3734_v44  ;;  %v3738_v41 = vpack.c.bf16 %v3682_v23, %v3678_v7  ;;  %v3737_v34 = vpack.c.bf16 %v3681_v13, %v3677_v37  ;;  %v3687_v27 = vmul.f32 %v3587_v62, %v3287_v1  ;;  %v3588_v18 = vadd.f32 1.0, %v7012_v35  ;;  %v10596_v13 = vld [vmem:[#allocation81_spill] sm:$0xff]  ;;  %v10597_v51 = vld [vmem:[#allocation84_spill] sm:$0xff]  ;;  %v10600_v62 = vld [vmem:[#allocation90_spill] sm:$0xff] }
 0x4ca   : > { %v3589_v22 = vadd.f32 1.0, %v7014_v4  ;;  %7023 = verf.f32 %v3394_v49  ;;  %4512 = vmatmul.mubr.bf16.gmra.mrb[88].mxu0 %v3733_v36  ;;  %4816 = vmatmul.mubr.bf16.gmra.mrb[88].mxu1 %v3733_v36  ;;  %v3700_v42 = vpack.c.bf16 %v10589_v39, %v10588_v50  ;;  %v7016_v24 = vpop.eup %7015  ;;  %v3686_v28 = vmul.f32 %v3586_v47, %v3286_v31  ;;  %v10601_v11 = vld [vmem:[#allocation92_spill] sm:$0xff]  ;;  %v10603_v35 = vld [vmem:[#allocation83_spill] sm:$0xff]  ;;  %v10604_v49 = vld [vmem:[#allocation94_spill] sm:$0xff] }
 0x4cb   : > { %4521 = vmatprep.mubr.bf16.mxu0 %v3738_v41  ;;  %4823 = vmatprep.mubr.bf16.mxu1 %v3738_v41  ;;  %v3704_v32 = vpack.c.bf16 %v10591_v15, %v10590_v6  ;;  %v3703_v38 = vpack.c.bf16 %v10593_v63, %v10592_v17  ;;  %v3591_v1 = vadd.f32 1.0, %v7016_v24  ;;  %v3708_v7 = vpack.c.bf16 %v10595_v25, %v10594_v45  ;;  %v10602_v36 = vld [vmem:[#allocation96_spill] sm:$0xff]  ;;  %v10605_v4 = vld [vmem:[#allocation99_spill] sm:$0xff]  ;;  %v10607_v24 = vld [vmem:[#allocation109_spill] sm:$0xff] }
 0x4cc   : > { %v3689_v37 = vmul.f32 %v3589_v22, %v3289_v43  ;;  %v3707_v23 = vpack.c.bf16 %v10597_v51, %v10596_v13  ;;  %v3712_v31 = vpack.c.bf16 %v10599_v40, %v10598_v30  ;;  %v3711_v44 = vpack.c.bf16 %v10601_v11, %v10600_v62  ;;  %v10606_v39 = vld [vmem:[#allocation104_spill] sm:$0xff]  ;;  %v10608_v15 = vld [vmem:[#allocation103_spill] sm:$0xff]  ;;  %v10610_v51 = vld [vmem:[#allocation110_spill] sm:$0xff] }
 0x4cd   : > { %v3716_v47 = vpack.c.bf16 %v10603_v35, %v10602_v36  ;;  %v9680_v41 = vpack.c.bf16 %v10605_v4, %v10604_v49  ;;  %v3691_v22 = vmul.f32 %v3591_v1, %v3291_v60  ;;  %v3720_v6 = vpack.c.bf16 %v10607_v24, %v10606_v39  ;;  %v10609_v17 = vld [vmem:[#allocation88_spill] sm:$0xff] }
 0x4ce   : > { %v7018_v43 = vpop.eup %7017  ;;  %v3741_v50 = vpack.c.bf16 %v3689_v37, %v3685_v0  ;;  %v3719_v63 = vpack.c.bf16 %v10609_v17, %v10608_v15  ;;  %v3724_v13 = vpack.c.bf16 %v9467_v26, %v9431_v59  ;;  %v3723_v30 = vpack.c.bf16 %v9445_v3, %v10610_v51 }
 0x4cf   : > { %v7020_v45 = vpop.eup %7019  ;;  %v3590_v25 = vadd.f32 1.0, %v7018_v43  ;;  %v9692_v40 = vpack.c.bf16 %v9525_v57, %v9493_v29  ;;  %v9696_v0 = vpack.c.bf16 %v9501_v46, %v9481_v58  ;;  %v9700_v37 = vpack.c.bf16 %v9582_v10, %v9551_v16 }
 0x4d0   : > { %v3592_v60 = vadd.f32 1.0, %v7020_v45  ;;  %v9704_v1 = vpack.c.bf16 %v9559_v9, %v9537_v55  ;;  %v3688_v59 = vmul.f32 %v3588_v18, %v9645_v12  ;;  %v9709_v26 = vpack.c.bf16 %v9629_v52, %v9608_v54 }
 0x4d1   : > { %v3690_v3 = vmul.f32 %v3590_v25, %v3290_v56  ;;  %v9713_v29 = vpack.c.bf16 %v9623_v33, %v9596_v14  ;;  %v9716_v46 = vpack.c.bf16 %v3684_v5, %v9651_v2  ;;  %v9719_v57 = vpack.c.bf16 %v3683_v21, %v9643_v61  ;;  %v10611_v5 = vld [vmem:[#allocation74_spill] sm:$0xff] }
 0x4d2   : > { %v3692_v58 = vmul.f32 %v3592_v60, %v3292_v19  ;;  %4522 = vmatmul.mubr.bf16.gmra.mrb[92].mxu0 %v3737_v34  ;;  %4824 = vmatmul.mubr.bf16.gmra.mrb[92].mxu1 %v3737_v34  ;;  %v7022_v55 = vpop.eup %7021  ;;  %v9721_v9 = vpack.c.bf16 %v3691_v22, %v3687_v27  ;;  %v3294_v52 = vmul.f32 0.5, %v9655_v8  ;;  %v3293_v2 = vmul.f32 0.5, %v9640_v20  ;;  %v10612_v20 = vld [vmem:[#allocation112_spill] sm:$0xff]  ;;  %v10613_v34 = vld [vmem:[#allocation111_spill] sm:$0xff] }
 0x4d3   : > { %v3742_v16 = vpack.c.bf16 %v3690_v3, %v3686_v28  ;;  %v3593_v12 = vadd.f32 1.0, %v7022_v55  ;;  %v6178_v8 = vadd.f32 %v10612_v20, %v8793_v48  ;;  %v6177_v27 = vadd.f32 %v10613_v34, %v8787_v53 }
 0x4d4   : > { %v7024_v10 = vpop.eup %7023  ;;  %v9723_v54 = vpack.c.bf16 %v3692_v58, %v3688_v59 }
 0x4d5   : > { %v3594_v14 = vadd.f32 1.0, %v7024_v10  ;;  %4531 = vmatprep.mubr.bf16.mxu0 %v3742_v16  ;;  %4831 = vmatprep.mubr.bf16.mxu1 %v3742_v16  ;;  %v3693_v61 = vmul.f32 %v3593_v12, %v3293_v2  ;;  %v3396_v19 = vmul.f32 0.70710677, %v6178_v8  ;;  %v3395_v48 = vmul.f32 0.70710677, %v6177_v27 }
 0x4d6   : > { %v3295_v22 = vmul.f32 0.5, %v6177_v27 }
 0x4d7   : > { %v3694_v33 = vmul.f32 %v3594_v14, %v3294_v52  ;;  %v3745_v21 = vpack.c.bf16 %v3693_v61, %v3693_v61  ;;  %7025 = verf.f32 %v3396_v19 }
 0x4d8   : > { %7027 = verf.f32 %v3395_v48 }
 0x4d9   : > { %v3746_v56 = vpack.c.bf16 %v3694_v33, %v3694_v33 }
 0x4da   : > { %4532 = vmatmul.mubr.bf16.gmra.mrb[96].mxu0 %v3741_v50  ;;  %4832 = vmatmul.mubr.bf16.gmra.mrb[96].mxu1 %v3741_v50 }
 0x4db   : > { %4541 = vmatprep.mubr.bf16.mxu0 %v3746_v56  ;;  %4839 = vmatprep.mubr.bf16.mxu1 %v3746_v56 }
 0x4e1   : > { %v7026_v53 = vpop.eup %7025 }
 0x4e2   : > { %4542 = vmatmul.mubr.bf16.gmra.mrb[100].mxu0 %v3745_v21  ;;  %4840 = vmatmul.mubr.bf16.gmra.mrb[100].mxu1 %v3745_v21 }
 0x4e3   : > { %4582 = vmatprep.mubr.bf16.mxu0 %v3700_v42  ;;  %4879 = vmatprep.mubr.bf16.mxu1 %v3700_v42 }
 0x4ea   : > { %4583 = vmatmul.mubr.bf16.vlgmr.msra.gmra.mrb[52].mxu0 %v10611_v5  ;;  %4880 = vmatmul.mubr.bf16.vlgmr.msra.gmra.mrb[104].mxu1 %v10611_v5 }
 0x4eb   : > { %4592 = vmatprep.mubr.bf16.mxu0 %v3704_v32  ;;  %4887 = vmatprep.mubr.bf16.mxu1 %v3704_v32 }
 0x4f2   : > { %4593 = vmatmul.mubr.bf16.gmra.mrb[56].mxu0 %v3703_v38  ;;  %4888 = vmatmul.mubr.bf16.gmra.mrb[108].mxu1 %v3703_v38 }
 0x4f3   : > { %4602 = vmatprep.mubr.bf16.mxu0 %v3708_v7  ;;  %4895 = vmatprep.mubr.bf16.mxu1 %v3708_v7 }
 0x4fa   : > { %4603 = vmatmul.mubr.bf16.gmra.mrb[60].mxu0 %v3707_v23  ;;  %4896 = vmatmul.mubr.bf16.gmra.mrb[112].mxu1 %v3707_v23  ;;  %v3596_v23 = vadd.f32 1.0, %v7026_v53 }
 0x4fb   : > { %4612 = vmatprep.mubr.bf16.mxu0 %v3712_v31  ;;  %4903 = vmatprep.mubr.bf16.mxu1 %v3712_v31  ;;  %v3296_v31 = vmul.f32 0.5, %v6178_v8 }
 0x4fd   : > { %v3696_v36 = vmul.f32 %v3596_v23, %v3296_v31 }
 0x4ff   : > { %v3748_v43 = vpack.c.bf16 %v3696_v36, %v3696_v36 }
 0x502   : > { %4613 = vmatmul.mubr.bf16.gmra.mrb[64].mxu0 %v3711_v44  ;;  %4904 = vmatmul.mubr.bf16.gmra.mrb[116].mxu1 %v3711_v44  ;;  %v7028_v44 = vpop.eup %7027 }
 0x503   : > { %4622 = vmatprep.mubr.bf16.mxu0 %v3716_v47  ;;  %4911 = vmatprep.mubr.bf16.mxu1 %v3716_v47 }
 0x50a   : > { %4623 = vmatmul.mubr.bf16.gmra.mrb[68].mxu0 %v9680_v41  ;;  %4912 = vmatmul.mubr.bf16.gmra.mrb[120].mxu1 %v9680_v41  ;;  %v3595_v41 = vadd.f32 1.0, %v7028_v44 }
 0x50b   : > { %4632 = vmatprep.mubr.bf16.mxu0 %v3720_v6  ;;  %4919 = vmatprep.mubr.bf16.mxu1 %v3720_v6 }
 0x50c   : > { %v3695_v50 = vmul.f32 %v3595_v41, %v3295_v22 }
 0x50e   : > { %v3747_v24 = vpack.c.bf16 %v3695_v50, %v3695_v50 }
 0x512   : > { %4633 = vmatmul.mubr.bf16.gmra.mrb[72].mxu0 %v3719_v63  ;;  %4920 = vmatmul.mubr.bf16.gmra.mrb[124].mxu1 %v3719_v63 }
 0x513   : > { %4642 = vmatprep.mubr.bf16.mxu0 %v3724_v13  ;;  %4927 = vmatprep.mubr.bf16.mxu1 %v3724_v13 }
 0x51a   : > { %4643 = vmatmul.mubr.bf16.gmra.mrb[76].mxu0 %v3723_v30  ;;  %4928 = vmatmul.mubr.bf16.gmra.mrb[128].mxu1 %v3723_v30 }
 0x51b   : > { %4652 = vmatprep.mubr.bf16.mxu0 %v9692_v40  ;;  %4935 = vmatprep.mubr.bf16.mxu1 %v9692_v40 }
 0x522   : > { %4653 = vmatmul.mubr.bf16.gmra.mrb[80].mxu0 %v9696_v0  ;;  %4936 = vmatmul.mubr.bf16.gmra.mrb[132].mxu1 %v9696_v0 }
 0x523   : > { %4662 = vmatprep.mubr.bf16.mxu0 %v9700_v37  ;;  %4943 = vmatprep.mubr.bf16.mxu1 %v9700_v37 }
 0x529   : > { %v5907_v42 = vpop.f32.mrb[52].mxu1 }
 0x52a   : > { %4663 = vmatmul.mubr.bf16.gmra.mrb[84].mxu0 %v9704_v1  ;;  %4944 = vmatmul.mubr.bf16.gmra.mrb[136].mxu1 %v9704_v1  ;;  %v5908_v28 = vpop.f32.mrb[53].mxu1 }
 0x52b   : > { %4672 = vmatprep.mubr.bf16.mxu0 %v9709_v26  ;;  %4951 = vmatprep.mubr.bf16.mxu1 %v9709_v26  ;;  %v9745_v18 = vadd.f32 %v5908_v28, %v5907_v42  ;;  %v5910_v32 = vpop.f32.mrb[54].mxu1 }
 0x52c   : > { %v5911_v38 = vpop.f32.mrb[55].mxu1 }
 0x52d   : > { %v9747_v7 = vadd.f32 %v5911_v38, %v5910_v32 }
 0x532   : > { %4673 = vmatmul.mubr.bf16.gmra.mrb[88].mxu0 %v9713_v29  ;;  %4952 = vmatmul.mubr.bf16.gmra.mrb[140].mxu1 %v9713_v29 }
 0x533   : > { %4682 = vmatprep.mubr.bf16.mxu0 %v9716_v46  ;;  %4959 = vmatprep.mubr.bf16.mxu1 %v9716_v46 }
 0x539   : > { %v5913_v62 = vpop.f32.mrb[56].mxu1 }
 0x53a   : > { %4683 = vmatmul.mubr.bf16.gmra.mrb[92].mxu0 %v9719_v57  ;;  %4960 = vmatmul.mubr.bf16.gmra.mrb[144].mxu1 %v9719_v57  ;;  %v5914_v11 = vpop.f32.mrb[57].mxu1 }
 0x53b   : > { %4692 = vmatprep.mubr.bf16.mxu0 %v9723_v54  ;;  %4967 = vmatprep.mubr.bf16.mxu1 %v9723_v54  ;;  %v9757_v35 = vadd.f32 %v5914_v11, %v5913_v62  ;;  %v5916_v47 = vpop.f32.mrb[58].mxu1 }
 0x53c   : > { %v5917_v49 = vpop.f32.mrb[59].mxu1 }
 0x53d   : > { %v9759_v4 = vadd.f32 %v5917_v49, %v5916_v47 }
 0x542   : > { %4693 = vmatmul.mubr.bf16.gmra.mrb[96].mxu0 %v9721_v9  ;;  %4968 = vmatmul.mubr.bf16.gmra.mrb[148].mxu1 %v9721_v9 }
 0x543   : > { %4702 = vmatprep.mubr.bf16.mxu0 %v3748_v43  ;;  %4975 = vmatprep.mubr.bf16.mxu1 %v3748_v43 }
 0x546   : > { %v5919_v39 = vpop.f32.mrb[60].mxu1 }
 0x547   : > { %v5920_v6 = vpop.f32.mrb[61].mxu1 }
 0x548   : > { %v9763_v15 = vadd.f32 %v5920_v6, %v5919_v39  ;;  %v5922_v17 = vpop.f32.mrb[62].mxu1 }
 0x549   : > { %v5923_v63 = vpop.f32.mrb[63].mxu1 }
 0x54a   : > { %4703 = vmatmul.mubr.bf16.gmra.mrb[100].mxu0 %v3747_v24  ;;  %4976 = vmatmul.mubr.bf16.gmra.mrb[152].mxu1 %v3747_v24  ;;  %v9765_v45 = vadd.f32 %v5923_v63, %v5922_v17 }
 0x553   : > { %v5925_v25 = vpop.f32.mrb[64].mxu1 }
 0x554   : > { %v5926_v13 = vpop.f32.mrb[65].mxu1 }
 0x555   : > { %v9767_v51 = vadd.f32 %v5926_v13, %v5925_v25  ;;  %v5928_v30 = vpop.f32.mrb[66].mxu1 }
 0x556   : > { %v5929_v40 = vpop.f32.mrb[67].mxu1 }
 0x557   : > { %v9769_v60 = vadd.f32 %v5929_v40, %v5928_v30 }
 0x55f   : > { %v5931_v0 = vpop.f32.mrb[68].mxu1 }
 0x560   : > { %v5932_v37 = vpop.f32.mrb[69].mxu1 }
 0x561   : > { %v9771_v1 = vadd.f32 %v5932_v37, %v5931_v0  ;;  %v5934_v59 = vpop.f32.mrb[70].mxu1 }
 0x562   : > { %v5935_v3 = vpop.f32.mrb[71].mxu1 }
 0x563   : > { %v9773_v26 = vadd.f32 %v5935_v3, %v5934_v59 }
 0x56c   : > { %v5937_v29 = vpop.f32.mrb[72].mxu1 }
 0x56d   : > { %v5938_v58 = vpop.f32.mrb[73].mxu1 }
 0x56e   : > { %v9775_v46 = vadd.f32 %v5938_v58, %v5937_v29  ;;  %v5940_v57 = vpop.f32.mrb[74].mxu1 }
 0x56f   : > { %v5941_v55 = vpop.f32.mrb[75].mxu1 }
 0x570   : > { %v9777_v16 = vadd.f32 %v5941_v55, %v5940_v57 }
 0x579   : > { %v5943_v9 = vpop.f32.mrb[76].mxu1 }
 0x57a   : > { %v5944_v10 = vpop.f32.mrb[77].mxu1 }
 0x57b   : > { %v9779_v54 = vadd.f32 %v5944_v10, %v5943_v9  ;;  %v5946_v52 = vpop.f32.mrb[78].mxu1 }
 0x57c   : > { %v5947_v14 = vpop.f32.mrb[79].mxu1 }
 0x57d   : > { %v9781_v33 = vadd.f32 %v5947_v14, %v5946_v52 }
 0x586   : > { %v5949_v12 = vpop.f32.mrb[80].mxu1 }
 0x587   : > { %v5950_v56 = vpop.f32.mrb[81].mxu1 }
 0x588   : > { %v9783_v2 = vadd.f32 %v5950_v56, %v5949_v12  ;;  %v5952_v61 = vpop.f32.mrb[82].mxu1 }
 0x589   : > { %v5953_v21 = vpop.f32.mrb[83].mxu1 }
 0x58a   : > { %v9785_v5 = vadd.f32 %v5953_v21, %v5952_v61 }
 0x594   : > { %v5955_v20 = vpop.f32.mrb[84].mxu1 }
 0x595   : > { %v5956_v8 = vpop.f32.mrb[85].mxu1 }
 0x596   : > { %v9787_v19 = vadd.f32 %v5956_v8, %v5955_v20  ;;  %v5958_v34 = vpop.f32.mrb[86].mxu1 }
 0x597   : > { %v5959_v27 = vpop.f32.mrb[87].mxu1 }
 0x598   : > { %v9789_v42 = vadd.f32 %v5959_v27, %v5958_v34 }
 0x59d   : > { %v5961_v28 = vpop.f32.mrb[88].mxu1 }
 0x59e   : > { %v5962_v32 = vpop.f32.mrb[89].mxu1 }
 0x59f   : > { %v9791_v38 = vadd.f32 %v5962_v32, %v5961_v28  ;;  %v5964_v48 = vpop.f32.mrb[90].mxu1 }
 0x5a0   : > { %v5965_v53 = vpop.f32.mrb[91].mxu1 }
 0x5a1   : > { %v9793_v23 = vadd.f32 %v5965_v53, %v5964_v48 }
 0x5a5   : > { %v5967_v31 = vpop.f32.mrb[92].mxu1 }
 0x5a6   : > { %v5968_v62 = vpop.f32.mrb[93].mxu1 }
 0x5a7   : > { %v9795_v11 = vadd.f32 %v5968_v62, %v5967_v31  ;;  %v5970_v44 = vpop.f32.mrb[94].mxu1 }
 0x5a8   : > { %v5971_v36 = vpop.f32.mrb[95].mxu1 }
 0x5a9   : > { %v9797_v47 = vadd.f32 %v5971_v36, %v5970_v44 }
 0x5ad   : > { %v5973_v49 = vpop.f32.mrb[96].mxu1 }
 0x5ae   : > { %v5974_v41 = vpop.f32.mrb[97].mxu1 }
 0x5af   : > { %v9799_v43 = vadd.f32 %v5974_v41, %v5973_v49  ;;  %v5976_v22 = vpop.f32.mrb[98].mxu1 }
 0x5b0   : > { %v5977_v50 = vpop.f32.mrb[99].mxu1 }
 0x5b1   : > { %v9801_v39 = vadd.f32 %v5977_v50, %v5976_v22 }
 0x5b5   : > { %v5979_v24 = vpop.f32.mrb[100].mxu1 }
 0x5b6   : > { %v5980_v6 = vpop.f32.mrb[101].mxu1 }
 0x5b7   : > { %v9803_v17 = vadd.f32 %v5980_v6, %v5979_v24  ;;  %v5982_v63 = vpop.f32.mrb[102].mxu1 }
 0x5b8   : > { %v5983_v25 = vpop.f32.mrb[103].mxu1 }
 0x5bd   : > { %v9805_v13 = vpop.f32.mrb[52].mxu0  ;;  %v6001_v30 = vpop.f32.mrb[104].mxu1 }
 0x5be   : > { %v9807_v40 = vpop.f32.mrb[53].mxu0  ;;  %v6002_v0 = vpop.f32.mrb[105].mxu1 }
 0x5bf   : > { %v6003_v37 = vadd.f32 %v6002_v0, %v6001_v30  ;;  %v9809_v59 = vpop.f32.mrb[54].mxu0  ;;  %v6004_v3 = vpop.f32.mrb[106].mxu1 }
 0x5c0   : > { %v9811_v29 = vpop.f32.mrb[55].mxu0  ;;  %v6005_v58 = vpop.f32.mrb[107].mxu1 }
 0x5c1   : > { %v9814_v57 = vadd.f32 %v6003_v37, %v9745_v18  ;;  %v6006_v55 = vadd.f32 %v6005_v58, %v6004_v3 }
 0x5c3   : > { %v9817_v9 = vadd.f32 %v6006_v55, %v9747_v7 }
 0x5c5   : > { %10614 = vst [vmem:[#allocation95_spill] sm:$0xff] %v9817_v9  ;;  %v9819_v10 = vpop.f32.mrb[56].mxu0  ;;  %v6007_v52 = vpop.f32.mrb[108].mxu1 }
 0x5c6   : > { %v9821_v14 = vpop.f32.mrb[57].mxu0  ;;  %v6008_v12 = vpop.f32.mrb[109].mxu1 }
 0x5c7   : > { %v6009_v56 = vadd.f32 %v6008_v12, %v6007_v52  ;;  %v9823_v61 = vpop.f32.mrb[58].mxu0  ;;  %v6010_v21 = vpop.f32.mrb[110].mxu1 }
 0x5c8   : > { %v9825_v20 = vpop.f32.mrb[59].mxu0  ;;  %v6011_v8 = vpop.f32.mrb[111].mxu1 }
 0x5c9   : > { %v9828_v18 = vadd.f32 %v6009_v56, %v9757_v35  ;;  %v6012_v34 = vadd.f32 %v6011_v8, %v6010_v21 }
 0x5cb   : > { %v9831_v7 = vadd.f32 %v6012_v34, %v9759_v4 }
 0x5cd   : > { %v9833_v27 = vpop.f32.mrb[60].mxu0  ;;  %v6013_v28 = vpop.f32.mrb[112].mxu1 }
 0x5ce   : > { %v9835_v32 = vpop.f32.mrb[61].mxu0  ;;  %v6014_v48 = vpop.f32.mrb[113].mxu1 }
 0x5cf   : > { %v6015_v53 = vadd.f32 %v6014_v48, %v6013_v28  ;;  %v9837_v31 = vpop.f32.mrb[62].mxu0  ;;  %v6016_v62 = vpop.f32.mrb[114].mxu1 }
 0x5d0   : > { %v9839_v44 = vpop.f32.mrb[63].mxu0  ;;  %v6017_v36 = vpop.f32.mrb[115].mxu1 }
 0x5d1   : > { %v9842_v35 = vadd.f32 %v6015_v53, %v9763_v15  ;;  %v6018_v49 = vadd.f32 %v6017_v36, %v6016_v62 }
 0x5d3   : > { %v9845_v4 = vadd.f32 %v6018_v49, %v9765_v45 }
 0x5d5   : > { %v9847_v41 = vpop.f32.mrb[64].mxu0  ;;  %v6019_v22 = vpop.f32.mrb[116].mxu1 }
 0x5d6   : > { %v9849_v50 = vpop.f32.mrb[65].mxu0  ;;  %v6020_v24 = vpop.f32.mrb[117].mxu1 }
 0x5d7   : > { %v6021_v6 = vadd.f32 %v6020_v24, %v6019_v22  ;;  %v9851_v63 = vpop.f32.mrb[66].mxu0  ;;  %v6022_v25 = vpop.f32.mrb[118].mxu1 }
 0x5d8   : > { %v9853_v30 = vpop.f32.mrb[67].mxu0  ;;  %v6023_v0 = vpop.f32.mrb[119].mxu1 }
 0x5d9   : > { %v9856_v15 = vadd.f32 %v6021_v6, %v9767_v51  ;;  %v6024_v37 = vadd.f32 %v6023_v0, %v6022_v25 }
 0x5db   : > { %v9859_v45 = vadd.f32 %v6024_v37, %v9769_v60 }
 0x5dd   : > { %v9861_v3 = vpop.f32.mrb[68].mxu0  ;;  %v6025_v58 = vpop.f32.mrb[120].mxu1 }
 0x5de   : > { %v9863_v55 = vpop.f32.mrb[69].mxu0  ;;  %v6026_v52 = vpop.f32.mrb[121].mxu1 }
 0x5df   : > { %v6027_v12 = vadd.f32 %v6026_v52, %v6025_v58  ;;  %v9865_v56 = vpop.f32.mrb[70].mxu0  ;;  %v6028_v21 = vpop.f32.mrb[122].mxu1 }
 0x5e0   : > { %v9867_v8 = vpop.f32.mrb[71].mxu0  ;;  %v6029_v34 = vpop.f32.mrb[123].mxu1 }
 0x5e1   : > { %v9870_v51 = vadd.f32 %v6027_v12, %v9771_v1  ;;  %v6030_v28 = vadd.f32 %v6029_v34, %v6028_v21 }
 0x5e3   : > { %v9873_v60 = vadd.f32 %v6030_v28, %v9773_v26 }
 0x5e5   : > { %v9875_v48 = vpop.f32.mrb[72].mxu0  ;;  %v6031_v53 = vpop.f32.mrb[124].mxu1 }
 0x5e6   : > { %v9877_v62 = vpop.f32.mrb[73].mxu0  ;;  %v6032_v36 = vpop.f32.mrb[125].mxu1 }
 0x5e7   : > { %10615 = vst [vmem:[#allocation97_spill] sm:$0xff] %v9877_v62  ;;  %v6033_v49 = vadd.f32 %v6032_v36, %v6031_v53  ;;  %v9879_v22 = vpop.f32.mrb[74].mxu0  ;;  %v6034_v24 = vpop.f32.mrb[126].mxu1 }
 0x5e8   : > { %10616 = vst [vmem:[#allocation98_spill] sm:$0xff] %v9879_v22  ;;  %v9881_v6 = vpop.f32.mrb[75].mxu0  ;;  %v6035_v25 = vpop.f32.mrb[127].mxu1 }
 0x5e9   : > { %v9884_v1 = vadd.f32 %v6033_v49, %v9775_v46  ;;  %v6036_v0 = vadd.f32 %v6035_v25, %v6034_v24 }
 0x5eb   : > { %10617 = vst [vmem:[#allocation100_spill] sm:$0xff] %v9884_v1  ;;  %v9887_v26 = vadd.f32 %v6036_v0, %v9777_v16 }
 0x5ed   : > { %10618 = vst [vmem:[#allocation85_spill] sm:$0xff] %v9887_v26  ;;  %v9889_v37 = vpop.f32.mrb[76].mxu0  ;;  %v6037_v58 = vpop.f32.mrb[128].mxu1 }
 0x5ee   : > { %10619 = vst [vmem:[#allocation101_spill] sm:$0xff] %v9889_v37  ;;  %v9891_v52 = vpop.f32.mrb[77].mxu0  ;;  %v6038_v12 = vpop.f32.mrb[129].mxu1 }
 0x5ef   : > { %10620 = vst [vmem:[#allocation87_spill] sm:$0xff] %v9891_v52  ;;  %v6039_v21 = vadd.f32 %v6038_v12, %v6037_v58  ;;  %v9893_v34 = vpop.f32.mrb[78].mxu0  ;;  %v6040_v28 = vpop.f32.mrb[130].mxu1 }
 0x5f0   : > { %10621 = vst [vmem:[#allocation102_spill] sm:$0xff] %v9893_v34  ;;  %v9895_v53 = vpop.f32.mrb[79].mxu0  ;;  %v6041_v36 = vpop.f32.mrb[131].mxu1 }
 0x5f1   : > { %10622 = vst [vmem:[#allocation89_spill] sm:$0xff] %v9895_v53  ;;  %v9898_v46 = vadd.f32 %v6039_v21, %v9779_v54  ;;  %v6042_v49 = vadd.f32 %v6041_v36, %v6040_v28 }
 0x5f3   : > { %v9901_v16 = vadd.f32 %v6042_v49, %v9781_v33 }
 0x5f5   : > { %v9903_v24 = vpop.f32.mrb[80].mxu0  ;;  %v6043_v25 = vpop.f32.mrb[132].mxu1 }
 0x5f6   : > { %10623 = vst [vmem:[#allocation105_spill] sm:$0xff] %v9903_v24  ;;  %v9905_v0 = vpop.f32.mrb[81].mxu0  ;;  %v6044_v52 = vpop.f32.mrb[133].mxu1 }
 0x5f7   : > { %10624 = vst [vmem:[#allocation106_spill] sm:$0xff] %v9905_v0  ;;  %v6045_v58 = vadd.f32 %v6044_v52, %v6043_v25  ;;  %v9907_v12 = vpop.f32.mrb[82].mxu0  ;;  %v6046_v34 = vpop.f32.mrb[134].mxu1 }
 0x5f8   : > { %10625 = vst [vmem:[#allocation107_spill] sm:$0xff] %v9907_v12  ;;  %v9909_v37 = vpop.f32.mrb[83].mxu0  ;;  %v6047_v53 = vpop.f32.mrb[135].mxu1 }
 0x5f9   : > { %10626 = vst [vmem:[#allocation108_spill] sm:$0xff] %v9909_v37  ;;  %v9912_v54 = vadd.f32 %v6045_v58, %v9783_v2  ;;  %v6048_v21 = vadd.f32 %v6047_v53, %v6046_v34 }
 0x5fb   : > { %v9915_v33 = vadd.f32 %v6048_v21, %v9785_v5 }
 0x5fd   : > { %v9917_v28 = vpop.f32.mrb[84].mxu0  ;;  %v6049_v36 = vpop.f32.mrb[136].mxu1 }
 0x5fe   : > { %10627 = vst [vmem:[#allocation75_spill] sm:$0xff] %v9917_v28  ;;  %v9919_v49 = vpop.f32.mrb[85].mxu0  ;;  %v6050_v0 = vpop.f32.mrb[137].mxu1 }
 0x5ff   : > { %10628 = vst [vmem:[#allocation76_spill] sm:$0xff] %v9919_v49  ;;  %v6051_v52 = vadd.f32 %v6050_v0, %v6049_v36  ;;  %v9921_v25 = vpop.f32.mrb[86].mxu0  ;;  %v6052_v12 = vpop.f32.mrb[138].mxu1 }
 0x600   : > { %10629 = vst [vmem:[#allocation78_spill] sm:$0xff] %v9921_v25  ;;  %v9923_v24 = vpop.f32.mrb[87].mxu0  ;;  %v6053_v37 = vpop.f32.mrb[139].mxu1 }
 0x601   : > { %10630 = vst [vmem:[#allocation80_spill] sm:$0xff] %v9923_v24  ;;  %v9926_v2 = vadd.f32 %v6051_v52, %v9787_v19  ;;  %v6054_v34 = vadd.f32 %v6053_v37, %v6052_v12 }
 0x603   : > { %v9929_v5 = vadd.f32 %v6054_v34, %v9789_v42 }
 0x605   : > { %v9931_v53 = vpop.f32.mrb[88].mxu0  ;;  %v6055_v58 = vpop.f32.mrb[140].mxu1 }
 0x606   : > { %10631 = vst [vmem:[#allocation77_spill] sm:$0xff] %v9931_v53  ;;  %v9933_v21 = vpop.f32.mrb[89].mxu0  ;;  %v6056_v49 = vpop.f32.mrb[141].mxu1 }
 0x607   : > { %10632 = vst [vmem:[#allocation79_spill] sm:$0xff] %v9933_v21  ;;  %v6057_v0 = vadd.f32 %v6056_v49, %v6055_v58  ;;  %v9935_v36 = vpop.f32.mrb[90].mxu0  ;;  %v6058_v25 = vpop.f32.mrb[142].mxu1 }
 0x608   : > { %10633 = vst [vmem:[#allocation82_spill] sm:$0xff] %v9935_v36  ;;  %v9937_v28 = vpop.f32.mrb[91].mxu0  ;;  %v6059_v24 = vpop.f32.mrb[143].mxu1 }
 0x609   : > { %10634 = vst [vmem:[#allocation86_spill] sm:$0xff] %v9937_v28  ;;  %v9940_v19 = vadd.f32 %v6057_v0, %v9791_v38  ;;  %v6060_v37 = vadd.f32 %v6059_v24, %v6058_v25 }
 0x60b   : > { %v9943_v42 = vadd.f32 %v6060_v37, %v9793_v23 }
 0x60d   : > { %10635 = vst [vmem:[#allocation81_spill] sm:$0xff] %v9943_v42  ;;  %v9945_v12 = vpop.f32.mrb[92].mxu0  ;;  %v6061_v52 = vpop.f32.mrb[144].mxu1 }
 0x60e   : > { %10636 = vst [vmem:[#allocation84_spill] sm:$0xff] %v9945_v12  ;;  %v9947_v34 = vpop.f32.mrb[93].mxu0  ;;  %v6062_v21 = vpop.f32.mrb[145].mxu1 }
 0x60f   : > { %10637 = vst [vmem:[#allocation91_spill] sm:$0xff] %v9947_v34  ;;  %v6063_v49 = vadd.f32 %v6062_v21, %v6061_v52  ;;  %v9949_v58 = vpop.f32.mrb[94].mxu0  ;;  %v6064_v36 = vpop.f32.mrb[146].mxu1 }
 0x610   : > { %10638 = vst [vmem:[#allocation93_spill] sm:$0xff] %v9949_v58  ;;  %v9951_v53 = vpop.f32.mrb[95].mxu0  ;;  %v6065_v28 = vpop.f32.mrb[147].mxu1 }
 0x611   : > { %10639 = vst [vmem:[#allocation90_spill] sm:$0xff] %v9951_v53  ;;  %v9954_v38 = vadd.f32 %v6063_v49, %v9795_v11  ;;  %v6066_v24 = vadd.f32 %v6065_v28, %v6064_v36 }
 0x613   : > { %v9957_v23 = vadd.f32 %v6066_v24, %v9797_v47 }
 0x615   : > { %10640 = vst [vmem:[#allocation92_spill] sm:$0xff] %v9957_v23  ;;  %v9959_v25 = vpop.f32.mrb[96].mxu0  ;;  %v6067_v0 = vpop.f32.mrb[148].mxu1 }
 0x616   : > { %10641 = vst [vmem:[#allocation96_spill] sm:$0xff] %v9959_v25  ;;  %v9961_v37 = vpop.f32.mrb[97].mxu0  ;;  %v6068_v34 = vpop.f32.mrb[149].mxu1 }
 0x617   : > { %10642 = vst [vmem:[#allocation83_spill] sm:$0xff] %v9961_v37  ;;  %v6069_v21 = vadd.f32 %v6068_v34, %v6067_v0  ;;  %v9963_v52 = vpop.f32.mrb[98].mxu0  ;;  %v6070_v58 = vpop.f32.mrb[150].mxu1 }
 0x618   : > { %10643 = vst [vmem:[#allocation94_spill] sm:$0xff] %v9963_v52  ;;  %v9965_v12 = vpop.f32.mrb[99].mxu0  ;;  %v6071_v53 = vpop.f32.mrb[151].mxu1 }
 0x619   : > { %10644 = vst [vmem:[#allocation99_spill] sm:$0xff] %v9965_v12  ;;  %v9968_v11 = vadd.f32 %v6069_v21, %v9799_v43  ;;  %v6072_v28 = vadd.f32 %v6071_v53, %v6070_v58  ;;  %v4986_v43 = vld [vmem:[#allocation14] sm:$0x7] (!%p10646_p9) }
 0x61b   : > { %v9971_v47 = vadd.f32 %v6072_v28, %v9801_v39  ;;  %4985 = sbr.rel (%p10646_p9) target bundleno = 1608 (0x648), region = 92  ;;  %v10647_v39 = vld [vmem:[#allocation73_spill] sm:$0xff] (!%p10646_p9) }
 0x61c   : > { %v10648_v53 = vsub.s32 (!%p10646_p9), 0, %v10647_v39  ;;  %v10649_v21 = vsub.s32 (!%p10646_p9), 1, %v10647_v39 }
 0x61d   : > { %v9973_v36 = vpop.f32.mrb[100].mxu0  ;;  %v6073_v49 = vpop.f32.mrb[152].mxu1 }
 0x61e   : > { %v9975_v24 = vpop.f32.mrb[101].mxu0  ;;  %v6074_v37 = vpop.f32.mrb[153].mxu1  ;;  %v9984_v58 = vrot.slane (!%p10646_p9), %v4986_v43, %v10648_v53  ;;  %v9988_v28 = vrot.slane (!%p10646_p9), %v4986_v43, %v10649_v21 }
 0x61f   : > { %v6075_v34 = vadd.f32 %v6074_v37, %v6073_v49  ;;  %v4708_v0 = vpop.f32.mrb[102].mxu0  ;;  %v6076_v52 = vpop.f32.mrb[154].mxu1  ;;  %v10650_v37 = vsub.s32 (!%p10646_p9), 2, %v10647_v39 }
 0x620   : > { %v4709_v25 = vpop.f32.mrb[103].mxu0  ;;  %v6077_v23 = vpop.f32.mrb[155].mxu1  ;;  %v5006_v49 = vadd.f32 (!%p10646_p9), %v9984_v58, %v9809_v59  ;;  %v5010_v39 = vadd.f32 (!%p10646_p9), %v9988_v28, %v9821_v14  ;;  %v5012_v21 = vadd.f32 (!%p10646_p9), %v9984_v58, %v9823_v61 }
 0x621   : > { %v9978_v12 = vadd.f32 %v6075_v34, %v9803_v17  ;;  %v9992_v52 = vrot.slane (!%p10646_p9), %v4986_v43, %v10650_v37  ;;  %v5003_v17 = vadd.f32 (!%p10646_p9), %v9984_v58, %v9805_v13  ;;  %v5004_v23 = vadd.f32 (!%p10646_p9), %v9988_v28, %v9807_v40 }
 0x622   : > { %v5007_v34 = vadd.f32 %v9988_v28, %v9811_v29  ;;  %v5009_v43 = vadd.f32 %v9984_v58, %v9819_v10  ;;  %5081 = vst [vmem:[#allocation15 + $0x18] sm:$0xff] %v5006_v49  ;;  %v5013_v37 = vadd.f32 %v9988_v28, %v9825_v20  ;;  %5085 = vst [vmem:[#allocation15 + $0x38] sm:$0xff] %v5010_v39 }
 0x623   : > { %v5005_v25 = vadd.f32 %v9992_v52, %v9814_v57  ;;  %v5008_v0 = vadd.f32 %v9992_v52, %v9817_v9  ;;  %5078 = vst [vmem:[#allocation15] sm:$0xff] %v5003_v17  ;;  %5079 = vst [vmem:[#allocation15 + $0x8] sm:$0xff] %v5004_v23  ;;  %v5011_v53 = vadd.f32 %v9992_v52, %v9828_v18 }
 0x624   : > { %v5014_v9 = vadd.f32 %v9992_v52, %v9831_v7  ;;  %5082 = vst [vmem:[#allocation15 + $0x20] sm:$0xff] %v5007_v34  ;;  %5084 = vst [vmem:[#allocation15 + $0x30] sm:$0xff] %v5009_v43  ;;  %v5015_v17 = vadd.f32 %v9984_v58, %v9833_v27  ;;  %v5016_v23 = vadd.f32 %v9988_v28, %v9835_v32 }
 0x625   : > { %5080 = vst [vmem:[#allocation15 + $0x10] sm:$0xff] %v5005_v25  ;;  %5083 = vst [vmem:[#allocation15 + $0x28] sm:$0xff] %v5008_v0  ;;  %v5017_v25 = vadd.f32 %v9992_v52, %v9842_v35  ;;  %v5018_v49 = vadd.f32 %v9984_v58, %v9837_v31  ;;  %v5019_v34 = vadd.f32 %v9988_v28, %v9839_v44 }
 0x626   : > { %5086 = vst [vmem:[#allocation15 + $0x40] sm:$0xff] %v5011_v53  ;;  %5087 = vst [vmem:[#allocation15 + $0x48] sm:$0xff] %v5012_v21  ;;  %v5020_v0 = vadd.f32 %v9992_v52, %v9845_v4  ;;  %v5021_v43 = vadd.f32 %v9984_v58, %v9847_v41  ;;  %v5022_v39 = vadd.f32 %v9988_v28, %v9849_v50 }
 0x627   : > { %5088 = vst [vmem:[#allocation15 + $0x50] sm:$0xff] %v5013_v37  ;;  %5089 = vst [vmem:[#allocation15 + $0x58] sm:$0xff] %v5014_v9  ;;  %v5023_v53 = vadd.f32 %v9992_v52, %v9856_v15  ;;  %v5024_v9 = vadd.f32 %v9984_v58, %v9851_v63  ;;  %v5025_v21 = vadd.f32 %v9988_v28, %v9853_v30 }
 0x628   : > { %5090 = vst [vmem:[#allocation15 + $0x60] sm:$0xff] %v5015_v17  ;;  %5091 = vst [vmem:[#allocation15 + $0x68] sm:$0xff] %v5016_v23  ;;  %v5026_v37 = vadd.f32 %v9992_v52, %v9859_v45  ;;  %v5027_v17 = vadd.f32 %v9984_v58, %v9861_v3  ;;  %v5028_v23 = vadd.f32 %v9988_v28, %v9863_v55 }
 0x629   : > { %5092 = vst [vmem:[#allocation15 + $0x70] sm:$0xff] %v5017_v25  ;;  %5093 = vst [vmem:[#allocation15 + $0x78] sm:$0xff] %v5018_v49  ;;  %v5029_v25 = vadd.f32 %v9992_v52, %v9870_v51  ;;  %v5030_v49 = vadd.f32 %v9984_v58, %v9865_v56 }
 0x62a   : > { %5094 = vst [vmem:[#allocation15 + $0x80] sm:$0xff] %v5019_v34  ;;  %5095 = vst [vmem:[#allocation15 + $0x88] sm:$0xff] %v5020_v0  ;;  %v5031_v34 = vadd.f32 %v9988_v28, %v9867_v8  ;;  %v5032_v0 = vadd.f32 %v9992_v52, %v9873_v60 }
 0x62b   : > { %5096 = vst [vmem:[#allocation15 + $0x90] sm:$0xff] %v5021_v43  ;;  %5097 = vst [vmem:[#allocation15 + $0x98] sm:$0xff] %v5022_v39  ;;  %v5033_v43 = vadd.f32 %v9984_v58, %v9875_v48  ;;  %v5034_v39 = vadd.f32 %v9988_v28, %v9877_v62 }
 0x62c   : > { %5098 = vst [vmem:[#allocation15 + $0xa0] sm:$0xff] %v5023_v53  ;;  %5099 = vst [vmem:[#allocation15 + $0xa8] sm:$0xff] %v5024_v9  ;;  %v5035_v53 = vadd.f32 %v9992_v52, %v9884_v1  ;;  %v5036_v9 = vadd.f32 %v9984_v58, %v9879_v22  ;;  %v5041_v1 = vadd.f32 %v9992_v52, %v9898_v46  ;;  %v10653_v22 = vld [vmem:[#allocation102_spill] sm:$0xff] }
 0x62d   : > { %5100 = vst [vmem:[#allocation15 + $0xb0] sm:$0xff] %v5025_v21  ;;  %5101 = vst [vmem:[#allocation15 + $0xb8] sm:$0xff] %v5026_v37  ;;  %v5037_v21 = vadd.f32 %v9988_v28, %v9881_v6  ;;  %v5038_v37 = vadd.f32 %v9992_v52, %v9887_v26  ;;  %v5042_v62 = vadd.f32 %v9984_v58, %v10653_v22 }
 0x62e   : > { %5102 = vst [vmem:[#allocation15 + $0xc0] sm:$0xff] %v5027_v17  ;;  %5103 = vst [vmem:[#allocation15 + $0xc8] sm:$0xff] %v5028_v23  ;;  %v10651_v17 = vld [vmem:[#allocation101_spill] sm:$0xff]  ;;  %v5047_v22 = vadd.f32 %v9992_v52, %v9912_v54 }
 0x62f   : > { %5104 = vst [vmem:[#allocation15 + $0xd0] sm:$0xff] %v5029_v25  ;;  %5105 = vst [vmem:[#allocation15 + $0xd8] sm:$0xff] %v5030_v49  ;;  %v5039_v23 = vadd.f32 %v9984_v58, %v10651_v17  ;;  %v10652_v25 = vld [vmem:[#allocation87_spill] sm:$0xff] }
 0x630   : > { %5106 = vst [vmem:[#allocation15 + $0xe0] sm:$0xff] %v5031_v34  ;;  %5107 = vst [vmem:[#allocation15 + $0xe8] sm:$0xff] %v5032_v0  ;;  %v5040_v49 = vadd.f32 %v9988_v28, %v10652_v25  ;;  %v10654_v34 = vld [vmem:[#allocation89_spill] sm:$0xff]  ;;  %v10656_v25 = vld [vmem:[#allocation106_spill] sm:$0xff] }
 0x631   : > { %5108 = vst [vmem:[#allocation15 + $0xf0] sm:$0xff] %v5033_v43  ;;  %5109 = vst [vmem:[#allocation15 + $0xf8] sm:$0xff] %v5034_v39  ;;  %v5043_v0 = vadd.f32 %v9988_v28, %v10654_v34  ;;  %v5044_v43 = vadd.f32 %v9992_v52, %v9901_v16  ;;  %v10655_v39 = vld [vmem:[#allocation105_spill] sm:$0xff]  ;;  %v5046_v26 = vadd.f32 %v9988_v28, %v10656_v25  ;;  %v10661_v25 = vld [vmem:[#allocation78_spill] sm:$0xff] }
 0x632   : > { %5110 = vst [vmem:[#allocation15 + $0x100] sm:$0xff] %v5035_v53  ;;  %5111 = vst [vmem:[#allocation15 + $0x108] sm:$0xff] %v5036_v9  ;;  %v5045_v17 = vadd.f32 %v9984_v58, %v10655_v39  ;;  %v10657_v53 = vld [vmem:[#allocation107_spill] sm:$0xff]  ;;  %v5050_v34 = vadd.f32 %v9992_v52, %v9915_v33  ;;  %v5053_v39 = vadd.f32 %v9992_v52, %v9926_v2 }
 0x633   : > { %5112 = vst [vmem:[#allocation15 + $0x110] sm:$0xff] %v5037_v21  ;;  %5113 = vst [vmem:[#allocation15 + $0x118] sm:$0xff] %v5038_v37  ;;  %v5048_v9 = vadd.f32 %v9984_v58, %v10657_v53  ;;  %v10658_v21 = vld [vmem:[#allocation108_spill] sm:$0xff]  ;;  %v5054_v53 = vadd.f32 %v9984_v58, %v10661_v25 }
 0x634   : > { %5114 = vst [vmem:[#allocation15 + $0x120] sm:$0xff] %v5039_v23  ;;  %5115 = vst [vmem:[#allocation15 + $0x128] sm:$0xff] %v5040_v49  ;;  %v5049_v37 = vadd.f32 %v9988_v28, %v10658_v21  ;;  %v10659_v23 = vld [vmem:[#allocation75_spill] sm:$0xff] }
 0x635   : > { %5116 = vst [vmem:[#allocation15 + $0x130] sm:$0xff] %v5041_v1  ;;  %5117 = vst [vmem:[#allocation15 + $0x138] sm:$0xff] %v5042_v62  ;;  %v5051_v1 = vadd.f32 %v9984_v58, %v10659_v23  ;;  %v10660_v62 = vld [vmem:[#allocation76_spill] sm:$0xff]  ;;  %v10664_v23 = vld [vmem:[#allocation79_spill] sm:$0xff] }
 0x636   : > { %5118 = vst [vmem:[#allocation15 + $0x140] sm:$0xff] %v5043_v0  ;;  %5119 = vst [vmem:[#allocation15 + $0x148] sm:$0xff] %v5044_v43  ;;  %v5052_v49 = vadd.f32 %v9988_v28, %v10660_v62  ;;  %v10662_v0 = vld [vmem:[#allocation80_spill] sm:$0xff]  ;;  %v5058_v62 = vadd.f32 %v9988_v28, %v10664_v23  ;;  %v10669_v23 = vld [vmem:[#allocation93_spill] sm:$0xff] }
 0x637   : > { %5120 = vst [vmem:[#allocation15 + $0x150] sm:$0xff] %v5045_v17  ;;  %5121 = vst [vmem:[#allocation15 + $0x158] sm:$0xff] %v5046_v26  ;;  %v5055_v43 = vadd.f32 %v9988_v28, %v10662_v0  ;;  %v5056_v26 = vadd.f32 %v9992_v52, %v9929_v5  ;;  %v10663_v17 = vld [vmem:[#allocation77_spill] sm:$0xff]  ;;  %v5062_v0 = vadd.f32 %v9992_v52, %v9943_v42 }
 0x638   : > { %5122 = vst [vmem:[#allocation15 + $0x160] sm:$0xff] %v5047_v22  ;;  %5123 = vst [vmem:[#allocation15 + $0x168] sm:$0xff] %v5048_v9  ;;  %v5057_v21 = vadd.f32 %v9984_v58, %v10663_v17  ;;  %v5059_v22 = vadd.f32 %v9992_v52, %v9940_v19  ;;  %v10665_v9 = vld [vmem:[#allocation82_spill] sm:$0xff]  ;;  %v5065_v17 = vadd.f32 %v9992_v52, %v9954_v38 }
 0x639   : > { %5124 = vst [vmem:[#allocation15 + $0x170] sm:$0xff] %v5049_v37  ;;  %5125 = vst [vmem:[#allocation15 + $0x178] sm:$0xff] %v5050_v34  ;;  %v5060_v37 = vadd.f32 %v9984_v58, %v10665_v9  ;;  %v10666_v34 = vld [vmem:[#allocation86_spill] sm:$0xff]  ;;  %v5066_v9 = vadd.f32 %v9984_v58, %v10669_v23 }
 0x63a   : > { %5126 = vst [vmem:[#allocation15 + $0x180] sm:$0xff] %v5051_v1  ;;  %5127 = vst [vmem:[#allocation15 + $0x188] sm:$0xff] %v5052_v49  ;;  %v5061_v25 = vadd.f32 %v9988_v28, %v10666_v34  ;;  %v10667_v1 = vld [vmem:[#allocation84_spill] sm:$0xff] }
 0x63b   : > { %5128 = vst [vmem:[#allocation15 + $0x190] sm:$0xff] %v5053_v39  ;;  %5129 = vst [vmem:[#allocation15 + $0x198] sm:$0xff] %v5054_v53  ;;  %v5063_v49 = vadd.f32 %v9984_v58, %v10667_v1  ;;  %v10668_v39 = vld [vmem:[#allocation91_spill] sm:$0xff]  ;;  %v10672_v34 = vld [vmem:[#allocation96_spill] sm:$0xff] }
 0x63c   : > { %5130 = vst [vmem:[#allocation15 + $0x1a0] sm:$0xff] %v5055_v43  ;;  %5131 = vst [vmem:[#allocation15 + $0x1a8] sm:$0xff] %v5056_v26  ;;  %v5064_v53 = vadd.f32 %v9988_v28, %v10668_v39  ;;  %v10670_v43 = vld [vmem:[#allocation90_spill] sm:$0xff]  ;;  %v5069_v1 = vadd.f32 %v9984_v58, %v10672_v34  ;;  %v10673_v39 = vld [vmem:[#allocation83_spill] sm:$0xff] }
 0x63d   : > { %5132 = vst [vmem:[#allocation15 + $0x1b0] sm:$0xff] %v5057_v21  ;;  %5133 = vst [vmem:[#allocation15 + $0x1b8] sm:$0xff] %v5058_v62  ;;  %v5067_v26 = vadd.f32 %v9988_v28, %v10670_v43  ;;  %v10671_v21 = vld [vmem:[#allocation92_spill] sm:$0xff]  ;;  %v5070_v42 = vadd.f32 %v9988_v28, %v10673_v39  ;;  %v5074_v43 = vadd.f32 %v9992_v52, %v9971_v47 }
 0x63e   : > { %5134 = vst [vmem:[#allocation15 + $0x1c0] sm:$0xff] %v5059_v22  ;;  %5135 = vst [vmem:[#allocation15 + $0x1c8] sm:$0xff] %v5060_v37  ;;  %v5068_v62 = vadd.f32 %v9992_v52, %v10671_v21  ;;  %v5071_v22 = vadd.f32 %v9992_v52, %v9968_v11  ;;  %v10674_v37 = vld [vmem:[#allocation94_spill] sm:$0xff] }
 0x63f   : > { %5136 = vst [vmem:[#allocation15 + $0x1d0] sm:$0xff] %v5061_v25  ;;  %5137 = vst [vmem:[#allocation15 + $0x1d8] sm:$0xff] %v5062_v0  ;;  %v5072_v25 = vadd.f32 %v9984_v58, %v10674_v37  ;;  %v10675_v0 = vld [vmem:[#allocation99_spill] sm:$0xff] }
 0x640   : > { %5138 = vst [vmem:[#allocation15 + $0x1e0] sm:$0xff] %v5063_v49  ;;  %5139 = vst [vmem:[#allocation15 + $0x1e8] sm:$0xff] %v5064_v53  ;;  %v5073_v23 = vadd.f32 %v9988_v28, %v10675_v0  ;;  %v5075_v49 = vadd.f32 %v9984_v58, %v9973_v36  ;;  %v5076_v53 = vadd.f32 %v9988_v28, %v9975_v24 }
 0x641   : > { %5140 = vst [vmem:[#allocation15 + $0x1f0] sm:$0xff] %v5065_v17  ;;  %5141 = vst [vmem:[#allocation15 + $0x1f8] sm:$0xff] %v5066_v9  ;;  %v5077_v17 = vadd.f32 %v9992_v52, %v9978_v12 }
 0x642   : > { %5142 = vst [vmem:[#allocation15 + $0x200] sm:$0xff] %v5067_v26  ;;  %5143 = vst [vmem:[#allocation15 + $0x208] sm:$0xff] %v5068_v62 }
 0x643   : > { %5144 = vst [vmem:[#allocation15 + $0x210] sm:$0xff] %v5069_v1  ;;  %5145 = vst [vmem:[#allocation15 + $0x218] sm:$0xff] %v5070_v42 }
 0x644   : > { %5146 = vst [vmem:[#allocation15 + $0x220] sm:$0xff] %v5071_v22  ;;  %5147 = vst [vmem:[#allocation15 + $0x228] sm:$0xff] %v5072_v25 }
 0x645   : > { %5148 = vst [vmem:[#allocation15 + $0x230] sm:$0xff] %v5073_v23  ;;  %5149 = vst [vmem:[#allocation15 + $0x238] sm:$0xff] %v5074_v43 }
 0x646   : > { %5150 = vst [vmem:[#allocation15 + $0x240] sm:$0xf] %v5075_v49  ;;  %5151 = vst [vmem:[#allocation15 + $0x248] sm:$0xf] %v5076_v53 }
 0x647   : > { %5152 = vst [vmem:[#allocation15 + $0x250] sm:$0xf] %v5077_v17 }
 0x648 PF: > { %s10676_s19 = sld [smem:[#allocation23_spill]] }
 0x64e   : > { %p5834_p10 = scmp.le.s32.totalorder %s10676_s19, 0 }
 0x64f   : > { %v5157_v42 = vld [vmem:[#allocation15] sm:$0xff] (!%p5834_p10)  ;;  %v5158_v9 = vld [vmem:[#allocation15 + $0x8] sm:$0xff] (!%p5834_p10)  ;;  %v5159_v58 = vld [vmem:[#allocation15 + $0x10] sm:$0xff] (!%p5834_p10) }
 0x650   : > { %5156 = sbr.rel (%p5834_p10) target bundleno = 1664 (0x680), region = 96  ;;  %v5232_v26 = vadd.f32 (!%p5834_p10), %v5157_v42, %v9805_v13  ;;  %v5233_v28 = vadd.f32 (!%p5834_p10), %v5158_v9, %v9807_v40  ;;  %v5234_v52 = vadd.f32 (!%p5834_p10), %v5159_v58, %v9814_v57  ;;  %v5160_v21 = vld [vmem:[#allocation15 + $0x18] sm:$0xff] (!%p5834_p10)  ;;  %v5161_v62 = vld [vmem:[#allocation15 + $0x20] sm:$0xff] (!%p5834_p10)  ;;  %v5162_v34 = vld [vmem:[#allocation15 + $0x28] sm:$0xff] (!%p5834_p10) }
 0x651   : > { %v5235_v1 = vadd.f32 (!%p5834_p10), %v5160_v21, %v9809_v59  ;;  %v5236_v39 = vadd.f32 (!%p5834_p10), %v5161_v62, %v9811_v29  ;;  %v10677_v22 = vld [vmem:[#allocation95_spill] sm:$0xff] (!%p5834_p10)  ;;  %v5163_v25 = vld [vmem:[#allocation15 + $0x30] sm:$0xff] (!%p5834_p10)  ;;  %v5164_v0 = vld [vmem:[#allocation15 + $0x38] sm:$0xff] (!%p5834_p10) }
 0x652   : > { %v5237_v37 = vadd.f32 (!%p5834_p10), %v5162_v34, %v10677_v22  ;;  %v5165_v23 = vld [vmem:[#allocation15 + $0x40] sm:$0xff] (!%p5834_p10)  ;;  %5307 = vst [vmem:[#allocation15] sm:$0xff] (!%p5834_p10), %v5232_v26  ;;  %5308 = vst [vmem:[#allocation15 + $0x8] sm:$0xff] (!%p5834_p10), %v5233_v28  ;;  %v5238_v13 = vadd.f32 (!%p5834_p10), %v5163_v25, %v9819_v10  ;;  %v5239_v40 = vadd.f32 (!%p5834_p10), %v5164_v0, %v9821_v14  ;;  %v5166_v43 = vld [vmem:[#allocation15 + $0x48] sm:$0xff] (!%p5834_p10) }
 0x653   : > { %5309 = vst [vmem:[#allocation15 + $0x10] sm:$0xff] (!%p5834_p10), %v5234_v52  ;;  %v5240_v57 = vadd.f32 (!%p5834_p10), %v5165_v23, %v9828_v18  ;;  %v5167_v49 = vld [vmem:[#allocation15 + $0x50] sm:$0xff] (!%p5834_p10)  ;;  %v5168_v53 = vld [vmem:[#allocation15 + $0x58] sm:$0xff] (!%p5834_p10)  ;;  %5310 = vst [vmem:[#allocation15 + $0x18] sm:$0xff] (!%p5834_p10), %v5235_v1  ;;  %v5241_v59 = vadd.f32 (!%p5834_p10), %v5166_v43, %v9823_v61 }
 0x654   : > { %5311 = vst [vmem:[#allocation15 + $0x20] sm:$0xff] (!%p5834_p10), %v5236_v39  ;;  %5312 = vst [vmem:[#allocation15 + $0x28] sm:$0xff] (!%p5834_p10), %v5237_v37  ;;  %v5242_v29 = vadd.f32 (!%p5834_p10), %v5167_v49, %v9825_v20  ;;  %v5243_v17 = vadd.f32 (!%p5834_p10), %v5168_v53, %v9831_v7  ;;  %v5169_v42 = vld [vmem:[#allocation15 + $0x60] sm:$0xff] (!%p5834_p10)  ;;  %v5170_v9 = vld [vmem:[#allocation15 + $0x68] sm:$0xff] (!%p5834_p10) }
 0x655   : > { %v5171_v58 = vld [vmem:[#allocation15 + $0x70] sm:$0xff] (!%p5834_p10)  ;;  %5313 = vst [vmem:[#allocation15 + $0x30] sm:$0xff] (!%p5834_p10), %v5238_v13  ;;  %5314 = vst [vmem:[#allocation15 + $0x38] sm:$0xff] (!%p5834_p10), %v5239_v40  ;;  %v5244_v10 = vadd.f32 (!%p5834_p10), %v5169_v42, %v9833_v27  ;;  %v5245_v14 = vadd.f32 (!%p5834_p10), %v5170_v9, %v9835_v32  ;;  %v5172_v26 = vld [vmem:[#allocation15 + $0x78] sm:$0xff] (!%p5834_p10) }
 0x656   : > { %5315 = vst [vmem:[#allocation15 + $0x40] sm:$0xff] (!%p5834_p10), %v5240_v57  ;;  %v5246_v18 = vadd.f32 (!%p5834_p10), %v5171_v58, %v9842_v35  ;;  %v5173_v28 = vld [vmem:[#allocation15 + $0x80] sm:$0xff] (!%p5834_p10)  ;;  %v5174_v52 = vld [vmem:[#allocation15 + $0x88] sm:$0xff] (!%p5834_p10)  ;;  %5316 = vst [vmem:[#allocation15 + $0x48] sm:$0xff] (!%p5834_p10), %v5241_v59  ;;  %v5247_v61 = vadd.f32 (!%p5834_p10), %v5172_v26, %v9837_v31 }
 0x657   : > { %5317 = vst [vmem:[#allocation15 + $0x50] sm:$0xff] %v5242_v29  ;;  %5318 = vst [vmem:[#allocation15 + $0x58] sm:$0xff] %v5243_v17  ;;  %v5248_v20 = vadd.f32 %v5173_v28, %v9839_v44  ;;  %v5249_v7 = vadd.f32 %v5174_v52, %v9845_v4  ;;  %v5175_v21 = vld [vmem:[#allocation15 + $0x90] sm:$0xff]  ;;  %v5176_v62 = vld [vmem:[#allocation15 + $0x98] sm:$0xff] }
 0x658   : > { %v5177_v34 = vld [vmem:[#allocation15 + $0xa0] sm:$0xff]  ;;  %5319 = vst [vmem:[#allocation15 + $0x60] sm:$0xff] %v5244_v10  ;;  %5320 = vst [vmem:[#allocation15 + $0x68] sm:$0xff] %v5245_v14  ;;  %v5250_v27 = vadd.f32 %v5175_v21, %v9847_v41  ;;  %v5251_v32 = vadd.f32 %v5176_v62, %v9849_v50  ;;  %v5178_v1 = vld [vmem:[#allocation15 + $0xa8] sm:$0xff] }
 0x659   : > { %5321 = vst [vmem:[#allocation15 + $0x70] sm:$0xff] %v5246_v18  ;;  %v5252_v35 = vadd.f32 %v5177_v34, %v9856_v15  ;;  %v5179_v39 = vld [vmem:[#allocation15 + $0xb0] sm:$0xff]  ;;  %v5180_v22 = vld [vmem:[#allocation15 + $0xb8] sm:$0xff]  ;;  %5322 = vst [vmem:[#allocation15 + $0x78] sm:$0xff] %v5247_v61  ;;  %v5253_v31 = vadd.f32 %v5178_v1, %v9851_v63 }
 0x65a   : > { %5323 = vst [vmem:[#allocation15 + $0x80] sm:$0xff] %v5248_v20  ;;  %5324 = vst [vmem:[#allocation15 + $0x88] sm:$0xff] %v5249_v7  ;;  %v5254_v44 = vadd.f32 %v5179_v39, %v9853_v30  ;;  %v5255_v4 = vadd.f32 %v5180_v22, %v9859_v45  ;;  %v5181_v37 = vld [vmem:[#allocation15 + $0xc0] sm:$0xff]  ;;  %v5182_v25 = vld [vmem:[#allocation15 + $0xc8] sm:$0xff] }
 0x65b   : > { %v5183_v0 = vld [vmem:[#allocation15 + $0xd0] sm:$0xff]  ;;  %5325 = vst [vmem:[#allocation15 + $0x90] sm:$0xff] %v5250_v27  ;;  %5326 = vst [vmem:[#allocation15 + $0x98] sm:$0xff] %v5251_v32  ;;  %v5256_v41 = vadd.f32 %v5181_v37, %v9861_v3  ;;  %v5257_v50 = vadd.f32 %v5182_v25, %v9863_v55  ;;  %v5184_v23 = vld [vmem:[#allocation15 + $0xd8] sm:$0xff] }
 0x65c   : > { %5327 = vst [vmem:[#allocation15 + $0xa0] sm:$0xff] %v5252_v35  ;;  %v5258_v15 = vadd.f32 %v5183_v0, %v9870_v51  ;;  %v5185_v13 = vld [vmem:[#allocation15 + $0xe0] sm:$0xff]  ;;  %v5186_v40 = vld [vmem:[#allocation15 + $0xe8] sm:$0xff]  ;;  %5328 = vst [vmem:[#allocation15 + $0xa8] sm:$0xff] %v5253_v31  ;;  %v5259_v63 = vadd.f32 %v5184_v23, %v9865_v56 }
 0x65d   : > { %5329 = vst [vmem:[#allocation15 + $0xb0] sm:$0xff] %v5254_v44  ;;  %5330 = vst [vmem:[#allocation15 + $0xb8] sm:$0xff] %v5255_v4  ;;  %v5260_v30 = vadd.f32 %v5185_v13, %v9867_v8  ;;  %v5261_v45 = vadd.f32 %v5186_v40, %v9873_v60  ;;  %v5187_v57 = vld [vmem:[#allocation15 + $0xf0] sm:$0xff]  ;;  %v5188_v43 = vld [vmem:[#allocation15 + $0xf8] sm:$0xff] }
 0x65e   : > { %v5189_v49 = vld [vmem:[#allocation15 + $0x100] sm:$0xff]  ;;  %5331 = vst [vmem:[#allocation15 + $0xc0] sm:$0xff] %v5256_v41  ;;  %5332 = vst [vmem:[#allocation15 + $0xc8] sm:$0xff] %v5257_v50  ;;  %v5262_v3 = vadd.f32 %v5187_v57, %v9875_v48  ;;  %v10678_v55 = vld [vmem:[#allocation97_spill] sm:$0xff] }
 0x65f   : > { %5333 = vst [vmem:[#allocation15 + $0xd0] sm:$0xff] %v5258_v15  ;;  %v5263_v51 = vadd.f32 %v5188_v43, %v10678_v55  ;;  %v10679_v53 = vld [vmem:[#allocation100_spill] sm:$0xff]  ;;  %v5190_v29 = vld [vmem:[#allocation15 + $0x108] sm:$0xff]  ;;  %v5192_v42 = vld [vmem:[#allocation15 + $0x118] sm:$0xff] }
 0x660   : > { %v5264_v59 = vadd.f32 %v5189_v49, %v10679_v53  ;;  %v5191_v17 = vld [vmem:[#allocation15 + $0x110] sm:$0xff]  ;;  %5334 = vst [vmem:[#allocation15 + $0xd8] sm:$0xff] %v5259_v63  ;;  %5335 = vst [vmem:[#allocation15 + $0xe0] sm:$0xff] %v5260_v30  ;;  %v10680_v56 = vld [vmem:[#allocation98_spill] sm:$0xff] }
 0x661   : > { %5336 = vst [vmem:[#allocation15 + $0xe8] sm:$0xff] %v5261_v45  ;;  %v5265_v8 = vadd.f32 %v5190_v29, %v10680_v56  ;;  %v5266_v60 = vadd.f32 %v5191_v17, %v9881_v6  ;;  %v10681_v9 = vld [vmem:[#allocation85_spill] sm:$0xff]  ;;  %v5193_v10 = vld [vmem:[#allocation15 + $0x120] sm:$0xff]  ;;  %v5194_v14 = vld [vmem:[#allocation15 + $0x128] sm:$0xff] }
 0x662   : > { %v5267_v58 = vadd.f32 %v5192_v42, %v10681_v9  ;;  %v5195_v18 = vld [vmem:[#allocation15 + $0x130] sm:$0xff]  ;;  %5337 = vst [vmem:[#allocation15 + $0xf0] sm:$0xff] %v5262_v3  ;;  %5338 = vst [vmem:[#allocation15 + $0xf8] sm:$0xff] %v5263_v51  ;;  %v10682_v48 = vld [vmem:[#allocation101_spill] sm:$0xff] }
 0x663   : > { %5339 = vst [vmem:[#allocation15 + $0x100] sm:$0xff] %v5264_v59  ;;  %v5268_v26 = vadd.f32 %v5193_v10, %v10682_v48  ;;  %v10683_v28 = vld [vmem:[#allocation87_spill] sm:$0xff]  ;;  %v5270_v61 = vadd.f32 %v5195_v18, %v9898_v46  ;;  %v5196_v20 = vld [vmem:[#allocation15 + $0x138] sm:$0xff]  ;;  %v5197_v7 = vld [vmem:[#allocation15 + $0x140] sm:$0xff] }
 0x664   : > { %v5269_v52 = vadd.f32 %v5194_v14, %v10683_v28  ;;  %v5198_v21 = vld [vmem:[#allocation15 + $0x148] sm:$0xff]  ;;  %5340 = vst [vmem:[#allocation15 + $0x108] sm:$0xff] %v5265_v8  ;;  %5341 = vst [vmem:[#allocation15 + $0x110] sm:$0xff] %v5266_v60  ;;  %v10684_v6 = vld [vmem:[#allocation102_spill] sm:$0xff] }
 0x665   : > { %5342 = vst [vmem:[#allocation15 + $0x118] sm:$0xff] %v5267_v58  ;;  %v5271_v62 = vadd.f32 %v5196_v20, %v10684_v6  ;;  %v10685_v34 = vld [vmem:[#allocation89_spill] sm:$0xff]  ;;  %v5273_v32 = vadd.f32 %v5198_v21, %v9901_v16  ;;  %v5199_v35 = vld [vmem:[#allocation15 + $0x150] sm:$0xff]  ;;  %v5201_v39 = vld [vmem:[#allocation15 + $0x160] sm:$0xff] }
 0x666   : > { %v5272_v27 = vadd.f32 %v5197_v7, %v10685_v34  ;;  %v5200_v1 = vld [vmem:[#allocation15 + $0x158] sm:$0xff]  ;;  %5343 = vst [vmem:[#allocation15 + $0x120] sm:$0xff] %v5268_v26  ;;  %5344 = vst [vmem:[#allocation15 + $0x128] sm:$0xff] %v5269_v52  ;;  %v10687_v31 = vld [vmem:[#allocation106_spill] sm:$0xff]  ;;  %v5276_v4 = vadd.f32 %v5201_v39, %v9912_v54 }
 0x667   : > { %5345 = vst [vmem:[#allocation15 + $0x130] sm:$0xff] %v5270_v61  ;;  %v10686_v22 = vld [vmem:[#allocation105_spill] sm:$0xff]  ;;  %v5275_v44 = vadd.f32 %v5200_v1, %v10687_v31  ;;  %v5202_v37 = vld [vmem:[#allocation15 + $0x168] sm:$0xff]  ;;  %v5203_v25 = vld [vmem:[#allocation15 + $0x170] sm:$0xff] }
 0x668   : > { %v5274_v46 = vadd.f32 %v5199_v35, %v10686_v22  ;;  %v5204_v0 = vld [vmem:[#allocation15 + $0x178] sm:$0xff]  ;;  %5346 = vst [vmem:[#allocation15 + $0x138] sm:$0xff] %v5271_v62  ;;  %5347 = vst [vmem:[#allocation15 + $0x140] sm:$0xff] %v5272_v27  ;;  %v10688_v41 = vld [vmem:[#allocation107_spill] sm:$0xff] }
 0x669   : > { %5348 = vst [vmem:[#allocation15 + $0x148] sm:$0xff] %v5273_v32  ;;  %v5277_v16 = vadd.f32 %v5202_v37, %v10688_v41  ;;  %v10689_v50 = vld [vmem:[#allocation108_spill] sm:$0xff]  ;;  %v5279_v23 = vadd.f32 %v5204_v0, %v9915_v33  ;;  %v5205_v13 = vld [vmem:[#allocation15 + $0x180] sm:$0xff]  ;;  %v5206_v40 = vld [vmem:[#allocation15 + $0x188] sm:$0xff] }
 0x66a   : > { %v5278_v15 = vadd.f32 %v5203_v25, %v10689_v50  ;;  %v5207_v63 = vld [vmem:[#allocation15 + $0x190] sm:$0xff]  ;;  %5349 = vst [vmem:[#allocation15 + $0x150] sm:$0xff] %v5274_v46  ;;  %5350 = vst [vmem:[#allocation15 + $0x158] sm:$0xff] %v5275_v44  ;;  %v10690_v30 = vld [vmem:[#allocation75_spill] sm:$0xff] }
 0x66b   : > { %5351 = vst [vmem:[#allocation15 + $0x160] sm:$0xff] %v5276_v4  ;;  %v5280_v54 = vadd.f32 %v5205_v13, %v10690_v30  ;;  %v10691_v45 = vld [vmem:[#allocation76_spill] sm:$0xff]  ;;  %v5282_v43 = vadd.f32 %v5207_v63, %v9926_v2  ;;  %v5208_v49 = vld [vmem:[#allocation15 + $0x198] sm:$0xff]  ;;  %v5209_v3 = vld [vmem:[#allocation15 + $0x1a0] sm:$0xff] }
 0x66c   : > { %v5281_v57 = vadd.f32 %v5206_v40, %v10691_v45  ;;  %v5210_v55 = vld [vmem:[#allocation15 + $0x1a8] sm:$0xff]  ;;  %5352 = vst [vmem:[#allocation15 + $0x168] sm:$0xff] %v5277_v16  ;;  %5353 = vst [vmem:[#allocation15 + $0x170] sm:$0xff] %v5278_v15  ;;  %v10692_v51 = vld [vmem:[#allocation78_spill] sm:$0xff] }
 0x66d   : > { %5354 = vst [vmem:[#allocation15 + $0x178] sm:$0xff] %v5279_v23  ;;  %v5283_v33 = vadd.f32 %v5208_v49, %v10692_v51  ;;  %v10693_v53 = vld [vmem:[#allocation80_spill] sm:$0xff]  ;;  %v5285_v29 = vadd.f32 %v5210_v55, %v9929_v5  ;;  %v5212_v42 = vld [vmem:[#allocation15 + $0x1b8] sm:$0xff]  ;;  %v5213_v56 = vld [vmem:[#allocation15 + $0x1c0] sm:$0xff] }
 0x66e   : > { %v5284_v59 = vadd.f32 %v5209_v3, %v10693_v53  ;;  %v5211_v17 = vld [vmem:[#allocation15 + $0x1b0] sm:$0xff]  ;;  %5355 = vst [vmem:[#allocation15 + $0x180] sm:$0xff] %v5280_v54  ;;  %5356 = vst [vmem:[#allocation15 + $0x188] sm:$0xff] %v5281_v57  ;;  %v10694_v8 = vld [vmem:[#allocation77_spill] sm:$0xff]  ;;  %v5288_v58 = vadd.f32 %v5213_v56, %v9940_v19 }
 0x66f   : > { %5357 = vst [vmem:[#allocation15 + $0x190] sm:$0xff] %v5282_v43  ;;  %v5286_v2 = vadd.f32 %v5211_v17, %v10694_v8  ;;  %v10695_v60 = vld [vmem:[#allocation79_spill] sm:$0xff]  ;;  %v5215_v14 = vld [vmem:[#allocation15 + $0x1d0] sm:$0xff]  ;;  %v5216_v18 = vld [vmem:[#allocation15 + $0x1d8] sm:$0xff] }
 0x670   : > { %v5287_v9 = vadd.f32 %v5212_v42, %v10695_v60  ;;  %v5214_v10 = vld [vmem:[#allocation15 + $0x1c8] sm:$0xff]  ;;  %5358 = vst [vmem:[#allocation15 + $0x198] sm:$0xff] %v5283_v33  ;;  %5359 = vst [vmem:[#allocation15 + $0x1a0] sm:$0xff] %v5284_v59  ;;  %v10696_v48 = vld [vmem:[#allocation82_spill] sm:$0xff] }
 0x671   : > { %5360 = vst [vmem:[#allocation15 + $0x1a8] sm:$0xff] %v5285_v29  ;;  %v5289_v5 = vadd.f32 %v5214_v10, %v10696_v48  ;;  %v10697_v26 = vld [vmem:[#allocation86_spill] sm:$0xff]  ;;  %v10698_v52 = vld [vmem:[#allocation81_spill] sm:$0xff]  ;;  %v5218_v7 = vld [vmem:[#allocation15 + $0x1e8] sm:$0xff] }
 0x672   : > { %v5290_v28 = vadd.f32 %v5215_v14, %v10697_v26  ;;  %v5291_v61 = vadd.f32 %v5216_v18, %v10698_v52  ;;  %v5217_v20 = vld [vmem:[#allocation15 + $0x1e0] sm:$0xff]  ;;  %v5219_v21 = vld [vmem:[#allocation15 + $0x1f0] sm:$0xff]  ;;  %5361 = vst [vmem:[#allocation15 + $0x1b0] sm:$0xff] %v5286_v2  ;;  %5362 = vst [vmem:[#allocation15 + $0x1b8] sm:$0xff] %v5287_v9 }
 0x673   : > { %5363 = vst [vmem:[#allocation15 + $0x1c0] sm:$0xff] %v5288_v58  ;;  %v10699_v6 = vld [vmem:[#allocation84_spill] sm:$0xff]  ;;  %v10700_v62 = vld [vmem:[#allocation91_spill] sm:$0xff]  ;;  %v5294_v27 = vadd.f32 %v5219_v21, %v9954_v38  ;;  %v5220_v32 = vld [vmem:[#allocation15 + $0x1f8] sm:$0xff] }
 0x674   : > { %v5292_v19 = vadd.f32 %v5217_v20, %v10699_v6  ;;  %v5293_v34 = vadd.f32 %v5218_v7, %v10700_v62  ;;  %v5221_v35 = vld [vmem:[#allocation15 + $0x200] sm:$0xff]  ;;  %v5222_v1 = vld [vmem:[#allocation15 + $0x208] sm:$0xff]  ;;  %5364 = vst [vmem:[#allocation15 + $0x1c8] sm:$0xff] %v5289_v5  ;;  %5365 = vst [vmem:[#allocation15 + $0x1d0] sm:$0xff] %v5290_v28 }
 0x675   : > { %5366 = vst [vmem:[#allocation15 + $0x1d8] sm:$0xff] %v5291_v61  ;;  %v10701_v39 = vld [vmem:[#allocation93_spill] sm:$0xff]  ;;  %v10702_v46 = vld [vmem:[#allocation90_spill] sm:$0xff]  ;;  %v10703_v44 = vld [vmem:[#allocation92_spill] sm:$0xff] }
 0x676   : > { %v5295_v22 = vadd.f32 %v5220_v32, %v10701_v39  ;;  %v5296_v31 = vadd.f32 %v5221_v35, %v10702_v46  ;;  %v5297_v4 = vadd.f32 %v5222_v1, %v10703_v44  ;;  %v5223_v37 = vld [vmem:[#allocation15 + $0x210] sm:$0xff]  ;;  %v5224_v25 = vld [vmem:[#allocation15 + $0x218] sm:$0xff]  ;;  %v5225_v0 = vld [vmem:[#allocation15 + $0x220] sm:$0xff]  ;;  %5367 = vst [vmem:[#allocation15 + $0x1e0] sm:$0xff] %v5292_v19 }
 0x677   : > { %5368 = vst [vmem:[#allocation15 + $0x1e8] sm:$0xff] %v5293_v34  ;;  %5369 = vst [vmem:[#allocation15 + $0x1f0] sm:$0xff] %v5294_v27  ;;  %v10704_v41 = vld [vmem:[#allocation96_spill] sm:$0xff]  ;;  %v10705_v16 = vld [vmem:[#allocation83_spill] sm:$0xff]  ;;  %v5300_v15 = vadd.f32 %v5225_v0, %v9968_v11 }
 0x678   : > { %v5298_v38 = vadd.f32 %v5223_v37, %v10704_v41  ;;  %v5299_v50 = vadd.f32 %v5224_v25, %v10705_v16  ;;  %v5226_v23 = vld [vmem:[#allocation15 + $0x228] sm:$0xff]  ;;  %v5227_v13 = vld [vmem:[#allocation15 + $0x230] sm:$0xff]  ;;  %v5228_v40 = vld [vmem:[#allocation15 + $0x238] sm:$0xff]  ;;  %5370 = vst [vmem:[#allocation15 + $0x1f8] sm:$0xff] %v5295_v22 }
 0x679   : > { %5371 = vst [vmem:[#allocation15 + $0x200] sm:$0xff] %v5296_v31  ;;  %5372 = vst [vmem:[#allocation15 + $0x208] sm:$0xff] %v5297_v4  ;;  %v10706_v63 = vld [vmem:[#allocation94_spill] sm:$0xff]  ;;  %v10707_v54 = vld [vmem:[#allocation99_spill] sm:$0xff]  ;;  %v5303_v57 = vadd.f32 %v5228_v40, %v9971_v47 }
 0x67a   : > { %v5301_v30 = vadd.f32 %v5226_v23, %v10706_v63  ;;  %v5302_v45 = vadd.f32 %v5227_v13, %v10707_v54  ;;  %v5229_v43 = vld [vmem:[#allocation15 + $0x240] sm:$0xf]  ;;  %v5230_v49 = vld [vmem:[#allocation15 + $0x248] sm:$0xf]  ;;  %v5231_v3 = vld [vmem:[#allocation15 + $0x250] sm:$0xf] }
 0x67b   : > { %5373 = vst [vmem:[#allocation15 + $0x210] sm:$0xff] %v5298_v38  ;;  %5374 = vst [vmem:[#allocation15 + $0x218] sm:$0xff] %v5299_v50  ;;  %v5304_v11 = vadd.f32 %v5229_v43, %v9973_v36  ;;  %v5305_v55 = vadd.f32 %v5230_v49, %v9975_v24  ;;  %v5306_v51 = vadd.f32 %v5231_v3, %v9978_v12 }
 0x67c   : > { %5375 = vst [vmem:[#allocation15 + $0x220] sm:$0xff] %v5300_v15  ;;  %5376 = vst [vmem:[#allocation15 + $0x228] sm:$0xff] %v5301_v30 }
 0x67d   : > { %5377 = vst [vmem:[#allocation15 + $0x230] sm:$0xff] %v5302_v45  ;;  %5378 = vst [vmem:[#allocation15 + $0x238] sm:$0xff] %v5303_v57 }
 0x67e   : > { %5379 = vst [vmem:[#allocation15 + $0x240] sm:$0xf] %v5304_v11  ;;  %5380 = vst [vmem:[#allocation15 + $0x248] sm:$0xf] %v5305_v55 }
 0x67f   : > { %5381 = vst [vmem:[#allocation15 + $0x250] sm:$0xf] %v5306_v51 }
 0x680 PF: > { %s10708_s14 = sld [smem:[#allocation23_spill]]  ;;  %s7357_s9 = smov [#allocation15]  }
 0x681   : > { %s5388_s30 = sshll.u32 %s7357_s9, 4  ;;  %s5389_s30 = int_to_ptr.vmem [resolvable:$true] %s5388_s30 }
 0x682   : > { %s7259_s24 = scalar_lea.vmem %s5389_s30, 9600  ;;  %p7266_p12 = scmp.lt.s32.totalorder %s5389_s30, %s5389_s30 }
 0x683   : > { %p7260_p8 = scmp.ne.s32.totalorder %s5389_s30, %s7259_s24  ;;  %p7267_p0 = scmp.lt.s32.totalorder %s7259_s24, %s7259_s24 }
 0x685   : > { %p7268_p3 = por %p7267_p0, %p7266_p12 }
 0x686   : > { %p6406_p5 = scmp.eq.s32.totalorder %s10708_s14, 2 }
 0x688   : > { %p7261_p6 = pnand %p7260_p8, %p6406_p5 }
 0x68a   : > { %p7262_p4 = pneg %p7261_p6 }
 0x68c   : > { %p7269_p7 = pnand %p7268_p3, %p7262_p4 }
 0x68e   : > { %7272 = shalt.err (!%p7269_p7)
}
 0x68f   : > { %s10709_s8 = sld [smem:[#allocation116_spill]] }
 0x695   : > { %s7273_s28 = scalar_lea.hbm %s10709_s8, 9600 }
 0x696   : > { %p7274_p11 = scmp.ne.s32.totalorder %s10709_s8, %s7273_s28  ;;  %p7279_p13 = scmp.lt.u32.totalorder %s7273_s28, %s10709_s8 }
 0x698   : > { %p7275_p2 = pnand %p7274_p11, %p6406_p5 }
 0x69a   : > { %p7276_p1 = pneg %p7275_p2 }
 0x69c   : > { %p7281_p9 = pnand %p7279_p13, %p7276_p1 }
 0x69e   : > { %7284 = shalt.err (!%p7281_p9)
}
 0x69f   : > { %s7358_s23 = smov 384   ;;  %s7359_s11 = smov 24  }
 0x6a0   : > { %6366 = dma.vmem_to_hbm [thread:$0]  (%p6406_p5), %s5389_s30, 9600, %s10709_s8, [#allocation5], %s7358_s23, %s7358_s23, %s7359_s11  }
 0x6a1   : > { %7322 = dma.done.wait (%p6406_p5), [#allocation5], 9600  }
 0x6a2   : > { %7324 = vsyncadd (%p6406_p5), [#allocation5], 4294957696 }
 0x6a3 PF: > { %s10710_s30 = sld [smem:[#allocation25_spill]]  ;;  %s10711_s27 = sld [smem:[#allocation22_spill]] }
 0x6a4   : > { %s10712_s10 = sld [smem:[#allocation26_spill]]  ;;  %s10713_s28 = smov %s7335_s29 }
 0x6a9   : > { %p19_p10 = scmp.ge.s32.totalorder %s10710_s30, 5  }
 0x6aa   : > { %s10714_s29 = smov %s10712_s10 }
 0x6ab   :  { %21 = sbr.rel (!%p19_p10) target bundleno = 10 (0xa), region = 142 }
 0x6b2   :  { %5404 = vsyncpa [#allocation4], 1 }
 0x6b3   :  { %5406 = vsyncpa [#allocation4 + $0x1], 1 }
 0x6b4   :  { %5407 = vsyncpa [#allocation7], 1 }
 0x6b5   :  { %5408 = vsyncpa [#allocation10], 1 }
 0x6b6   :  { %5409 = vsyncpa [#allocation5], 1 }
 0x6b7   :  { %5411 = vsyncpa [#allocation5 + $0x1], 1 }

</bundles_post_ra>
